<compile_context>
chip_gen: v5e
topology: v5e:2x2
jax: 0.10.0
libtpu: 0.0.40
codegen_flags: <defaults>
</compile_context>

<pallas_src>
import jax
import jax.numpy as jnp
from jax import lax
from jax.experimental import pallas as pl
from jax.experimental.pallas import tpu as pltpu

LEAKY_SLOPE = 0.2
GN_EPS = 1e-5


# --------------------------- fused in-kernel conv layer ---------------------------
def _conv3x3_gn_lrelu(x, slab_ref, acc_ref, w_ref, p_ref):
    """3x3 conv (stride 1, SAME) + GroupNorm(num_groups=1) + LeakyReLU(0.2).

    x:        (bt, hp, wp, c) f32 activation (pooled input or previous layer).
    slab_ref: (bt, hp+2, wp, 3c) compute-dtype VMEM scratch (column-unrolled slab).
    acc_ref:  (bt, hp*wp, cout) f32 VMEM accumulator.
    w_ref:    (3, 3c, cout) column-unrolled weights, w_ref[di][dj*c+k, o] = w[di,dj,k,o].
    p_ref:    (3, 1, 1, cout) = [bias, gamma, beta] (f32).
    returns:  (bt, hp, wp, cout) f32 activation.
    """
    bt, hp, wp, c = x.shape
    cout = acc_ref.shape[-1]
    m = bt * hp * wp
    cdt = slab_ref.dtype

    # Column shifts via XLU roll + iota edge mask (no sublane-misaligned copies).
    col = lax.broadcasted_iota(jnp.int32, x.shape, 2)
    left = jnp.where(col == 0, 0.0, pltpu.roll(x, 1, axis=2))          # x[..., j-1]
    right = jnp.where(col == wp - 1, 0.0, pltpu.roll(x, wp - 1, axis=2))  # x[..., j+1]

    # Zero only the two H-halo rows each step (tiny; multi-core safe).
    zrow = jnp.zeros((bt, 1, wp, 3 * c), cdt)
    slab_ref[:, 0:1, :, :] = zrow
    slab_ref[:, hp + 1:hp + 2, :, :] = zrow

    # Build the im2col slab: lane block dj holds the input shifted by (dj-1) cols.
    slab_ref[:, 1:hp + 1, :, 0:c] = left.astype(cdt)
    slab_ref[:, 1:hp + 1, :, c:2 * c] = x.astype(cdt)
    slab_ref[:, 1:hp + 1, :, 2 * c:3 * c] = right.astype(cdt)

    # 3 MXU pushes with K = 3c (H shifts are free major-dim slices of the slab),
    # accumulated into a persistent f32 VMEM scratch.
    w_all = w_ref[...]                                     # (3, 3c, cout)
    for di in range(3):
        part = jnp.dot(
            slab_ref[:, di:di + hp, :, :].reshape(m, 3 * c), w_all[di],
            preferred_element_type=jnp.float32,
        ).reshape(bt, hp * wp, cout)
        if di == 0:
            acc_ref[...] = part
        else:
            acc_ref[...] += part

    # GroupNorm(num_groups=1): per-sample stats over (H, W, C), all in f32.
    p_all = p_ref[...].astype(jnp.float32)                 # (3, 1, 1, cout)
    y = acc_ref[...] + p_all[0]                            # conv bias
    cnt = float(hp * wp * cout)
    s = jnp.sum(y, axis=(1, 2), keepdims=True)
    ss = jnp.sum(y * y, axis=(1, 2), keepdims=True)
    mean = s * (1.0 / cnt)
    var = jnp.maximum(ss * (1.0 / cnt) - mean * mean, 0.0)  # clamp: cancellation
    yn = (y - mean) * lax.rsqrt(var + GN_EPS)
    yn = yn * p_all[1] + p_all[2]

    out = jnp.where(yn >= 0, yn, LEAKY_SLOPE * yn)          # LeakyReLU(0.2)
    return out.reshape(bt, hp, wp, cout)


# ------------------------------- fused DownBlock kernel ---------------------------
def _down_block_kernel(ph_ref, w1_ref, p1_ref, w2_ref, p2_ref, w3_ref, p3_ref,
                       o_ref, slabA_ref, slabB_ref, rowbuf_ref, acc_ref):
    bt, hp, wp, cout = o_ref.shape
    cin = ph_ref.shape[-1] // 4

    # ---------------- MaxPool2d(kernel=3, stride=2, padding=1) ----------------
    # Channel-stacked phases: ee = x[2i,2j], eo = x[2i,2j+1], oe = x[2i+1,2j],
    # oo = x[2i+1,2j+1]  (out-of-range entries pre-padded to -inf in the wrapper).
    ph = ph_ref[...].astype(jnp.float32)                    # (bt, hp, wp, 4*cin)
    ee = ph[..., 0 * cin:1 * cin]
    eo = ph[..., 1 * cin:2 * cin]
    oe = ph[..., 2 * cin:3 * cin]
    oo = ph[..., 3 * cin:4 * cin]

    col = lax.broadcasted_iota(jnp.int32, ee.shape, 2)
    # max over the 3 column taps of input row 2i (even) / 2i+1 (odd):
    row_e = jnp.maximum(jnp.maximum(ee, eo),
                        jnp.where(col == 0, -jnp.inf, pltpu.roll(eo, 1, axis=2)))
    row_o = jnp.maximum(jnp.maximum(oe, oo),
                        jnp.where(col == 0, -jnp.inf, pltpu.roll(oo, 1, axis=2)))
    # taps of input row 2i-1 = row_o shifted down one output row (row 0 -> -inf),
    # done via a small H-haloed scratch: major-dim slices only, no relayout.
    rowbuf_ref[:, 0:1, :, :] = jnp.full((bt, 1, wp, cin), -jnp.inf, jnp.float32)
    rowbuf_ref[:, 1:hp + 1, :, :] = row_o
    pooled = jnp.maximum(jnp.maximum(row_e, row_o), rowbuf_ref[:, 0:hp, :, :])

    # -------------- 3 x (conv3x3 + GroupNorm(1 group) + LeakyReLU) ------------
    y = _conv3x3_gn_lrelu(pooled, slabA_ref, acc_ref, w1_ref, p1_ref)
    y = _conv3x3_gn_lrelu(y, slabB_ref, acc_ref, w2_ref, p2_ref)
    y = _conv3x3_gn_lrelu(y, slabB_ref, acc_ref, w3_ref, p3_ref)

    o_ref[...] = y.astype(o_ref.dtype)


# ------------------------------------ wrappers -------------------------------------
def _vmem_tile_bytes(shape, itemsize):
    """Rough VMEM footprint of one tile, accounting (8,128) minor-dim padding."""
    s = list(shape)
    s[-1] = -(-s[-1] // 128) * 128
    if len(s) >= 2:
        s[-2] = -(-s[-2] // 8) * 8
    n = itemsize
    for d in s:
        n *= d
    return n


def _prep_layer(layer, compute_dtype):
    w = layer["w"]                                          # (3, 3, cin, cout) HWIO
    kh, kw, cin, cout = w.shape
    # Column-unrolled weights: wcol[di][dj*cin + k, o] = w[di, dj, k, o].
    wcol = w.reshape(kh, kw * cin, cout).astype(compute_dtype)
    p = jnp.stack([layer["b"].reshape(1, 1, cout),
                   layer["gamma"].reshape(1, 1, cout),
                   layer["beta"].reshape(1, 1, cout)], axis=0).astype(jnp.float32)
    return wcol, p                                          # (3,3*cin,cout), (3,1,1,cout)


def _down_block_forward(x_nchw, params, compute_dtype=jnp.bfloat16):
    x = jnp.transpose(x_nchw, (0, 2, 3, 1)).astype(jnp.float32)   # NCHW -> NHWC
    n, h, w, cin = x.shape
    hp = (h - 1) // 2 + 1
    wp = (w - 1) // 2 + 1
    cout = params[0]["w"].shape[-1]

    # Even/odd row/col phases, stacked on the channel (lane) dim: one input,
    # one DMA stream, 4x less lane-padding waste than four separate inputs.
    phases = []
    for ro in (0, 1):
        for co in (0, 1):
            a = x[:, ro::2, co::2, :]
            dh, dw = hp - a.shape[1], wp - a.shape[2]
            if dh or dw:
                a = jnp.pad(a, ((0, 0), (0, dh), (0, dw), (0, 0)),
                            constant_values=-jnp.inf)
            phases.append(a)
    ph = jnp.concatenate(phases, axis=-1)                   # (n, hp, wp, 4*cin)

    (w1, p1), (w2, p2), (w3, p3) = [_prep_layer(l, compute_dtype) for l in params]

    # ---- generation-aware VMEM budget & batch-tile selection ----
    try:
        vmem_cap = int(pltpu.get_tpu_info().vmem_capacity_bytes)
    except Exception:
        vmem_cap = 64 * 1024 * 1024                         # conservative fallback
    vmem_limit = (min(vmem_cap, 128 * 1024 * 1024) * 3) // 4
    budget = vmem_limit // 2                                # headroom for compiler temps
    csz = jnp.dtype(compute_dtype).itemsize

    def tile_bytes(b):
        return (2 * _vmem_tile_bytes((b, hp, wp, 4 * cin), 4)        # input (dbl-buffered)
                + 2 * _vmem_tile_bytes((b, hp, wp, cout), 4)         # output (dbl-buffered)
                + _vmem_tile_bytes((b, hp + 2, wp, 3 * cin), csz)    # slabA
                + _vmem_tile_bytes((b, hp + 2, wp, 3 * cout), csz)   # slabB
                + _vmem_tile_bytes((b, hp + 1, wp, cin), 4)          # pool row buffer
                + _vmem_tile_bytes((b, hp * wp, cout), 4))           # f32 accumulator

    # Keep >= 2 grid steps when n >= 2 so both TensorCores are used on 2-core parts.
    max_bt = 1 if n <= 1 else (n + 1) // 2
    bt = 1
    for cand in range(1, max_bt + 1):
        if tile_bytes(cand) <= budget:
            bt = cand
    grid_n = -(-n // bt)
    n_pad = grid_n * bt
    if n_pad != n:
        ph = jnp.pad(ph, ((0, n_pad - n), (0, 0), (0, 0), (0, 0)))

    out = pl.pallas_call(
        _down_block_kernel,
        out_shape=jax.ShapeDtypeStruct((n_pad, hp, wp, cout), jnp.float32),
        grid=(grid_n,),
        in_specs=[
            pl.BlockSpec((bt, hp, wp, 4 * cin), lambda g: (g, 0, 0, 0)),   # phases
            pl.BlockSpec((3, 3 * cin, cout), lambda g: (0, 0, 0)),         # layer 1 W
            pl.BlockSpec((3, 1, 1, cout), lambda g: (0, 0, 0, 0)),         # layer 1 b/g/b
            pl.BlockSpec((3, 3 * cout, cout), lambda g: (0, 0, 0)),        # layer 2 W
            pl.BlockSpec((3, 1, 1, cout), lambda g: (0, 0, 0, 0)),         # layer 2 b/g/b
            pl.BlockSpec((3, 3 * cout, cout), lambda g: (0, 0, 0)),        # layer 3 W
            pl.BlockSpec((3, 1, 1, cout), lambda g: (0, 0, 0, 0)),         # layer 3 b/g/b
        ],
        out_specs=pl.BlockSpec((bt, hp, wp, cout), lambda g: (g, 0, 0, 0)),
        scratch_shapes=[
            pltpu.VMEM((bt, hp + 2, wp, 3 * cin), compute_dtype),    # slabA (layer 1)
            pltpu.VMEM((bt, hp + 2, wp, 3 * cout), compute_dtype),   # slabB (layers 2,3)
            pltpu.VMEM((bt, hp + 1, wp, cin), jnp.float32),          # pool row shift
            pltpu.VMEM((bt, hp * wp, cout), jnp.float32),            # f32 conv accumulator
        ],
        compiler_params=pltpu.CompilerParams(
            dimension_semantics=("parallel",),
            vmem_limit_bytes=int(vmem_limit)),
    )(ph, w1, p1, w2, p2, w3, p3)

    out = out[:n]
    return jnp.transpose(out, (0, 3, 1, 2))                 # NHWC -> NCHW


down_block_forward = jax.jit(_down_block_forward, static_argnames=("compute_dtype",))


# ------------------------------ parameter initialization ---------------------------
def init_down_block_params(key, in_ch, out_ch, kernel_size=3):
    layers = []
    cin = in_ch
    for _ in range(3):
        key, k_w, k_b, k_g, k_be = jax.random.split(key, 5)
        fan_in = cin * kernel_size * kernel_size
        layers.append(dict(
            w=jax.random.normal(k_w, (kernel_size, kernel_size, cin, out_ch),
                                jnp.float32) / jnp.sqrt(float(fan_in)),
            b=0.1 * jax.random.normal(k_b, (1, out_ch), jnp.float32),
            gamma=1.0 + 0.1 * jax.random.normal(k_g, (1, out_ch), jnp.float32),
            beta=0.1 * jax.random.normal(k_be, (1, out_ch), jnp.float32),
        ))
        cin = out_ch
    return layers


# --------------------------------- pure-JAX reference ------------------------------
def down_block_reference(x_nchw, params):
    x = jnp.transpose(x_nchw, (0, 2, 3, 1))
    x = lax.reduce_window(x, -jnp.inf, lax.max, (1, 3, 3, 1), (1, 2, 2, 1),
                          [(0, 0), (1, 1), (1, 1), (0, 0)])
    for layer in params:
        y = lax.conv_general_dilated(
            x, layer["w"], window_strides=(1, 1), padding="SAME",
            dimension_numbers=("NHWC", "HWIO", "NHWC"))
        y = y + layer["b"][0]
        mean = jnp.mean(y, axis=(1, 2, 3), keepdims=True)
        var = jnp.mean((y - mean) ** 2, axis=(1, 2, 3), keepdims=True)
        y = (y - mean) * lax.rsqrt(var + GN_EPS)
        y = y * layer["gamma"][0] + layer["beta"][0]
        x = jnp.where(y >= 0, y, LEAKY_SLOPE * y)
    return jnp.transpose(x, (0, 3, 1, 2))


if __name__ == "__main__":
    N, IN_CH, OUT_CH, H, W = 2, 4, 8, 16, 16
    key = jax.random.PRNGKey(0)
    kx, kp = jax.random.split(key)
    x = jax.random.normal(kx, (N, IN_CH, H, W), jnp.float32)
    params = init_down_block_params(kp, IN_CH, OUT_CH)

    ref = down_block_reference(x, params)

    # Strict check with f32 MXU operands.
    out_f32 = jax.block_until_ready(
        down_block_forward(x, params, compute_dtype=jnp.float32))
    assert out_f32.shape == (N, OUT_CH, H // 2, W // 2), out_f32.shape
    err_f32 = float(jnp.max(jnp.abs(out_f32 - ref)))
    assert err_f32 < 2e-4, f"f32 mismatch vs reference: max abs err {err_f32}"

    # Performance path: bf16 matmul operands, f32 GroupNorm stats.
    out_bf16 = jax.block_until_ready(
        down_block_forward(x, params, compute_dtype=jnp.bfloat16))
    err_bf16 = float(jnp.max(jnp.abs(out_bf16 - ref)))
    assert err_bf16 < 1e-1, f"bf16 mismatch vs reference: max abs err {err_bf16}"

    print("KERNEL_OK")
</pallas_src>

<mosaic_0001>
module attributes {stable_mosaic.version = 11 : i64} {
  func.func @_down_block_kernel(%arg0: i32, %arg1: memref<1x8x8x16xf32, #tpu.memory_space<vmem>>, %arg2: memref<3x12x8xf32, #tpu.memory_space<vmem>>, %arg3: memref<3x1x1x8xf32, #tpu.memory_space<vmem>>, %arg4: memref<3x24x8xf32, #tpu.memory_space<vmem>>, %arg5: memref<3x1x1x8xf32, #tpu.memory_space<vmem>>, %arg6: memref<3x24x8xf32, #tpu.memory_space<vmem>>, %arg7: memref<3x1x1x8xf32, #tpu.memory_space<vmem>>, %arg8: memref<1x8x8x8xf32, #tpu.memory_space<vmem>>, %arg9: memref<1x10x8x12xf32, #tpu.memory_space<vmem>>, %arg10: memref<1x10x8x24xf32, #tpu.memory_space<vmem>>, %arg11: memref<1x9x8x4xf32, #tpu.memory_space<vmem>>, %arg12: memref<1x64x8xf32, #tpu.memory_space<vmem>>) attributes {dimension_semantics = [#tpu.dimension_semantics<parallel>], iteration_bounds = array<i64: 2>, scalar_prefetch = 0 : i64, scratch_operands = 4 : i64, tpu.core_type = #tpu.core_type<tc>, window_params = [{transform_indices = @transform_0, window_bounds = array<i64: 1, 8, 8, 16>}, {pipeline_mode = #tpu.pipeline_mode<synchronous>, transform_indices = @transform_1, window_bounds = array<i64: 3, 12, 8>}, {pipeline_mode = #tpu.pipeline_mode<synchronous>, transform_indices = @transform_2, window_bounds = array<i64: 3, 1, 1, 8>}, {pipeline_mode = #tpu.pipeline_mode<synchronous>, transform_indices = @transform_3, window_bounds = array<i64: 3, 24, 8>}, {pipeline_mode = #tpu.pipeline_mode<synchronous>, transform_indices = @transform_4, window_bounds = array<i64: 3, 1, 1, 8>}, {pipeline_mode = #tpu.pipeline_mode<synchronous>, transform_indices = @transform_5, window_bounds = array<i64: 3, 24, 8>}, {pipeline_mode = #tpu.pipeline_mode<synchronous>, transform_indices = @transform_6, window_bounds = array<i64: 3, 1, 1, 8>}, {transform_indices = @transform_7, window_bounds = array<i64: 1, 8, 8, 8>}]} {
    %c0 = arith.constant 0 : index
    %c0_0 = arith.constant 0 : index
    %c0_1 = arith.constant 0 : index
    %c0_2 = arith.constant 0 : index
    %0 = vector.load %arg1[%c0, %c0_0, %c0_1, %c0_2] : memref<1x8x8x16xf32, #tpu.memory_space<vmem>>, vector<1x8x8x16xf32>
    %1 = vector.extract_strided_slice %0 {offsets = [0, 0, 0, 0], sizes = [1, 8, 8, 4], strides = [1, 1, 1, 1]} : vector<1x8x8x16xf32> to vector<1x8x8x4xf32>
    %2 = vector.extract_strided_slice %0 {offsets = [0, 0, 0, 4], sizes = [1, 8, 8, 4], strides = [1, 1, 1, 1]} : vector<1x8x8x16xf32> to vector<1x8x8x4xf32>
    %3 = vector.extract_strided_slice %0 {offsets = [0, 0, 0, 8], sizes = [1, 8, 8, 4], strides = [1, 1, 1, 1]} : vector<1x8x8x16xf32> to vector<1x8x8x4xf32>
    %4 = vector.extract_strided_slice %0 {offsets = [0, 0, 0, 12], sizes = [1, 8, 8, 4], strides = [1, 1, 1, 1]} : vector<1x8x8x16xf32> to vector<1x8x8x4xf32>
    %5 = tpu.iota {dimensions = array<i32: 2>} : vector<1x8x8x4xi32>
    %6 = arith.maximumf %1, %2 : vector<1x8x8x4xf32>
    %c0_i32 = arith.constant 0 : i32
    %7 = vector.broadcast %c0_i32 : i32 to vector<1x8x8x4xi32>
    %8 = arith.cmpi eq, %5, %7 : vector<1x8x8x4xi32>
    %c1_i32 = arith.constant 1 : i32
    %9 = tpu.dynamic_rotate %2 by %c1_i32 dim 2 : vector<1x8x8x4xf32>, i32 -> vector<1x8x8x4xf32>
    %cst = arith.constant 0xFF800000 : f32
    %10 = vector.broadcast %cst : f32 to vector<1x8x8x4xf32>
    %11 = arith.select %8, %10, %9 : vector<1x8x8x4xi1>, vector<1x8x8x4xf32>
    %12 = arith.maximumf %6, %11 : vector<1x8x8x4xf32>
    %13 = arith.maximumf %3, %4 : vector<1x8x8x4xf32>
    %c0_i32_3 = arith.constant 0 : i32
    %14 = vector.broadcast %c0_i32_3 : i32 to vector<1x8x8x4xi32>
    %15 = arith.cmpi eq, %5, %14 : vector<1x8x8x4xi32>
    %c1_i32_4 = arith.constant 1 : i32
    %16 = tpu.dynamic_rotate %4 by %c1_i32_4 dim 2 : vector<1x8x8x4xf32>, i32 -> vector<1x8x8x4xf32>
    %cst_5 = arith.constant 0xFF800000 : f32
    %17 = vector.broadcast %cst_5 : f32 to vector<1x8x8x4xf32>
    %18 = arith.select %15, %17, %16 : vector<1x8x8x4xi1>, vector<1x8x8x4xf32>
    %19 = arith.maximumf %13, %18 : vector<1x8x8x4xf32>
    %cst_6 = arith.constant 0xFF800000 : f32
    %20 = vector.broadcast %cst_6 : f32 to vector<1x1x8x4xf32>
    %c0_7 = arith.constant 0 : index
    %c0_8 = arith.constant 0 : index
    %c0_9 = arith.constant 0 : index
    %c0_10 = arith.constant 0 : index
    %21 = vector.load %arg11[%c0_7, %c0_8, %c0_9, %c0_10] : memref<1x9x8x4xf32, #tpu.memory_space<vmem>>, vector<1x1x8x4xf32>
    tpu.vector_store %arg11[%c0_7, %c0_8, %c0_9, %c0_10], %20 {strides = array<i32>} : memref<1x9x8x4xf32, #tpu.memory_space<vmem>>, vector<1x1x8x4xf32>,
    %c0_11 = arith.constant 0 : index
    %c1 = arith.constant 1 : index
    %c0_12 = arith.constant 0 : index
    %c0_13 = arith.constant 0 : index
    %22 = vector.load %arg11[%c0_11, %c1, %c0_12, %c0_13] : memref<1x9x8x4xf32, #tpu.memory_space<vmem>>, vector<1x8x8x4xf32>
    tpu.vector_store %arg11[%c0_11, %c1, %c0_12, %c0_13], %19 {strides = array<i32>} : memref<1x9x8x4xf32, #tpu.memory_space<vmem>>, vector<1x8x8x4xf32>,
    %23 = arith.maximumf %12, %19 : vector<1x8x8x4xf32>
    %c0_14 = arith.constant 0 : index
    %c0_15 = arith.constant 0 : index
    %c0_16 = arith.constant 0 : index
    %c0_17 = arith.constant 0 : index
    %24 = vector.load %arg11[%c0_14, %c0_15, %c0_16, %c0_17] : memref<1x9x8x4xf32, #tpu.memory_space<vmem>>, vector<1x8x8x4xf32>
    %25 = arith.maximumf %23, %24 : vector<1x8x8x4xf32>
    %26 = tpu.iota {dimensions = array<i32: 2>} : vector<1x8x8x4xi32>
    %c0_i32_18 = arith.constant 0 : i32
    %27 = vector.broadcast %c0_i32_18 : i32 to vector<1x8x8x4xi32>
    %28 = arith.cmpi eq, %26, %27 : vector<1x8x8x4xi32>
    %c1_i32_19 = arith.constant 1 : i32
    %29 = tpu.dynamic_rotate %25 by %c1_i32_19 dim 2 : vector<1x8x8x4xf32>, i32 -> vector<1x8x8x4xf32>
    %cst_20 = arith.constant 0.000000e+00 : f32
    %30 = vector.broadcast %cst_20 : f32 to vector<1x8x8x4xf32>
    %31 = arith.select %28, %30, %29 : vector<1x8x8x4xi1>, vector<1x8x8x4xf32>
    %c7_i32 = arith.constant 7 : i32
    %32 = vector.broadcast %c7_i32 : i32 to vector<1x8x8x4xi32>
    %33 = arith.cmpi eq, %26, %32 : vector<1x8x8x4xi32>
    %c7_i32_21 = arith.constant 7 : i32
    %34 = tpu.dynamic_rotate %25 by %c7_i32_21 dim 2 : vector<1x8x8x4xf32>, i32 -> vector<1x8x8x4xf32>
    %cst_22 = arith.constant 0.000000e+00 : f32
    %35 = vector.broadcast %cst_22 : f32 to vector<1x8x8x4xf32>
    %36 = arith.select %33, %35, %34 : vector<1x8x8x4xi1>, vector<1x8x8x4xf32>
    %cst_23 = arith.constant 0.000000e+00 : f32
    %37 = vector.broadcast %cst_23 : f32 to vector<1x1x8x12xf32>
    %c0_24 = arith.constant 0 : index
    %c0_25 = arith.constant 0 : index
    %c0_26 = arith.constant 0 : index
    %c0_27 = arith.constant 0 : index
    %38 = vector.load %arg9[%c0_24, %c0_25, %c0_26, %c0_27] : memref<1x10x8x12xf32, #tpu.memory_space<vmem>>, vector<1x1x8x12xf32>
    tpu.vector_store %arg9[%c0_24, %c0_25, %c0_26, %c0_27], %37 {strides = array<i32>} : memref<1x10x8x12xf32, #tpu.memory_space<vmem>>, vector<1x1x8x12xf32>,
    %c0_28 = arith.constant 0 : index
    %c9 = arith.constant 9 : index
    %c0_29 = arith.constant 0 : index
    %c0_30 = arith.constant 0 : index
    %39 = vector.load %arg9[%c0_28, %c9, %c0_29, %c0_30] : memref<1x10x8x12xf32, #tpu.memory_space<vmem>>, vector<1x1x8x12xf32>
    tpu.vector_store %arg9[%c0_28, %c9, %c0_29, %c0_30], %37 {strides = array<i32>} : memref<1x10x8x12xf32, #tpu.memory_space<vmem>>, vector<1x1x8x12xf32>,
    %c0_31 = arith.constant 0 : index
    %c1_32 = arith.constant 1 : index
    %c0_33 = arith.constant 0 : index
    %c0_34 = arith.constant 0 : index
    %40 = vector.load %arg9[%c0_31, %c1_32, %c0_33, %c0_34] : memref<1x10x8x12xf32, #tpu.memory_space<vmem>>, vector<1x8x8x4xf32>
    tpu.vector_store %arg9[%c0_31, %c1_32, %c0_33, %c0_34], %31 {strides = array<i32>} : memref<1x10x8x12xf32, #tpu.memory_space<vmem>>, vector<1x8x8x4xf32>,
    %c0_35 = arith.constant 0 : index
    %c1_36 = arith.constant 1 : index
    %c0_37 = arith.constant 0 : index
    %c4 = arith.constant 4 : index
    %41 = vector.load %arg9[%c0_35, %c1_36, %c0_37, %c4] : memref<1x10x8x12xf32, #tpu.memory_space<vmem>>, vector<1x8x8x4xf32>
    tpu.vector_store %arg9[%c0_35, %c1_36, %c0_37, %c4], %25 {strides = array<i32>} : memref<1x10x8x12xf32, #tpu.memory_space<vmem>>, vector<1x8x8x4xf32>,
    %c0_38 = arith.constant 0 : index
    %c1_39 = arith.constant 1 : index
    %c0_40 = arith.constant 0 : index
    %c8 = arith.constant 8 : index
    %42 = vector.load %arg9[%c0_38, %c1_39, %c0_40, %c8] : memref<1x10x8x12xf32, #tpu.memory_space<vmem>>, vector<1x8x8x4xf32>
    tpu.vector_store %arg9[%c0_38, %c1_39, %c0_40, %c8], %36 {strides = array<i32>} : memref<1x10x8x12xf32, #tpu.memory_space<vmem>>, vector<1x8x8x4xf32>,
    %c0_41 = arith.constant 0 : index
    %c0_42 = arith.constant 0 : index
    %c0_43 = arith.constant 0 : index
    %43 = vector.load %arg2[%c0_41, %c0_42, %c0_43] : memref<3x12x8xf32, #tpu.memory_space<vmem>>, vector<3x12x8xf32>
    %c0_44 = arith.constant 0 : index
    %c0_45 = arith.constant 0 : index
    %c0_46 = arith.constant 0 : index
    %c0_47 = arith.constant 0 : index
    %44 = vector.load %arg9[%c0_44, %c0_45, %c0_46, %c0_47] : memref<1x10x8x12xf32, #tpu.memory_space<vmem>>, vector<1x8x8x12xf32>
    %45 = vector.shape_cast %44 : vector<1x8x8x12xf32> to vector<64x12xf32>
    %46 = vector.extract_strided_slice %43 {offsets = [0, 0, 0], sizes = [1, 12, 8], strides = [1, 1, 1]} : vector<3x12x8xf32> to vector<1x12x8xf32>
    %47 = vector.shape_cast %46 : vector<1x12x8xf32> to vector<12x8xf32>
    %cst_48 = arith.constant dense<0.000000e+00> : vector<64x8xf32>
    %48 = tpu.matmul %45, %47, %cst_48 {dimension_numbers = #tpu.dot_dimension_numbers<[1], [0], [0], [1], [0, 0, 1, 1], [], []>} : vector<64x12xf32>, vector<12x8xf32>, vector<64x8xf32> -> vector<64x8xf32>
    %49 = vector.shape_cast %48 : vector<64x8xf32> to vector<1x64x8xf32>
    %c0_49 = arith.constant 0 : index
    %c0_50 = arith.constant 0 : index
    %c0_51 = arith.constant 0 : index
    %50 = vector.load %arg12[%c0_49, %c0_50, %c0_51] : memref<1x64x8xf32, #tpu.memory_space<vmem>>, vector<1x64x8xf32>
    tpu.vector_store %arg12[%c0_49, %c0_50, %c0_51], %49 {strides = array<i32>} : memref<1x64x8xf32, #tpu.memory_space<vmem>>, vector<1x64x8xf32>,
    %c0_52 = arith.constant 0 : index
    %c1_53 = arith.constant 1 : index
    %c0_54 = arith.constant 0 : index
    %c0_55 = arith.constant 0 : index
    %51 = vector.load %arg9[%c0_52, %c1_53, %c0_54, %c0_55] : memref<1x10x8x12xf32, #tpu.memory_space<vmem>>, vector<1x8x8x12xf32>
    %52 = vector.shape_cast %51 : vector<1x8x8x12xf32> to vector<64x12xf32>
    %53 = vector.extract_strided_slice %43 {offsets = [1, 0, 0], sizes = [1, 12, 8], strides = [1, 1, 1]} : vector<3x12x8xf32> to vector<1x12x8xf32>
    %54 = vector.shape_cast %53 : vector<1x12x8xf32> to vector<12x8xf32>
    %cst_56 = arith.constant dense<0.000000e+00> : vector<64x8xf32>
    %55 = tpu.matmul %52, %54, %cst_56 {dimension_numbers = #tpu.dot_dimension_numbers<[1], [0], [0], [1], [0, 0, 1, 1], [], []>} : vector<64x12xf32>, vector<12x8xf32>, vector<64x8xf32> -> vector<64x8xf32>
    %56 = vector.shape_cast %55 : vector<64x8xf32> to vector<1x64x8xf32>
    %c0_57 = arith.constant 0 : index
    %c0_58 = arith.constant 0 : index
    %c0_59 = arith.constant 0 : index
    %57 = vector.load %arg12[%c0_57, %c0_58, %c0_59] : memref<1x64x8xf32, #tpu.memory_space<vmem>>, vector<1x64x8xf32>
    %58 = arith.addf %57, %56 : vector<1x64x8xf32>
    %c0_60 = arith.constant 0 : index
    %c0_61 = arith.constant 0 : index
    %c0_62 = arith.constant 0 : index
    %59 = vector.load %arg12[%c0_60, %c0_61, %c0_62] : memref<1x64x8xf32, #tpu.memory_space<vmem>>, vector<1x64x8xf32>
    tpu.vector_store %arg12[%c0_60, %c0_61, %c0_62], %58 {strides = array<i32>} : memref<1x64x8xf32, #tpu.memory_space<vmem>>, vector<1x64x8xf32>,
    %c0_63 = arith.constant 0 : index
    %c2 = arith.constant 2 : index
    %c0_64 = arith.constant 0 : index
    %c0_65 = arith.constant 0 : index
    %60 = vector.load %arg9[%c0_63, %c2, %c0_64, %c0_65] : memref<1x10x8x12xf32, #tpu.memory_space<vmem>>, vector<1x8x8x12xf32>
    %61 = vector.shape_cast %60 : vector<1x8x8x12xf32> to vector<64x12xf32>
    %62 = vector.extract_strided_slice %43 {offsets = [2, 0, 0], sizes = [1, 12, 8], strides = [1, 1, 1]} : vector<3x12x8xf32> to vector<1x12x8xf32>
    %63 = vector.shape_cast %62 : vector<1x12x8xf32> to vector<12x8xf32>
    %cst_66 = arith.constant dense<0.000000e+00> : vector<64x8xf32>
    %64 = tpu.matmul %61, %63, %cst_66 {dimension_numbers = #tpu.dot_dimension_numbers<[1], [0], [0], [1], [0, 0, 1, 1], [], []>} : vector<64x12xf32>, vector<12x8xf32>, vector<64x8xf32> -> vector<64x8xf32>
    %65 = vector.shape_cast %64 : vector<64x8xf32> to vector<1x64x8xf32>
    %c0_67 = arith.constant 0 : index
    %c0_68 = arith.constant 0 : index
    %c0_69 = arith.constant 0 : index
    %66 = vector.load %arg12[%c0_67, %c0_68, %c0_69] : memref<1x64x8xf32, #tpu.memory_space<vmem>>, vector<1x64x8xf32>
    %67 = arith.addf %66, %65 : vector<1x64x8xf32>
    %c0_70 = arith.constant 0 : index
    %c0_71 = arith.constant 0 : index
    %c0_72 = arith.constant 0 : index
    %68 = vector.load %arg12[%c0_70, %c0_71, %c0_72] : memref<1x64x8xf32, #tpu.memory_space<vmem>>, vector<1x64x8xf32>
    tpu.vector_store %arg12[%c0_70, %c0_71, %c0_72], %67 {strides = array<i32>} : memref<1x64x8xf32, #tpu.memory_space<vmem>>, vector<1x64x8xf32>,
    %c0_73 = arith.constant 0 : index
    %c0_74 = arith.constant 0 : index
    %c0_75 = arith.constant 0 : index
    %c0_76 = arith.constant 0 : index
    %69 = vector.load %arg3[%c0_73, %c0_74, %c0_75, %c0_76] : memref<3x1x1x8xf32, #tpu.memory_space<vmem>>, vector<3x1x1x8xf32>
    %c0_77 = arith.constant 0 : index
    %c0_78 = arith.constant 0 : index
    %c0_79 = arith.constant 0 : index
    %70 = vector.load %arg12[%c0_77, %c0_78, %c0_79] : memref<1x64x8xf32, #tpu.memory_space<vmem>>, vector<1x64x8xf32>
    %71 = vector.extract_strided_slice %69 {offsets = [0, 0, 0, 0], sizes = [1, 1, 1, 8], strides = [1, 1, 1, 1]} : vector<3x1x1x8xf32> to vector<1x1x1x8xf32>
    %72 = vector.shape_cast %71 : vector<1x1x1x8xf32> to vector<1x1x8xf32>
    %73 = vector.broadcast %72 : vector<1x1x8xf32> to vector<1x64x8xf32>
    %74 = arith.addf %70, %73 : vector<1x64x8xf32>
    %cst_80 = arith.constant dense<0.000000e+00> : vector<1xf32>
    %75 = vector.multi_reduction <add>, %74, %cst_80 [1, 2] : vector<1x64x8xf32> to vector<1xf32>
    %76 = vector.shape_cast %75 : vector<1xf32> to vector<1x1x1xf32>
    %77 = arith.mulf %74, %74 : vector<1x64x8xf32>
    %cst_81 = arith.constant dense<0.000000e+00> : vector<1xf32>
    %78 = vector.multi_reduction <add>, %77, %cst_81 [1, 2] : vector<1x64x8xf32> to vector<1xf32>
    %79 = vector.shape_cast %78 : vector<1xf32> to vector<1x1x1xf32>
    %cst_82 = arith.constant 0.001953125 : f32
    %80 = vector.broadcast %cst_82 : f32 to vector<1x1x1xf32>
    %81 = arith.mulf %76, %80 : vector<1x1x1xf32>
    %cst_83 = arith.constant 0.001953125 : f32
    %82 = vector.broadcast %cst_83 : f32 to vector<1x1x1xf32>
    %83 = arith.mulf %79, %82 : vector<1x1x1xf32>
    %84 = arith.mulf %81, %81 : vector<1x1x1xf32>
    %85 = arith.subf %83, %84 : vector<1x1x1xf32>
    %cst_84 = arith.constant 0.000000e+00 : f32
    %86 = vector.broadcast %cst_84 : f32 to vector<1x1x1xf32>
    %87 = arith.maximumf %85, %86 : vector<1x1x1xf32>
    %88 = vector.broadcast %81 : vector<1x1x1xf32> to vector<1x64x8xf32>
    %89 = arith.subf %74, %88 : vector<1x64x8xf32>
    %cst_85 = arith.constant 9.99999974E-6 : f32
    %90 = vector.broadcast %cst_85 : f32 to vector<1x1x1xf32>
    %91 = arith.addf %87, %90 : vector<1x1x1xf32>
    %92 = math.rsqrt %91 : vector<1x1x1xf32>
    %93 = vector.broadcast %92 : vector<1x1x1xf32> to vector<1x64x8xf32>
    %94 = arith.mulf %89, %93 : vector<1x64x8xf32>
    %95 = vector.extract_strided_slice %69 {offsets = [1, 0, 0, 0], sizes = [1, 1, 1, 8], strides = [1, 1, 1, 1]} : vector<3x1x1x8xf32> to vector<1x1x1x8xf32>
    %96 = vector.shape_cast %95 : vector<1x1x1x8xf32> to vector<1x1x8xf32>
    %97 = vector.broadcast %96 : vector<1x1x8xf32> to vector<1x64x8xf32>
    %98 = arith.mulf %94, %97 : vector<1x64x8xf32>
    %99 = vector.extract_strided_slice %69 {offsets = [2, 0, 0, 0], sizes = [1, 1, 1, 8], strides = [1, 1, 1, 1]} : vector<3x1x1x8xf32> to vector<1x1x1x8xf32>
    %100 = vector.shape_cast %99 : vector<1x1x1x8xf32> to vector<1x1x8xf32>
    %101 = vector.broadcast %100 : vector<1x1x8xf32> to vector<1x64x8xf32>
    %102 = arith.addf %98, %101 : vector<1x64x8xf32>
    %cst_86 = arith.constant 0.000000e+00 : f32
    %103 = vector.broadcast %cst_86 : f32 to vector<1x64x8xf32>
    %104 = arith.cmpf oge, %102, %103 : vector<1x64x8xf32>
    %cst_87 = arith.constant 2.000000e-01 : f32
    %105 = vector.broadcast %cst_87 : f32 to vector<1x64x8xf32>
    %106 = arith.mulf %105, %102 : vector<1x64x8xf32>
    %107 = arith.select %104, %102, %106 : vector<1x64x8xi1>, vector<1x64x8xf32>
    %108 = vector.shape_cast %107 : vector<1x64x8xf32> to vector<1x8x8x8xf32>
    %109 = tpu.iota {dimensions = array<i32: 2>} : vector<1x8x8x8xi32>
    %c0_i32_88 = arith.constant 0 : i32
    %110 = vector.broadcast %c0_i32_88 : i32 to vector<1x8x8x8xi32>
    %111 = arith.cmpi eq, %109, %110 : vector<1x8x8x8xi32>
    %c1_i32_89 = arith.constant 1 : i32
    %112 = tpu.dynamic_rotate %108 by %c1_i32_89 dim 2 : vector<1x8x8x8xf32>, i32 -> vector<1x8x8x8xf32>
    %cst_90 = arith.constant 0.000000e+00 : f32
    %113 = vector.broadcast %cst_90 : f32 to vector<1x8x8x8xf32>
    %114 = arith.select %111, %113, %112 : vector<1x8x8x8xi1>, vector<1x8x8x8xf32>
    %c7_i32_91 = arith.constant 7 : i32
    %115 = vector.broadcast %c7_i32_91 : i32 to vector<1x8x8x8xi32>
    %116 = arith.cmpi eq, %109, %115 : vector<1x8x8x8xi32>
    %c7_i32_92 = arith.constant 7 : i32
    %117 = tpu.dynamic_rotate %108 by %c7_i32_92 dim 2 : vector<1x8x8x8xf32>, i32 -> vector<1x8x8x8xf32>
    %cst_93 = arith.constant 0.000000e+00 : f32
    %118 = vector.broadcast %cst_93 : f32 to vector<1x8x8x8xf32>
    %119 = arith.select %116, %118, %117 : vector<1x8x8x8xi1>, vector<1x8x8x8xf32>
    %cst_94 = arith.constant 0.000000e+00 : f32
    %120 = vector.broadcast %cst_94 : f32 to vector<1x1x8x24xf32>
    %c0_95 = arith.constant 0 : index
    %c0_96 = arith.constant 0 : index
    %c0_97 = arith.constant 0 : index
    %c0_98 = arith.constant 0 : index
    %121 = vector.load %arg10[%c0_95, %c0_96, %c0_97, %c0_98] : memref<1x10x8x24xf32, #tpu.memory_space<vmem>>, vector<1x1x8x24xf32>
    tpu.vector_store %arg10[%c0_95, %c0_96, %c0_97, %c0_98], %120 {strides = array<i32>} : memref<1x10x8x24xf32, #tpu.memory_space<vmem>>, vector<1x1x8x24xf32>,
    %c0_99 = arith.constant 0 : index
    %c9_100 = arith.constant 9 : index
    %c0_101 = arith.constant 0 : index
    %c0_102 = arith.constant 0 : index
    %122 = vector.load %arg10[%c0_99, %c9_100, %c0_101, %c0_102] : memref<1x10x8x24xf32, #tpu.memory_space<vmem>>, vector<1x1x8x24xf32>
    tpu.vector_store %arg10[%c0_99, %c9_100, %c0_101, %c0_102], %120 {strides = array<i32>} : memref<1x10x8x24xf32, #tpu.memory_space<vmem>>, vector<1x1x8x24xf32>,
    %c0_103 = arith.constant 0 : index
    %c1_104 = arith.constant 1 : index
    %c0_105 = arith.constant 0 : index
    %c0_106 = arith.constant 0 : index
    %123 = vector.load %arg10[%c0_103, %c1_104, %c0_105, %c0_106] : memref<1x10x8x24xf32, #tpu.memory_space<vmem>>, vector<1x8x8x8xf32>
    tpu.vector_store %arg10[%c0_103, %c1_104, %c0_105, %c0_106], %114 {strides = array<i32>} : memref<1x10x8x24xf32, #tpu.memory_space<vmem>>, vector<1x8x8x8xf32>,
    %c0_107 = arith.constant 0 : index
    %c1_108 = arith.constant 1 : index
    %c0_109 = arith.constant 0 : index
    %c8_110 = arith.constant 8 : index
    %124 = vector.load %arg10[%c0_107, %c1_108, %c0_109, %c8_110] : memref<1x10x8x24xf32, #tpu.memory_space<vmem>>, vector<1x8x8x8xf32>
    tpu.vector_store %arg10[%c0_107, %c1_108, %c0_109, %c8_110], %108 {strides = array<i32>} : memref<1x10x8x24xf32, #tpu.memory_space<vmem>>, vector<1x8x8x8xf32>,
    %c0_111 = arith.constant 0 : index
    %c1_112 = arith.constant 1 : index
    %c0_113 = arith.constant 0 : index
    %c16 = arith.constant 16 : index
    %125 = vector.load %arg10[%c0_111, %c1_112, %c0_113, %c16] : memref<1x10x8x24xf32, #tpu.memory_space<vmem>>, vector<1x8x8x8xf32>
    tpu.vector_store %arg10[%c0_111, %c1_112, %c0_113, %c16], %119 {strides = array<i32>} : memref<1x10x8x24xf32, #tpu.memory_space<vmem>>, vector<1x8x8x8xf32>,
    %c0_114 = arith.constant 0 : index
    %c0_115 = arith.constant 0 : index
    %c0_116 = arith.constant 0 : index
    %126 = vector.load %arg4[%c0_114, %c0_115, %c0_116] : memref<3x24x8xf32, #tpu.memory_space<vmem>>, vector<3x24x8xf32>
    %c0_117 = arith.constant 0 : index
    %c0_118 = arith.constant 0 : index
    %c0_119 = arith.constant 0 : index
    %c0_120 = arith.constant 0 : index
    %127 = vector.load %arg10[%c0_117, %c0_118, %c0_119, %c0_120] : memref<1x10x8x24xf32, #tpu.memory_space<vmem>>, vector<1x8x8x24xf32>
    %128 = vector.shape_cast %127 : vector<1x8x8x24xf32> to vector<64x24xf32>
    %129 = vector.extract_strided_slice %126 {offsets = [0, 0, 0], sizes = [1, 24, 8], strides = [1, 1, 1]} : vector<3x24x8xf32> to vector<1x24x8xf32>
    %130 = vector.shape_cast %129 : vector<1x24x8xf32> to vector<24x8xf32>
    %cst_121 = arith.constant dense<0.000000e+00> : vector<64x8xf32>
    %131 = tpu.matmul %128, %130, %cst_121 {dimension_numbers = #tpu.dot_dimension_numbers<[1], [0], [0], [1], [0, 0, 1, 1], [], []>} : vector<64x24xf32>, vector<24x8xf32>, vector<64x8xf32> -> vector<64x8xf32>
    %132 = vector.shape_cast %131 : vector<64x8xf32> to vector<1x64x8xf32>
    %c0_122 = arith.constant 0 : index
    %c0_123 = arith.constant 0 : index
    %c0_124 = arith.constant 0 : index
    %133 = vector.load %arg12[%c0_122, %c0_123, %c0_124] : memref<1x64x8xf32, #tpu.memory_space<vmem>>, vector<1x64x8xf32>
    tpu.vector_store %arg12[%c0_122, %c0_123, %c0_124], %132 {strides = array<i32>} : memref<1x64x8xf32, #tpu.memory_space<vmem>>, vector<1x64x8xf32>,
    %c0_125 = arith.constant 0 : index
    %c1_126 = arith.constant 1 : index
    %c0_127 = arith.constant 0 : index
    %c0_128 = arith.constant 0 : index
    %134 = vector.load %arg10[%c0_125, %c1_126, %c0_127, %c0_128] : memref<1x10x8x24xf32, #tpu.memory_space<vmem>>, vector<1x8x8x24xf32>
    %135 = vector.shape_cast %134 : vector<1x8x8x24xf32> to vector<64x24xf32>
    %136 = vector.extract_strided_slice %126 {offsets = [1, 0, 0], sizes = [1, 24, 8], strides = [1, 1, 1]} : vector<3x24x8xf32> to vector<1x24x8xf32>
    %137 = vector.shape_cast %136 : vector<1x24x8xf32> to vector<24x8xf32>
    %cst_129 = arith.constant dense<0.000000e+00> : vector<64x8xf32>
    %138 = tpu.matmul %135, %137, %cst_129 {dimension_numbers = #tpu.dot_dimension_numbers<[1], [0], [0], [1], [0, 0, 1, 1], [], []>} : vector<64x24xf32>, vector<24x8xf32>, vector<64x8xf32> -> vector<64x8xf32>
    %139 = vector.shape_cast %138 : vector<64x8xf32> to vector<1x64x8xf32>
    %c0_130 = arith.constant 0 : index
    %c0_131 = arith.constant 0 : index
    %c0_132 = arith.constant 0 : index
    %140 = vector.load %arg12[%c0_130, %c0_131, %c0_132] : memref<1x64x8xf32, #tpu.memory_space<vmem>>, vector<1x64x8xf32>
    %141 = arith.addf %140, %139 : vector<1x64x8xf32>
    %c0_133 = arith.constant 0 : index
    %c0_134 = arith.constant 0 : index
    %c0_135 = arith.constant 0 : index
    %142 = vector.load %arg12[%c0_133, %c0_134, %c0_135] : memref<1x64x8xf32, #tpu.memory_space<vmem>>, vector<1x64x8xf32>
    tpu.vector_store %arg12[%c0_133, %c0_134, %c0_135], %141 {strides = array<i32>} : memref<1x64x8xf32, #tpu.memory_space<vmem>>, vector<1x64x8xf32>,
    %c0_136 = arith.constant 0 : index
    %c2_137 = arith.constant 2 : index
    %c0_138 = arith.constant 0 : index
    %c0_139 = arith.constant 0 : index
    %143 = vector.load %arg10[%c0_136, %c2_137, %c0_138, %c0_139] : memref<1x10x8x24xf32, #tpu.memory_space<vmem>>, vector<1x8x8x24xf32>
    %144 = vector.shape_cast %143 : vector<1x8x8x24xf32> to vector<64x24xf32>
    %145 = vector.extract_strided_slice %126 {offsets = [2, 0, 0], sizes = [1, 24, 8], strides = [1, 1, 1]} : vector<3x24x8xf32> to vector<1x24x8xf32>
    %146 = vector.shape_cast %145 : vector<1x24x8xf32> to vector<24x8xf32>
    %cst_140 = arith.constant dense<0.000000e+00> : vector<64x8xf32>
    %147 = tpu.matmul %144, %146, %cst_140 {dimension_numbers = #tpu.dot_dimension_numbers<[1], [0], [0], [1], [0, 0, 1, 1], [], []>} : vector<64x24xf32>, vector<24x8xf32>, vector<64x8xf32> -> vector<64x8xf32>
    %148 = vector.shape_cast %147 : vector<64x8xf32> to vector<1x64x8xf32>
    %c0_141 = arith.constant 0 : index
    %c0_142 = arith.constant 0 : index
    %c0_143 = arith.constant 0 : index
    %149 = vector.load %arg12[%c0_141, %c0_142, %c0_143] : memref<1x64x8xf32, #tpu.memory_space<vmem>>, vector<1x64x8xf32>
    %150 = arith.addf %149, %148 : vector<1x64x8xf32>
    %c0_144 = arith.constant 0 : index
    %c0_145 = arith.constant 0 : index
    %c0_146 = arith.constant 0 : index
    %151 = vector.load %arg12[%c0_144, %c0_145, %c0_146] : memref<1x64x8xf32, #tpu.memory_space<vmem>>, vector<1x64x8xf32>
    tpu.vector_store %arg12[%c0_144, %c0_145, %c0_146], %150 {strides = array<i32>} : memref<1x64x8xf32, #tpu.memory_space<vmem>>, vector<1x64x8xf32>,
    %c0_147 = arith.constant 0 : index
    %c0_148 = arith.constant 0 : index
    %c0_149 = arith.constant 0 : index
    %c0_150 = arith.constant 0 : index
    %152 = vector.load %arg5[%c0_147, %c0_148, %c0_149, %c0_150] : memref<3x1x1x8xf32, #tpu.memory_space<vmem>>, vector<3x1x1x8xf32>
    %c0_151 = arith.constant 0 : index
    %c0_152 = arith.constant 0 : index
    %c0_153 = arith.constant 0 : index
    %153 = vector.load %arg12[%c0_151, %c0_152, %c0_153] : memref<1x64x8xf32, #tpu.memory_space<vmem>>, vector<1x64x8xf32>
    %154 = vector.extract_strided_slice %152 {offsets = [0, 0, 0, 0], sizes = [1, 1, 1, 8], strides = [1, 1, 1, 1]} : vector<3x1x1x8xf32> to vector<1x1x1x8xf32>
    %155 = vector.shape_cast %154 : vector<1x1x1x8xf32> to vector<1x1x8xf32>
    %156 = vector.broadcast %155 : vector<1x1x8xf32> to vector<1x64x8xf32>
    %157 = arith.addf %153, %156 : vector<1x64x8xf32>
    %cst_154 = arith.constant dense<0.000000e+00> : vector<1xf32>
    %158 = vector.multi_reduction <add>, %157, %cst_154 [1, 2] : vector<1x64x8xf32> to vector<1xf32>
    %159 = vector.shape_cast %158 : vector<1xf32> to vector<1x1x1xf32>
    %160 = arith.mulf %157, %157 : vector<1x64x8xf32>
    %cst_155 = arith.constant dense<0.000000e+00> : vector<1xf32>
    %161 = vector.multi_reduction <add>, %160, %cst_155 [1, 2] : vector<1x64x8xf32> to vector<1xf32>
    %162 = vector.shape_cast %161 : vector<1xf32> to vector<1x1x1xf32>
    %cst_156 = arith.constant 0.001953125 : f32
    %163 = vector.broadcast %cst_156 : f32 to vector<1x1x1xf32>
    %164 = arith.mulf %159, %163 : vector<1x1x1xf32>
    %cst_157 = arith.constant 0.001953125 : f32
    %165 = vector.broadcast %cst_157 : f32 to vector<1x1x1xf32>
    %166 = arith.mulf %162, %165 : vector<1x1x1xf32>
    %167 = arith.mulf %164, %164 : vector<1x1x1xf32>
    %168 = arith.subf %166, %167 : vector<1x1x1xf32>
    %cst_158 = arith.constant 0.000000e+00 : f32
    %169 = vector.broadcast %cst_158 : f32 to vector<1x1x1xf32>
    %170 = arith.maximumf %168, %169 : vector<1x1x1xf32>
    %171 = vector.broadcast %164 : vector<1x1x1xf32> to vector<1x64x8xf32>
    %172 = arith.subf %157, %171 : vector<1x64x8xf32>
    %cst_159 = arith.constant 9.99999974E-6 : f32
    %173 = vector.broadcast %cst_159 : f32 to vector<1x1x1xf32>
    %174 = arith.addf %170, %173 : vector<1x1x1xf32>
    %175 = math.rsqrt %174 : vector<1x1x1xf32>
    %176 = vector.broadcast %175 : vector<1x1x1xf32> to vector<1x64x8xf32>
    %177 = arith.mulf %172, %176 : vector<1x64x8xf32>
    %178 = vector.extract_strided_slice %152 {offsets = [1, 0, 0, 0], sizes = [1, 1, 1, 8], strides = [1, 1, 1, 1]} : vector<3x1x1x8xf32> to vector<1x1x1x8xf32>
    %179 = vector.shape_cast %178 : vector<1x1x1x8xf32> to vector<1x1x8xf32>
    %180 = vector.broadcast %179 : vector<1x1x8xf32> to vector<1x64x8xf32>
    %181 = arith.mulf %177, %180 : vector<1x64x8xf32>
    %182 = vector.extract_strided_slice %152 {offsets = [2, 0, 0, 0], sizes = [1, 1, 1, 8], strides = [1, 1, 1, 1]} : vector<3x1x1x8xf32> to vector<1x1x1x8xf32>
    %183 = vector.shape_cast %182 : vector<1x1x1x8xf32> to vector<1x1x8xf32>
    %184 = vector.broadcast %183 : vector<1x1x8xf32> to vector<1x64x8xf32>
    %185 = arith.addf %181, %184 : vector<1x64x8xf32>
    %cst_160 = arith.constant 0.000000e+00 : f32
    %186 = vector.broadcast %cst_160 : f32 to vector<1x64x8xf32>
    %187 = arith.cmpf oge, %185, %186 : vector<1x64x8xf32>
    %cst_161 = arith.constant 2.000000e-01 : f32
    %188 = vector.broadcast %cst_161 : f32 to vector<1x64x8xf32>
    %189 = arith.mulf %188, %185 : vector<1x64x8xf32>
    %190 = arith.select %187, %185, %189 : vector<1x64x8xi1>, vector<1x64x8xf32>
    %191 = vector.shape_cast %190 : vector<1x64x8xf32> to vector<1x8x8x8xf32>
    %192 = tpu.iota {dimensions = array<i32: 2>} : vector<1x8x8x8xi32>
    %c0_i32_162 = arith.constant 0 : i32
    %193 = vector.broadcast %c0_i32_162 : i32 to vector<1x8x8x8xi32>
    %194 = arith.cmpi eq, %192, %193 : vector<1x8x8x8xi32>
    %c1_i32_163 = arith.constant 1 : i32
    %195 = tpu.dynamic_rotate %191 by %c1_i32_163 dim 2 : vector<1x8x8x8xf32>, i32 -> vector<1x8x8x8xf32>
    %cst_164 = arith.constant 0.000000e+00 : f32
    %196 = vector.broadcast %cst_164 : f32 to vector<1x8x8x8xf32>
    %197 = arith.select %194, %196, %195 : vector<1x8x8x8xi1>, vector<1x8x8x8xf32>
    %c7_i32_165 = arith.constant 7 : i32
    %198 = vector.broadcast %c7_i32_165 : i32 to vector<1x8x8x8xi32>
    %199 = arith.cmpi eq, %192, %198 : vector<1x8x8x8xi32>
    %c7_i32_166 = arith.constant 7 : i32
    %200 = tpu.dynamic_rotate %191 by %c7_i32_166 dim 2 : vector<1x8x8x8xf32>, i32 -> vector<1x8x8x8xf32>
    %cst_167 = arith.constant 0.000000e+00 : f32
    %201 = vector.broadcast %cst_167 : f32 to vector<1x8x8x8xf32>
    %202 = arith.select %199, %201, %200 : vector<1x8x8x8xi1>, vector<1x8x8x8xf32>
    %cst_168 = arith.constant 0.000000e+00 : f32
    %203 = vector.broadcast %cst_168 : f32 to vector<1x1x8x24xf32>
    %c0_169 = arith.constant 0 : index
    %c0_170 = arith.constant 0 : index
    %c0_171 = arith.constant 0 : index
    %c0_172 = arith.constant 0 : index
    %204 = vector.load %arg10[%c0_169, %c0_170, %c0_171, %c0_172] : memref<1x10x8x24xf32, #tpu.memory_space<vmem>>, vector<1x1x8x24xf32>
    tpu.vector_store %arg10[%c0_169, %c0_170, %c0_171, %c0_172], %203 {strides = array<i32>} : memref<1x10x8x24xf32, #tpu.memory_space<vmem>>, vector<1x1x8x24xf32>,
    %c0_173 = arith.constant 0 : index
    %c9_174 = arith.constant 9 : index
    %c0_175 = arith.constant 0 : index
    %c0_176 = arith.constant 0 : index
    %205 = vector.load %arg10[%c0_173, %c9_174, %c0_175, %c0_176] : memref<1x10x8x24xf32, #tpu.memory_space<vmem>>, vector<1x1x8x24xf32>
    tpu.vector_store %arg10[%c0_173, %c9_174, %c0_175, %c0_176], %203 {strides = array<i32>} : memref<1x10x8x24xf32, #tpu.memory_space<vmem>>, vector<1x1x8x24xf32>,
    %c0_177 = arith.constant 0 : index
    %c1_178 = arith.constant 1 : index
    %c0_179 = arith.constant 0 : index
    %c0_180 = arith.constant 0 : index
    %206 = vector.load %arg10[%c0_177, %c1_178, %c0_179, %c0_180] : memref<1x10x8x24xf32, #tpu.memory_space<vmem>>, vector<1x8x8x8xf32>
    tpu.vector_store %arg10[%c0_177, %c1_178, %c0_179, %c0_180], %197 {strides = array<i32>} : memref<1x10x8x24xf32, #tpu.memory_space<vmem>>, vector<1x8x8x8xf32>,
    %c0_181 = arith.constant 0 : index
    %c1_182 = arith.constant 1 : index
    %c0_183 = arith.constant 0 : index
    %c8_184 = arith.constant 8 : index
    %207 = vector.load %arg10[%c0_181, %c1_182, %c0_183, %c8_184] : memref<1x10x8x24xf32, #tpu.memory_space<vmem>>, vector<1x8x8x8xf32>
    tpu.vector_store %arg10[%c0_181, %c1_182, %c0_183, %c8_184], %191 {strides = array<i32>} : memref<1x10x8x24xf32, #tpu.memory_space<vmem>>, vector<1x8x8x8xf32>,
    %c0_185 = arith.constant 0 : index
    %c1_186 = arith.constant 1 : index
    %c0_187 = arith.constant 0 : index
    %c16_188 = arith.constant 16 : index
    %208 = vector.load %arg10[%c0_185, %c1_186, %c0_187, %c16_188] : memref<1x10x8x24xf32, #tpu.memory_space<vmem>>, vector<1x8x8x8xf32>
    tpu.vector_store %arg10[%c0_185, %c1_186, %c0_187, %c16_188], %202 {strides = array<i32>} : memref<1x10x8x24xf32, #tpu.memory_space<vmem>>, vector<1x8x8x8xf32>,
    %c0_189 = arith.constant 0 : index
    %c0_190 = arith.constant 0 : index
    %c0_191 = arith.constant 0 : index
    %209 = vector.load %arg6[%c0_189, %c0_190, %c0_191] : memref<3x24x8xf32, #tpu.memory_space<vmem>>, vector<3x24x8xf32>
    %c0_192 = arith.constant 0 : index
    %c0_193 = arith.constant 0 : index
    %c0_194 = arith.constant 0 : index
    %c0_195 = arith.constant 0 : index
    %210 = vector.load %arg10[%c0_192, %c0_193, %c0_194, %c0_195] : memref<1x10x8x24xf32, #tpu.memory_space<vmem>>, vector<1x8x8x24xf32>
    %211 = vector.shape_cast %210 : vector<1x8x8x24xf32> to vector<64x24xf32>
    %212 = vector.extract_strided_slice %209 {offsets = [0, 0, 0], sizes = [1, 24, 8], strides = [1, 1, 1]} : vector<3x24x8xf32> to vector<1x24x8xf32>
    %213 = vector.shape_cast %212 : vector<1x24x8xf32> to vector<24x8xf32>
    %cst_196 = arith.constant dense<0.000000e+00> : vector<64x8xf32>
    %214 = tpu.matmul %211, %213, %cst_196 {dimension_numbers = #tpu.dot_dimension_numbers<[1], [0], [0], [1], [0, 0, 1, 1], [], []>} : vector<64x24xf32>, vector<24x8xf32>, vector<64x8xf32> -> vector<64x8xf32>
    %215 = vector.shape_cast %214 : vector<64x8xf32> to vector<1x64x8xf32>
    %c0_197 = arith.constant 0 : index
    %c0_198 = arith.constant 0 : index
    %c0_199 = arith.constant 0 : index
    %216 = vector.load %arg12[%c0_197, %c0_198, %c0_199] : memref<1x64x8xf32, #tpu.memory_space<vmem>>, vector<1x64x8xf32>
    tpu.vector_store %arg12[%c0_197, %c0_198, %c0_199], %215 {strides = array<i32>} : memref<1x64x8xf32, #tpu.memory_space<vmem>>, vector<1x64x8xf32>,
    %c0_200 = arith.constant 0 : index
    %c1_201 = arith.constant 1 : index
    %c0_202 = arith.constant 0 : index
    %c0_203 = arith.constant 0 : index
    %217 = vector.load %arg10[%c0_200, %c1_201, %c0_202, %c0_203] : memref<1x10x8x24xf32, #tpu.memory_space<vmem>>, vector<1x8x8x24xf32>
    %218 = vector.shape_cast %217 : vector<1x8x8x24xf32> to vector<64x24xf32>
    %219 = vector.extract_strided_slice %209 {offsets = [1, 0, 0], sizes = [1, 24, 8], strides = [1, 1, 1]} : vector<3x24x8xf32> to vector<1x24x8xf32>
    %220 = vector.shape_cast %219 : vector<1x24x8xf32> to vector<24x8xf32>
    %cst_204 = arith.constant dense<0.000000e+00> : vector<64x8xf32>
    %221 = tpu.matmul %218, %220, %cst_204 {dimension_numbers = #tpu.dot_dimension_numbers<[1], [0], [0], [1], [0, 0, 1, 1], [], []>} : vector<64x24xf32>, vector<24x8xf32>, vector<64x8xf32> -> vector<64x8xf32>
    %222 = vector.shape_cast %221 : vector<64x8xf32> to vector<1x64x8xf32>
    %c0_205 = arith.constant 0 : index
    %c0_206 = arith.constant 0 : index
    %c0_207 = arith.constant 0 : index
    %223 = vector.load %arg12[%c0_205, %c0_206, %c0_207] : memref<1x64x8xf32, #tpu.memory_space<vmem>>, vector<1x64x8xf32>
    %224 = arith.addf %223, %222 : vector<1x64x8xf32>
    %c0_208 = arith.constant 0 : index
    %c0_209 = arith.constant 0 : index
    %c0_210 = arith.constant 0 : index
    %225 = vector.load %arg12[%c0_208, %c0_209, %c0_210] : memref<1x64x8xf32, #tpu.memory_space<vmem>>, vector<1x64x8xf32>
    tpu.vector_store %arg12[%c0_208, %c0_209, %c0_210], %224 {strides = array<i32>} : memref<1x64x8xf32, #tpu.memory_space<vmem>>, vector<1x64x8xf32>,
    %c0_211 = arith.constant 0 : index
    %c2_212 = arith.constant 2 : index
    %c0_213 = arith.constant 0 : index
    %c0_214 = arith.constant 0 : index
    %226 = vector.load %arg10[%c0_211, %c2_212, %c0_213, %c0_214] : memref<1x10x8x24xf32, #tpu.memory_space<vmem>>, vector<1x8x8x24xf32>
    %227 = vector.shape_cast %226 : vector<1x8x8x24xf32> to vector<64x24xf32>
    %228 = vector.extract_strided_slice %209 {offsets = [2, 0, 0], sizes = [1, 24, 8], strides = [1, 1, 1]} : vector<3x24x8xf32> to vector<1x24x8xf32>
    %229 = vector.shape_cast %228 : vector<1x24x8xf32> to vector<24x8xf32>
    %cst_215 = arith.constant dense<0.000000e+00> : vector<64x8xf32>
    %230 = tpu.matmul %227, %229, %cst_215 {dimension_numbers = #tpu.dot_dimension_numbers<[1], [0], [0], [1], [0, 0, 1, 1], [], []>} : vector<64x24xf32>, vector<24x8xf32>, vector<64x8xf32> -> vector<64x8xf32>
    %231 = vector.shape_cast %230 : vector<64x8xf32> to vector<1x64x8xf32>
    %c0_216 = arith.constant 0 : index
    %c0_217 = arith.constant 0 : index
    %c0_218 = arith.constant 0 : index
    %232 = vector.load %arg12[%c0_216, %c0_217, %c0_218] : memref<1x64x8xf32, #tpu.memory_space<vmem>>, vector<1x64x8xf32>
    %233 = arith.addf %232, %231 : vector<1x64x8xf32>
    %c0_219 = arith.constant 0 : index
    %c0_220 = arith.constant 0 : index
    %c0_221 = arith.constant 0 : index
    %234 = vector.load %arg12[%c0_219, %c0_220, %c0_221] : memref<1x64x8xf32, #tpu.memory_space<vmem>>, vector<1x64x8xf32>
    tpu.vector_store %arg12[%c0_219, %c0_220, %c0_221], %233 {strides = array<i32>} : memref<1x64x8xf32, #tpu.memory_space<vmem>>, vector<1x64x8xf32>,
    %c0_222 = arith.constant 0 : index
    %c0_223 = arith.constant 0 : index
    %c0_224 = arith.constant 0 : index
    %c0_225 = arith.constant 0 : index
    %235 = vector.load %arg7[%c0_222, %c0_223, %c0_224, %c0_225] : memref<3x1x1x8xf32, #tpu.memory_space<vmem>>, vector<3x1x1x8xf32>
    %c0_226 = arith.constant 0 : index
    %c0_227 = arith.constant 0 : index
    %c0_228 = arith.constant 0 : index
    %236 = vector.load %arg12[%c0_226, %c0_227, %c0_228] : memref<1x64x8xf32, #tpu.memory_space<vmem>>, vector<1x64x8xf32>
    %237 = vector.extract_strided_slice %235 {offsets = [0, 0, 0, 0], sizes = [1, 1, 1, 8], strides = [1, 1, 1, 1]} : vector<3x1x1x8xf32> to vector<1x1x1x8xf32>
    %238 = vector.shape_cast %237 : vector<1x1x1x8xf32> to vector<1x1x8xf32>
    %239 = vector.broadcast %238 : vector<1x1x8xf32> to vector<1x64x8xf32>
    %240 = arith.addf %236, %239 : vector<1x64x8xf32>
    %cst_229 = arith.constant dense<0.000000e+00> : vector<1xf32>
    %241 = vector.multi_reduction <add>, %240, %cst_229 [1, 2] : vector<1x64x8xf32> to vector<1xf32>
    %242 = vector.shape_cast %241 : vector<1xf32> to vector<1x1x1xf32>
    %243 = arith.mulf %240, %240 : vector<1x64x8xf32>
    %cst_230 = arith.constant dense<0.000000e+00> : vector<1xf32>
    %244 = vector.multi_reduction <add>, %243, %cst_230 [1, 2] : vector<1x64x8xf32> to vector<1xf32>
    %245 = vector.shape_cast %244 : vector<1xf32> to vector<1x1x1xf32>
    %cst_231 = arith.constant 0.001953125 : f32
    %246 = vector.broadcast %cst_231 : f32 to vector<1x1x1xf32>
    %247 = arith.mulf %242, %246 : vector<1x1x1xf32>
    %cst_232 = arith.constant 0.001953125 : f32
    %248 = vector.broadcast %cst_232 : f32 to vector<1x1x1xf32>
    %249 = arith.mulf %245, %248 : vector<1x1x1xf32>
    %250 = arith.mulf %247, %247 : vector<1x1x1xf32>
    %251 = arith.subf %249, %250 : vector<1x1x1xf32>
    %cst_233 = arith.constant 0.000000e+00 : f32
    %252 = vector.broadcast %cst_233 : f32 to vector<1x1x1xf32>
    %253 = arith.maximumf %251, %252 : vector<1x1x1xf32>
    %254 = vector.broadcast %247 : vector<1x1x1xf32> to vector<1x64x8xf32>
    %255 = arith.subf %240, %254 : vector<1x64x8xf32>
    %cst_234 = arith.constant 9.99999974E-6 : f32
    %256 = vector.broadcast %cst_234 : f32 to vector<1x1x1xf32>
    %257 = arith.addf %253, %256 : vector<1x1x1xf32>
    %258 = math.rsqrt %257 : vector<1x1x1xf32>
    %259 = vector.broadcast %258 : vector<1x1x1xf32> to vector<1x64x8xf32>
    %260 = arith.mulf %255, %259 : vector<1x64x8xf32>
    %261 = vector.extract_strided_slice %235 {offsets = [1, 0, 0, 0], sizes = [1, 1, 1, 8], strides = [1, 1, 1, 1]} : vector<3x1x1x8xf32> to vector<1x1x1x8xf32>
    %262 = vector.shape_cast %261 : vector<1x1x1x8xf32> to vector<1x1x8xf32>
    %263 = vector.broadcast %262 : vector<1x1x8xf32> to vector<1x64x8xf32>
    %264 = arith.mulf %260, %263 : vector<1x64x8xf32>
    %265 = vector.extract_strided_slice %235 {offsets = [2, 0, 0, 0], sizes = [1, 1, 1, 8], strides = [1, 1, 1, 1]} : vector<3x1x1x8xf32> to vector<1x1x1x8xf32>
    %266 = vector.shape_cast %265 : vector<1x1x1x8xf32> to vector<1x1x8xf32>
    %267 = vector.broadcast %266 : vector<1x1x8xf32> to vector<1x64x8xf32>
    %268 = arith.addf %264, %267 : vector<1x64x8xf32>
    %cst_235 = arith.constant 0.000000e+00 : f32
    %269 = vector.broadcast %cst_235 : f32 to vector<1x64x8xf32>
    %270 = arith.cmpf oge, %268, %269 : vector<1x64x8xf32>
    %cst_236 = arith.constant 2.000000e-01 : f32
    %271 = vector.broadcast %cst_236 : f32 to vector<1x64x8xf32>
    %272 = arith.mulf %271, %268 : vector<1x64x8xf32>
    %273 = arith.select %270, %268, %272 : vector<1x64x8xi1>, vector<1x64x8xf32>
    %274 = vector.shape_cast %273 : vector<1x64x8xf32> to vector<1x8x8x8xf32>
    %c0_237 = arith.constant 0 : index
    %c0_238 = arith.constant 0 : index
    %c0_239 = arith.constant 0 : index
    %c0_240 = arith.constant 0 : index
    %275 = vector.load %arg8[%c0_237, %c0_238, %c0_239, %c0_240] : memref<1x8x8x8xf32, #tpu.memory_space<vmem>>, vector<1x8x8x8xf32>
    tpu.vector_store %arg8[%c0_237, %c0_238, %c0_239, %c0_240], %274 {strides = array<i32>} : memref<1x8x8x8xf32, #tpu.memory_space<vmem>>, vector<1x8x8x8xf32>,
    return
  }
  func.func @transform_0(%arg0: i32) -> (i32, i32, i32, i32) {
    %c0_i32 = arith.constant 0 : i32
    %c0_i32_0 = arith.constant 0 : i32
    %c0_i32_1 = arith.constant 0 : i32
    %c0_i32_2 = arith.constant 0 : i32
    return %arg0, %c0_i32, %c0_i32_0, %c0_i32_1 : i32, i32, i32, i32
  }
  func.func @transform_1(%arg0: i32) -> (i32, i32, i32) {
    %c0_i32 = arith.constant 0 : i32
    %c0_i32_0 = arith.constant 0 : i32
    %c0_i32_1 = arith.constant 0 : i32
    %c0_i32_2 = arith.constant 0 : i32
    return %c0_i32, %c0_i32_0, %c0_i32_1 : i32, i32, i32
  }
  func.func @transform_2(%arg0: i32) -> (i32, i32, i32, i32) {
    %c0_i32 = arith.constant 0 : i32
    %c0_i32_0 = arith.constant 0 : i32
    %c0_i32_1 = arith.constant 0 : i32
    %c0_i32_2 = arith.constant 0 : i32
    %c0_i32_3 = arith.constant 0 : i32
    return %c0_i32, %c0_i32_0, %c0_i32_1, %c0_i32_2 : i32, i32, i32, i32
  }
  func.func @transform_3(%arg0: i32) -> (i32, i32, i32) {
    %c0_i32 = arith.constant 0 : i32
    %c0_i32_0 = arith.constant 0 : i32
    %c0_i32_1 = arith.constant 0 : i32
    %c0_i32_2 = arith.constant 0 : i32
    return %c0_i32, %c0_i32_0, %c0_i32_1 : i32, i32, i32
  }
  func.func @transform_4(%arg0: i32) -> (i32, i32, i32, i32) {
    %c0_i32 = arith.constant 0 : i32
    %c0_i32_0 = arith.constant 0 : i32
    %c0_i32_1 = arith.constant 0 : i32
    %c0_i32_2 = arith.constant 0 : i32
    %c0_i32_3 = arith.constant 0 : i32
    return %c0_i32, %c0_i32_0, %c0_i32_1, %c0_i32_2 : i32, i32, i32, i32
  }
  func.func @transform_5(%arg0: i32) -> (i32, i32, i32) {
    %c0_i32 = arith.constant 0 : i32
    %c0_i32_0 = arith.constant 0 : i32
    %c0_i32_1 = arith.constant 0 : i32
    %c0_i32_2 = arith.constant 0 : i32
    return %c0_i32, %c0_i32_0, %c0_i32_1 : i32, i32, i32
  }
  func.func @transform_6(%arg0: i32) -> (i32, i32, i32, i32) {
    %c0_i32 = arith.constant 0 : i32
    %c0_i32_0 = arith.constant 0 : i32
    %c0_i32_1 = arith.constant 0 : i32
    %c0_i32_2 = arith.constant 0 : i32
    %c0_i32_3 = arith.constant 0 : i32
    return %c0_i32, %c0_i32_0, %c0_i32_1, %c0_i32_2 : i32, i32, i32, i32
  }
  func.func @transform_7(%arg0: i32) -> (i32, i32, i32, i32) {
    %c0_i32 = arith.constant 0 : i32
    %c0_i32_0 = arith.constant 0 : i32
    %c0_i32_1 = arith.constant 0 : i32
    %c0_i32_2 = arith.constant 0 : i32
    return %arg0, %c0_i32, %c0_i32_0, %c0_i32_1 : i32, i32, i32, i32
  }
}

</mosaic_0001>

<bundles_post_ra>
// kernel: _down_block_forward.1
= control target key start
LH: loop header
LB: loop body
LE: loop exit
PB: predicated region body
PF: predicated region fallthrough
CT: control target
= control target key end

     0   :  { %s2446_s24 = smov 0   ;;  %s3295_s0 = inlined_call_operand.vmem [shape: f32[2,8,8,16], index: 0, kind: input, shape index: {}]   ;;  %s3296_s1 = inlined_call_operand.vmem [shape: f32[3,12,8], index: 1, kind: input, shape index: {}]   ;;  %s3297_s2 = inlined_call_operand.vmem [shape: f32[3,1,1,8], index: 2, kind: input, shape index: {}]   ;;  %s3298_s3 = inlined_call_operand.vmem [shape: f32[3,24,8], index: 3, kind: input, shape index: {}]   ;;  %s3299_s4 = inlined_call_operand.vmem [shape: f32[3,1,1,8], index: 4, kind: input, shape index: {}]   ;;  %s3300_s5 = inlined_call_operand.vmem [shape: f32[3,24,8], index: 5, kind: input, shape index: {}]   ;;  %s3301_s6 = inlined_call_operand.vmem [shape: f32[3,1,1,8], index: 6, kind: input, shape index: {}]   ;;  %s3302_s7 = inlined_call_operand.vmem [shape: f32[2,8,8,8], index: 7, kind: output, shape index: {}]  }
   0x1 LB: > { %s2265_s25 = sadd.s32 4294967295, %s2396_s24   ;;  %p2269_p0 = scmp.ge.s32.totalorder %s2396_s24, 1  ;;  %s2396_s24 = sphi %s2446_s24, %s17_s24  }
   0x2   : > { %p237_p1 = scmp.lt.s32.totalorder %s2396_s24, 3 }
   0x4   : > { %p238_p2 = pnand %p2269_p0, %p237_p1 }
   0x5   : > { %p269_p3 = scmp.lt.s32.totalorder (!%p238_p2), %s2265_s25, 1  ;;  %s2398_s30 = smov (!%p238_p2), 116  }
   0x6   : > { %241 = sbr.rel (%p238_p2) target bundleno = 2012 (0x7dc), region = 48  ;;  %s2399_s8 = smov (!%p238_p2), 124  }
   0x7   : > { %s2400_s9 = smov (!%p238_p2), 8   ;;  %s2401_s10 = smov (!%p238_p2), 120  }
   0x8   : > { %s2403_s11 = smov (!%p238_p2), 4  }
   0xb   : > { %s3304_s25 = smov (!%p269_p3, %s2265_s25), 1  ;;  %v287_v5 = vlaneseq  ;;  %vm434_vm1 = vcmask 31744   ;;  %v2402_v63 = vmov -inf   ;;  %vm667_vm3 = vcmask 1043456  }
   0xc   : > { %s2351_s26 = sshll.u32 %s3304_s25, 6  ;;  %435 = vst.msk [vmem:[#allocation4] sm:$0xff] %vm434_vm1, %v2402_v63  ;;  %vm579_vm4 = vcmask 64544   ;;  %vm534_vm5 = vcmask 97280   ;;  %vm620_vm6 = vcmask 97344   ;;  %vm712_vm7 = vcmask 64512  }
   0xd   : > { %s2462_s29 = scalar_lea.vmem %s3295_s0, %s2351_s26  ;;  %v2483_v6 = vshrl.u32 %v287_v5, 7  ;;  %s278_s27 = scalar_lea.vmem %s3302_s7, %s2351_s26 }
   0xe   : > { %v280_v0 = vld [vmem:[%s2462_s29 + $0x8] sm:$0xff]  ;;  %v279_v1 = vld [vmem:[%s2462_s29] sm:$0xff]  ;;  %v281_v3 = vld [vmem:[%s2462_s29 + $0x10] sm:$0xff] }
   0xf   : > { %356 = vrot.lane.b32.xlu1 %v280_v0, %s2398_s30  ;;  %354 = vrot.lane.b32.xlu0 %v279_v1, %s2398_s30  ;;  %v2469_v2 = vld [vmem:[%s2462_s29 + $0x20] sm:$0xff]  ;;  %v282_v4 = vld [vmem:[%s2462_s29 + $0x18] sm:$0xff]  ;;  %vm329_vm0 = vcmp.eq.s32.totalorder %v2483_v6, 0  ;;  %vm517_vm2 = vcmp.eq.s32.totalorder %v2483_v6, 7 }
  0x10   : > { %362 = vrot.lane.b32.xlu2 %v2469_v2, %s2398_s30  ;;  %v2486_v7 = vld [vmem:[%s2462_s29 + $0x38] sm:$0xff]  ;;  %v2498_v16 = vld [vmem:[%s2462_s29 + $0x28] sm:$0xff]  ;;  %v2508_v21 = vld [vmem:[%s2462_s29 + $0x30] sm:$0xff] }
  0x11   : > { %v1767_v6 = vld [vmem:[%s3300_s5 + $0x18] sm:$0xff] }
  0x17   : > { %358 = vrot.lane.b32.xlu0 %v281_v3, %s2398_s30  ;;  %360 = vrot.lane.b32.xlu1 %v282_v4, %s2398_s30 }
  0x18   : > { %297 = vrot.lane.b32.xlu2 %v279_v1, %s2399_s8 }
  0x1f   : > { %301 = vrot.lane.b32.xlu1 %v281_v3, %s2399_s8 }
  0x20   : > { %299 = vrot.lane.b32.xlu2 %v280_v0, %s2399_s8 }
  0x28   : > { %303 = vrot.lane.b32.xlu2 %v282_v4, %s2399_s8 }
  0x30   : > { %305 = vrot.lane.b32.xlu2 %v2469_v2, %s2399_s8 }
  0x38   : > { %368 = vrot.lane.b32.xlu2 %v2486_v7, %s2398_s30 }
  0x6a   : > { %v363_v22 = vpop.permute.xlu2 %362 }
  0x6b   : > { %v382_v23 = vrot.slane %v363_v22, 7 }
  0x6d   : > { %v390_v24 = vsel %vm329_vm0, -inf, %v382_v23 }
  0x72   : > { %v298_v25 = vpop.permute.xlu2 %297 }
  0x73   : > { %v330_v26 = vrot.slane %v298_v25, 7  ;;  %v321_v27 = vmax.f32 %v279_v1, %v298_v25 }
  0x75   : > { %v338_v28 = vsel %vm329_vm0, -inf, %v330_v26 }
  0x76   : > { %v346_v29 = vmax.f32 %v321_v27, %v338_v28 }
  0x7a   : > { %v300_v30 = vpop.permute.xlu2 %299 }
  0x7b   : > { %v322_v37 = vmax.f32 %v280_v0, %v300_v30  ;;  %v331_v1 = vrot.slane %v300_v30, 7 }
  0x81   : > { %v357_v8 = vpop.permute.xlu1 %356  ;;  %v355_v9 = vpop.permute.xlu0 %354 }
  0x82   : > { %v379_v10 = vrot.slane %v357_v8, 7  ;;  %v378_v11 = vrot.slane %v355_v9, 7  ;;  %v304_v31 = vpop.permute.xlu2 %303  ;;  %v339_v8 = vsel %vm329_vm0, -inf, %v331_v1 }
  0x83   : > { %v333_v32 = vrot.slane %v304_v31, 7  ;;  %v2518_v33 = vmax.f32 %v282_v4, %v304_v31 }
  0x84   : > { %v387_v12 = vsel %vm329_vm0, -inf, %v379_v10  ;;  %v386_v13 = vsel %vm329_vm0, -inf, %v378_v11  ;;  %v347_v11 = vmax.f32 %v322_v37, %v339_v8 }
  0x85   : > { %404 = vrot.lane.b32.xlu1 %v387_v12, %s2400_s9  ;;  %402 = vrot.lane.b32.xlu0 %v386_v13, %s2400_s9  ;;  %v2522_v34 = vsel %vm329_vm0, -inf, %v333_v32 }
  0x86   : > { %v349_v35 = vmax.f32 %v2518_v33, %v2522_v34 }
  0x89   : > { %v359_v14 = vpop.permute.xlu0 %358  ;;  %v361_v17 = vpop.permute.xlu1 %360 }
  0x8a   : > { %v380_v15 = vrot.slane %v359_v14, 7  ;;  %v381_v19 = vrot.slane %v361_v17, 7  ;;  %v306_v51 = vpop.permute.xlu2 %305 }
  0x8b   : > { %v334_v53 = vrot.slane %v306_v51, 7  ;;  %v2540_v55 = vmax.f32 %v2469_v2, %v306_v51 }
  0x8c   : > { %v388_v18 = vsel %vm329_vm0, -inf, %v380_v15  ;;  %v389_v20 = vsel %vm329_vm0, -inf, %v381_v19 }
  0x8d   : > { %406 = vrot.lane.b32.xlu0 %v388_v18, %s2400_s9  ;;  %364 = vrot.lane.b32.xlu1 %v2498_v16, %s2398_s30  ;;  %v2544_v56 = vsel %vm329_vm0, -inf, %v334_v53 }
  0x8e   : > { %v350_v60 = vmax.f32 %v2540_v55, %v2544_v56 }
  0x91   : > { %v302_v36 = vpop.permute.xlu1 %301 }
  0x92   : > { %v323_v42 = vmax.f32 %v281_v3, %v302_v36  ;;  %v369_v59 = vpop.permute.xlu2 %368  ;;  %v332_v2 = vrot.slane %v302_v36, 7  ;;  %v485_v3 = vld [vmem:[#allocation4] sm:$0xff] }
  0x93   : > { %v385_v61 = vrot.slane %v369_v59, 7 }
  0x94   : > { %v340_v10 = vsel %vm329_vm0, -inf, %v332_v2  ;;  %v630_v2 = vld [vmem:[%s3296_s1 + $0x8] sm:$0xf] }
  0x95   : > { %408 = vrot.lane.b32.xlu0 %v389_v20, %s2400_s9  ;;  %366 = vrot.lane.b32.xlu1 %v2508_v21, %s2398_s30  ;;  %v393_v62 = vsel %vm329_vm0, -inf, %v385_v61  ;;  %v348_v14 = vmax.f32 %v323_v42, %v340_v10 }
  0x96   : > { %2353 = vmatpush.msk.msra.mxu1 %vm667_vm3, %v630_v2  ;;  %2354 = vmatpush.msk.msra.mxu2 %vm667_vm3, %v630_v2 }
  0x97   : > { %2274 = vmatpush.msk.msra.mxu0 %vm667_vm3, %v630_v2  ;;  %2355 = vmatpush.msk.msra.mxu3 %vm667_vm3, %v630_v2 }
  0x9d   : > { %410 = vrot.lane.b32.xlu0 %v390_v24, %s2400_s9 }
  0xf7   : > { %v405_v38 = vpop.permute.xlu1 %404  ;;  %v403_v39 = vpop.permute.xlu0 %402 }
  0xf8   : > { %v427_v40 = vmax.f32 %v322_v37, %v405_v38  ;;  %v426_v41 = vmax.f32 %v321_v27, %v403_v39 }
  0xfa   : > { %446 = vrot.lane.b32.xlu2 %v427_v40, %s2401_s10  ;;  %444 = vrot.lane.b32.xlu0 %v426_v41, %s2401_s10 }
  0xff   : > { %v407_v43 = vpop.permute.xlu0 %406  ;;  %v365_v44 = vpop.permute.xlu1 %364 }
 0x100   : > { %v428_v45 = vmax.f32 %v323_v42, %v407_v43  ;;  %v383_v46 = vrot.slane %v365_v44, 7 }
 0x102   : > { %448 = vrot.lane.b32.xlu1 %v428_v45, %s2401_s10  ;;  %v391_v47 = vsel %vm329_vm0, -inf, %v383_v46 }
 0x103   : > { %412 = vrot.lane.b32.xlu2 %v391_v47, %s2400_s9 }
 0x107   : > { %v409_v48 = vpop.permute.xlu0 %408  ;;  %v367_v49 = vpop.permute.xlu1 %366 }
 0x108   : > { %v429_v50 = vmax.f32 %v2518_v33, %v409_v48  ;;  %v384_v52 = vrot.slane %v367_v49, 7 }
 0x10a   : > { %307 = vrot.lane.b32.xlu1 %v2498_v16, %s2399_s8  ;;  %450 = vrot.lane.b32.xlu0 %v429_v50, %s2401_s10  ;;  %v392_v54 = vsel %vm329_vm0, -inf, %v384_v52 }
 0x10b   : > { %414 = vrot.lane.b32.xlu2 %v392_v54, %s2400_s9 }
 0x10f   : > { %v411_v57 = vpop.permute.xlu0 %410 }
 0x110   : > { %v430_v58 = vmax.f32 %v2540_v55, %v411_v57 }
 0x112   : > { %452 = vrot.lane.b32.xlu0 %v430_v58, %s2401_s10  ;;  %309 = vrot.lane.b32.xlu1 %v2508_v21, %s2399_s8 }
 0x11a   : > { %311 = vrot.lane.b32.xlu0 %v2486_v7, %s2399_s8  ;;  %416 = vrot.lane.b32.xlu1 %v393_v62, %s2400_s9 }
 0x154   : > { %v447_v0 = vpop.permute.xlu2 %446 }
 0x155   : > { %470 = vst.msk [vmem:[#allocation4 + $0x10] sm:$0xff] %vm434_vm1, %v447_v0  ;;  %v478_v13 = vmax.f32 %v347_v11, %v447_v0 }
 0x15c   : > { %v487_v22 = vld [vmem:[#allocation4 + $0x10] sm:$0xff] }
 0x16c   : > { %v445_v4 = vpop.permute.xlu0 %444 }
 0x16d   : > { %469 = vst.msk [vmem:[#allocation4 + $0x8] sm:$0xff] %vm434_vm1, %v445_v4  ;;  %v477_v5 = vmax.f32 %v346_v29, %v445_v4  ;;  %v413_v29 = vpop.permute.xlu2 %412 }
 0x16f   : > { %v2562_v9 = vmax.f32 %v477_v5, %v485_v3 }
 0x171   : > { %v501_v12 = vrot.slane %v2562_v9, 7  ;;  %v518_v58 = vrot.slane %v2562_v9, 1 }
 0x173   : > { %v509_v15 = vsel %vm329_vm0, 0.0, %v501_v12  ;;  %v526_v61 = vsel %vm517_vm2, 0.0, %v518_v58 }
 0x174   : > { %v449_v17 = vpop.permute.xlu1 %448  ;;  %v486_v18 = vld [vmem:[#allocation4 + $0x8] sm:$0xff]  ;;  %539 = vst.msk [vmem:[#allocation2 + $0x8] sm:$0xff] %vm434_vm1, %v509_v15 }
 0x175   : > { %471 = vst.msk [vmem:[#allocation4 + $0x18] sm:$0xff] %vm434_vm1, %v449_v17  ;;  %v479_v19 = vmax.f32 %v348_v14, %v449_v17  ;;  %v494_v20 = vmax.f32 %v478_v13, %v486_v18  ;;  %v415_v54 = vpop.permute.xlu2 %414  ;;  %v2404_v14 = vmov 0.0  }
 0x176   : > { %535 = vst.msk [vmem:[#allocation2] sm:$0xff] %vm534_vm5, %v2404_v14 }
 0x177   : > { %v495_v23 = vmax.f32 %v479_v19, %v487_v22  ;;  %v519_v24 = vrot.slane %v494_v20, 1  ;;  %v502_v25 = vrot.slane %v494_v20, 7  ;;  %537 = vst.msk [vmem:[#allocation2 + $0x48] sm:$0xff] %vm534_vm5, %v2404_v14  ;;  %v634_v19 = vld [vmem:[%s3296_s1 + $0x28] sm:$0xf] }
 0x178   : > { %v632_v22 = vld [vmem:[%s3296_s1 + $0x18] sm:$0xf] }
 0x179   : > { %v527_v26 = vsel %vm517_vm2, 0.0, %v519_v24  ;;  %v510_v27 = vsel %vm329_vm0, 0.0, %v502_v25  ;;  %v503_v28 = vrot.slane %v495_v23, 7  ;;  %v520_v55 = vrot.slane %v495_v23, 1 }
 0x17a   : > { %598 = vrot.lane.b32.xlu0 %v527_v26, %s2400_s9  ;;  %540 = vst.msk [vmem:[#allocation2 + $0x10] sm:$0xff] %vm434_vm1, %v510_v27 }
 0x17b   : > { %v511_v30 = vsel %vm329_vm0, 0.0, %v503_v28  ;;  %v528_v57 = vsel %vm517_vm2, 0.0, %v520_v55 }
 0x17c   : > { %v308_v31 = vpop.permute.xlu1 %307  ;;  %v451_v32 = vpop.permute.xlu0 %450  ;;  %541 = vst.msk [vmem:[#allocation2 + $0x18] sm:$0xff] %vm434_vm1, %v511_v30  ;;  %v488_v39 = vld [vmem:[#allocation4 + $0x18] sm:$0xff] }
 0x17d   : > { %v2582_v36 = vmax.f32 %v2498_v16, %v308_v31  ;;  %v335_v37 = vrot.slane %v308_v31, 7  ;;  %472 = vst.msk [vmem:[#allocation4 + $0x20] sm:$0xff] %vm434_vm1, %v451_v32  ;;  %v480_v38 = vmax.f32 %v349_v35, %v451_v32  ;;  %v635_v18 = vld [vmem:[#allocation2] sm:$0xff] }
 0x17f   : > { %v343_v40 = vsel %vm329_vm0, -inf, %v335_v37  ;;  %v496_v41 = vmax.f32 %v480_v38, %v488_v39  ;;  %v431_v42 = vmax.f32 %v2582_v36, %v413_v29 }
 0x180   : > { %v351_v43 = vmax.f32 %v2582_v36, %v343_v40 }
 0x181   : > { %454 = vrot.lane.b32.xlu2 %v431_v42, %s2401_s10  ;;  %561 = vrot.lane.b32.xlu1 %v496_v41, %s2403_s11  ;;  %v521_v16 = vrot.slane %v496_v41, 1  ;;  %v504_v44 = vrot.slane %v496_v41, 7 }
 0x183   : > { %v529_v33 = vsel %vm517_vm2, 0.0, %v521_v16  ;;  %v512_v34 = vsel %vm329_vm0, 0.0, %v504_v44 }
 0x184   : > { %602 = vrot.lane.b32.xlu0 %v529_v33, %s2400_s9  ;;  %v453_v35 = vpop.permute.xlu0 %452  ;;  %v310_v45 = vpop.permute.xlu1 %309  ;;  %542 = vst.msk [vmem:[#allocation2 + $0x20] sm:$0xff] %vm434_vm1, %v512_v34  ;;  %v489_v49 = vld [vmem:[#allocation4 + $0x20] sm:$0xff] }
 0x185   : > { %473 = vst.msk [vmem:[#allocation4 + $0x28] sm:$0xff] %vm434_vm1, %v453_v35  ;;  %v481_v46 = vmax.f32 %v350_v60, %v453_v35  ;;  %v2605_v47 = vmax.f32 %v2508_v21, %v310_v45  ;;  %v336_v48 = vrot.slane %v310_v45, 7 }
 0x187   : > { %v497_v50 = vmax.f32 %v481_v46, %v489_v49  ;;  %v2609_v51 = vsel %vm329_vm0, -inf, %v336_v48  ;;  %v432_v56 = vmax.f32 %v2605_v47, %v415_v54 }
 0x188   : > { %v352_v52 = vmax.f32 %v2605_v47, %v2609_v51 }
 0x189   : > { %557 = vrot.lane.b32.xlu2 %v494_v20, %s2403_s11  ;;  %559 = vrot.lane.b32.xlu1 %v495_v23, %s2403_s11  ;;  %v505_v53 = vrot.slane %v497_v50, 7  ;;  %v522_v59 = vrot.slane %v497_v50, 1  ;;  %v633_v20 = vld [vmem:[%s3296_s1 + $0x20] sm:$0xff]  ;;  %v631_v23 = vld [vmem:[%s3296_s1 + $0x10] sm:$0xff] }
 0x18b   : > { %v513_v21 = vsel %vm329_vm0, 0.0, %v505_v53  ;;  %v530_v62 = vsel %vm517_vm2, 0.0, %v522_v59 }
 0x18c   : > { %563 = vrot.lane.b32.xlu0 %v497_v50, %s2403_s11  ;;  %543 = vst.msk [vmem:[#allocation2 + $0x28] sm:$0xff] %vm434_vm1, %v513_v21  ;;  %v2627_v60 = vpop.permute.xlu0 %311  ;;  %v417_v0 = vpop.permute.xlu1 %416  ;;  %v490_v5 = vld [vmem:[#allocation4 + $0x28] sm:$0xff] }
 0x18d   : > { %v2637_v63 = vmax.f32 %v2486_v7, %v2627_v60  ;;  %v629_v7 = vld [vmem:[%s3296_s1] sm:$0xff]  ;;  %v337_v32 = vrot.slane %v2627_v60, 7 }
 0x18e   : > { %2356 = vmatpush.msra.mxu1 %v629_v7  ;;  %2357 = vmatpush.msra.mxu2 %v629_v7 }
 0x18f   : > { %v433_v1 = vmax.f32 %v2637_v63, %v417_v0  ;;  %686 = vmatpush.msra.mxu0 %v629_v7  ;;  %2358 = vmatpush.msra.mxu3 %v629_v7  ;;  %v345_v39 = vsel %vm329_vm0, -inf, %v337_v32 }
 0x190   : > { %2275 = vmatmul.msk.f32.vlgmr.msra.gmra.mxu0 %vm534_vm5, %v635_v18  ;;  %2292 = vmatpush.msk.msrb.mxu2 %vm667_vm3, %v634_v19  ;;  %v353_v16 = vmax.f32 %v2637_v63, %v345_v39 }
 0x191   : > { %600 = vrot.lane.b32.xlu2 %v528_v57, %s2400_s9  ;;  %456 = vrot.lane.b32.xlu1 %v432_v56, %s2401_s10 }
 0x192   : > { %872 = vmatpush.msrb.mxu2 %v633_v20  ;;  %2283 = vmatpush.msk.msrb.mxu1 %vm667_vm3, %v632_v22 }
 0x194   : > { %555 = vrot.lane.b32.xlu0 %v2562_v9, %s2403_s11  ;;  %771 = vmatpush.msrb.mxu1 %v631_v23 }
 0x199   : > { %596 = vrot.lane.b32.xlu1 %v526_v61, %s2400_s9  ;;  %604 = vrot.lane.b32.xlu2 %v530_v62, %s2400_s9 }
 0x1a1   : > { %458 = vrot.lane.b32.xlu2 %v433_v1, %s2401_s10 }
 0x1db   : > { %v455_v3 = vpop.permute.xlu2 %454 }
 0x1dc   : > { %474 = vst.msk [vmem:[#allocation4 + $0x30] sm:$0xff] %vm434_vm1, %v455_v3  ;;  %v482_v4 = vmax.f32 %v351_v43, %v455_v3 }
 0x1de   : > { %v498_v8 = vmax.f32 %v482_v4, %v490_v5 }
 0x1e0   : > { %565 = vrot.lane.b32.xlu0 %v498_v8, %s2403_s11  ;;  %v523_v9 = vrot.slane %v498_v8, 1  ;;  %v506_v10 = vrot.slane %v498_v8, 7  ;;  %v829_v8 = vld [vmem:[#allocation2 + $0x48] sm:$0xff] }
 0x1e2   : > { %v531_v11 = vsel %vm517_vm2, 0.0, %v523_v9  ;;  %v514_v12 = vsel %vm329_vm0, 0.0, %v506_v10 }
 0x1e3   : > { %v558_v13 = vpop.permute.xlu2 %557  ;;  %606 = vrot.lane.b32.xlu1 %v531_v11, %s2400_s9  ;;  %544 = vst.msk [vmem:[#allocation2 + $0x30] sm:$0xff] %vm434_vm1, %v514_v12  ;;  %v491_v40 = vld [vmem:[#allocation4 + $0x30] sm:$0xff] }
 0x1e4   : > { %581 = vst.msk [vmem:[#allocation2 + $0x10] sm:$0xff] %vm579_vm4, %v558_v13 }
 0x1eb   : > { %v601_v15 = vpop.permute.xlu2 %600 }
 0x1ec   : > { %v599_v17 = vpop.permute.xlu0 %598 }
 0x1ed   : > { %622 = vst.msk [vmem:[#allocation2 + $0x10] sm:$0xff] %vm620_vm6, %v599_v17 }
 0x1f3   : > { %v562_v24 = vpop.permute.xlu1 %561  ;;  %v605_v25 = vpop.permute.xlu2 %604 }
 0x1f4   : > { %583 = vst.msk [vmem:[#allocation2 + $0x20] sm:$0xff] %vm579_vm4, %v562_v24  ;;  %v637_v26 = vld [vmem:[#allocation2 + $0x10] sm:$0xff] }
 0x1f5   : > { %2277 = vmatmul.msk.f32.vlgmr.msra.gmra.mxu1 %vm534_vm5, %v637_v26 }
 0x1f6   : > { %v603_v27 = vpop.permute.xlu0 %602 }
 0x1f7   : > { %624 = vst.msk [vmem:[#allocation2 + $0x20] sm:$0xff] %vm620_vm6, %v603_v27 }
 0x1fb   : > { %v560_v28 = vpop.permute.xlu1 %559  ;;  %v459_v29 = vpop.permute.xlu2 %458 }
 0x1fc   : > { %582 = vst.msk [vmem:[#allocation2 + $0x18] sm:$0xff] %vm579_vm4, %v560_v28  ;;  %v484_v34 = vmax.f32 %v353_v16, %v459_v29 }
 0x1fd   : > { %623 = vst.msk [vmem:[#allocation2 + $0x18] sm:$0xff] %vm620_vm6, %v601_v15 }
 0x1fe   : > { %v564_v30 = vpop.permute.xlu0 %563  ;;  %v639_v31 = vld [vmem:[#allocation2 + $0x20] sm:$0xff] }
 0x1ff   : > { %584 = vst.msk [vmem:[#allocation2 + $0x28] sm:$0xff] %vm579_vm4, %v564_v30  ;;  %2279 = vmatmul.msk.f32.vlgmr.msra.gmra.mxu2 %vm534_vm5, %v639_v31 }
 0x200   : > { %625 = vst.msk [vmem:[#allocation2 + $0x28] sm:$0xff] %vm620_vm6, %v605_v25 }
 0x203   : > { %v457_v36 = vpop.permute.xlu1 %456 }
 0x204   : > { %475 = vst.msk [vmem:[#allocation4 + $0x38] sm:$0xff] %vm434_vm1, %v457_v36  ;;  %v483_v37 = vmax.f32 %v352_v52, %v457_v36  ;;  %v638_v38 = vld [vmem:[#allocation2 + $0x18] sm:$0xff] }
 0x205   : > { %2278 = vmatmul.msk.f32.gmra.mxu1 %vm534_vm5, %v638_v38 }
 0x206   : > { %v499_v41 = vmax.f32 %v483_v37, %v491_v40  ;;  %v556_v42 = vpop.permute.xlu0 %555 }
 0x207   : > { %580 = vst.msk [vmem:[#allocation2 + $0x8] sm:$0xff] %vm579_vm4, %v556_v42  ;;  %v640_v43 = vld [vmem:[#allocation2 + $0x28] sm:$0xff] }
 0x208   : > { %567 = vrot.lane.b32.xlu2 %v499_v41, %s2403_s11  ;;  %2280 = vmatmul.msk.f32.gmra.mxu2 %vm534_vm5, %v640_v43  ;;  %v524_v44 = vrot.slane %v499_v41, 1  ;;  %v507_v33 = vrot.slane %v499_v41, 7 }
 0x20a   : > { %v532_v35 = vsel %vm517_vm2, 0.0, %v524_v44  ;;  %v515_v45 = vsel %vm329_vm0, 0.0, %v507_v33 }
 0x20b   : > { %v597_v46 = vpop.permute.xlu1 %596  ;;  %608 = vrot.lane.b32.xlu0 %v532_v35, %s2400_s9  ;;  %v492_v47 = vld [vmem:[#allocation4 + $0x38] sm:$0xff]  ;;  %545 = vst.msk [vmem:[#allocation2 + $0x38] sm:$0xff] %vm434_vm1, %v515_v45 }
 0x20c   : > { %621 = vst.msk [vmem:[#allocation2 + $0x8] sm:$0xff] %vm620_vm6, %v597_v46  ;;  %v500_v48 = vmax.f32 %v484_v34, %v492_v47 }
 0x20d   : > { %v688_v57 = vpop.f32.mrf.mxu0 }
 0x20e   : > { %569 = vrot.lane.b32.xlu1 %v500_v48, %s2403_s11  ;;  %v525_v49 = vrot.slane %v500_v48, 1  ;;  %v508_v50 = vrot.slane %v500_v48, 7  ;;  %713 = vst.msk [vmem:[#allocation5] sm:$0xff] %vm712_vm7, %v688_v57  ;;  %s2405_s11 = smov 16  }
 0x210   : > { %2293 = vmatmul.msk.f32.vlgmr.msrb.gmra.mxu2 %vm534_vm5, %v637_v26  ;;  %v533_v51 = vsel %vm517_vm2, 0.0, %v525_v49  ;;  %v516_v52 = vsel %vm329_vm0, 0.0, %v508_v50 }
 0x211   : > { %610 = vrot.lane.b32.xlu2 %v533_v51, %s2400_s9  ;;  %546 = vst.msk [vmem:[#allocation2 + $0x40] sm:$0xff] %vm434_vm1, %v516_v52  ;;  %v2375_v52 = vld [vmem:[%s3297_s2] ss:$0 sm:$0xff] }
 0x213   : > { %v636_v53 = vld [vmem:[#allocation2 + $0x8] sm:$0xff] }
 0x214   : > { %2276 = vmatmul.msk.f32.gmra.mxu0 %vm534_vm5, %v636_v53  ;;  %2284 = vmatmul.msk.f32.vlgmr.msrb.gmra.mxu1 %vm534_vm5, %v636_v53 }
 0x215   : > { %v797_v7 = vld [vmem:[#allocation5] sm:$0xff] }
 0x218   : > { %2294 = vmatmul.msk.f32.gmra.mxu2 %vm534_vm5, %v638_v38 }
 0x21c   : > { %2285 = vmatmul.msk.f32.gmra.mxu1 %vm534_vm5, %v637_v26 }
 0x220   : > { %2295 = vmatmul.msk.f32.gmra.mxu2 %vm534_vm5, %v639_v31 }
 0x224   : > { %2286 = vmatmul.msk.f32.gmra.mxu1 %vm534_vm5, %v638_v38 }
 0x228   : > { %2296 = vmatmul.msk.f32.gmra.mxu2 %vm534_vm5, %v640_v43 }
 0x22c   : > { %2287 = vmatmul.msk.f32.gmra.mxu1 %vm534_vm5, %v639_v31 }
 0x234   : > { %2288 = vmatmul.msk.f32.gmra.mxu1 %vm534_vm5, %v640_v43 }
 0x252   : > { %v566_v54 = vpop.permute.xlu0 %565 }
 0x253   : > { %585 = vst.msk [vmem:[#allocation2 + $0x30] sm:$0xff] %vm579_vm4, %v566_v54 }
 0x255   : > { %v607_v21 = vpop.permute.xlu1 %606 }
 0x256   : > { %626 = vst.msk [vmem:[#allocation2 + $0x30] sm:$0xff] %vm620_vm6, %v607_v21 }
 0x25d   : > { %v641_v55 = vld [vmem:[#allocation2 + $0x30] sm:$0xff] }
 0x25e   : > { %2281 = vmatmul.msk.f32.vlgmr.msra.gmra.mxu3 %vm534_vm5, %v641_v55  ;;  %2289 = vmatmul.msk.f32.gmra.mxu1 %vm534_vm5, %v641_v55 }
 0x25f   : > { %2297 = vmatmul.msk.f32.gmra.mxu2 %vm534_vm5, %v641_v55 }
 0x262   : > { %v568_v56 = vpop.permute.xlu2 %567 }
 0x263   : > { %586 = vst.msk [vmem:[#allocation2 + $0x38] sm:$0xff] %vm579_vm4, %v568_v56 }
 0x26b   : > { %v611_v61 = vpop.permute.xlu2 %610 }
 0x272   : > { %v694_v58 = vpop.f32.mrf.mxu1 }
 0x273   : > { %715 = vst.msk [vmem:[#allocation5 + $0x10] sm:$0xff] %vm712_vm7, %v694_v58 }
 0x27a   : > { %v799_v19 = vld [vmem:[#allocation5 + $0x10] sm:$0xff] }
 0x27d   : > { %v609_v59 = vpop.permute.xlu0 %608 }
 0x27e   : > { %627 = vst.msk [vmem:[#allocation2 + $0x38] sm:$0xff] %vm620_vm6, %v609_v59 }
 0x280   : > { %v570_v60 = vpop.permute.xlu1 %569 }
 0x281   : > { %587 = vst.msk [vmem:[#allocation2 + $0x40] sm:$0xff] %vm579_vm4, %v570_v60 }
 0x282   : > { %628 = vst.msk [vmem:[#allocation2 + $0x40] sm:$0xff] %vm620_vm6, %v611_v61  ;;  %v697_v62 = vpop.f32.mrf.mxu1  ;;  %v700_v63 = vpop.f32.mrf.mxu2  ;;  %vm1153_vm6 = vcmask 130112  }
 0x283   : > { %716 = vst.msk [vmem:[#allocation5 + $0x18] sm:$0xff] %vm712_vm7, %v697_v62 }
 0x284   : > { %717 = vst.msk [vmem:[#allocation5 + $0x20] sm:$0xff] %vm712_vm7, %v700_v63 }
 0x285   : > { %v642_v0 = vld [vmem:[#allocation2 + $0x38] sm:$0xff] }
 0x286   : > { %2282 = vmatmul.msk.f32.gmra.mxu3 %vm534_vm5, %v642_v0  ;;  %2290 = vmatmul.msk.f32.gmra.mxu1 %vm534_vm5, %v642_v0 }
 0x287   : > { %2298 = vmatmul.msk.f32.gmra.mxu2 %vm534_vm5, %v642_v0 }
 0x289   : > { %v728_v2 = vld [vmem:[#allocation2 + $0x40] sm:$0xff] }
 0x28a   : > { %v800_v26 = vld [vmem:[#allocation5 + $0x18] sm:$0xff] }
 0x28b   : > { %v703_v1 = vpop.f32.mrf.mxu2  ;;  %v801_v31 = vld [vmem:[#allocation5 + $0x20] sm:$0xff] }
 0x28c   : > { %718 = vst.msk [vmem:[#allocation5 + $0x28] sm:$0xff] %vm712_vm7, %v703_v1 }
 0x28e   : > { %2291 = vmatmul.msk.f32.gmra.mxu1 %vm534_vm5, %v728_v2 }
 0x28f   : > { %2299 = vmatmul.msk.f32.gmra.mxu2 %vm534_vm5, %v728_v2 }
 0x291   : > { %v691_v3 = vpop.f32.mrf.mxu0  ;;  %v773_v4 = vpop.f32.mrf.mxu1 }
 0x292   : > { %714 = vst.msk [vmem:[#allocation5 + $0x8] sm:$0xff] %vm712_vm7, %v691_v3  ;;  %v805_v5 = vadd.f32 %v797_v7, %v773_v4 }
 0x293   : > { %v874_v9 = vpop.f32.mrf.mxu2  ;;  %v802_v40 = vld [vmem:[#allocation5 + $0x28] sm:$0xff] }
 0x294   : > { %813 = vst.msk [vmem:[#allocation5] sm:$0xff] %vm712_vm7, %v805_v5 }
 0x297   : > { %2300 = vmatmul.msk.f32.gmra.mxu2 %vm534_vm5, %v829_v8  ;;  %vm1108_vm5 = vcmask 195584  }
 0x298   : > { %1109 = vst.msk [vmem:[#allocation3] sm:$0xff] %vm1108_vm5, %v2404_v14 }
 0x299   : > { %v776_v10 = vpop.f32.mrf.mxu1  ;;  %v798_v11 = vld [vmem:[#allocation5 + $0x8] sm:$0xff]  ;;  %1111 = vst.msk [vmem:[#allocation3 + $0x48] sm:$0xff] %vm1108_vm5, %v2404_v14 }
 0x29a   : > { %v806_v12 = vadd.f32 %v798_v11, %v776_v10 }
 0x29b   : > { %v898_v13 = vld [vmem:[#allocation5] sm:$0xff]  ;;  %v877_v17 = vpop.f32.mrf.mxu2 }
 0x29c   : > { %v906_v15 = vadd.f32 %v898_v13, %v874_v9  ;;  %814 = vst.msk [vmem:[#allocation5 + $0x8] sm:$0xff] %vm712_vm7, %v806_v12 }
 0x29e   : > { %914 = vst.msk [vmem:[#allocation5] sm:$0xff] %vm712_vm7, %v906_v15 }
 0x2a1   : > { %v779_v18 = vpop.f32.mrf.mxu1 }
 0x2a2   : > { %v807_v20 = vadd.f32 %v799_v19, %v779_v18 }
 0x2a3   : > { %v899_v22 = vld [vmem:[#allocation5 + $0x8] sm:$0xff]  ;;  %v880_v24 = vpop.f32.mrf.mxu2 }
 0x2a4   : > { %v907_v23 = vadd.f32 %v899_v22, %v877_v17  ;;  %815 = vst.msk [vmem:[#allocation5 + $0x10] sm:$0xff] %vm712_vm7, %v807_v20 }
 0x2a5   : > { %v925_v55 = vld [vmem:[#allocation5] sm:$0xff] }
 0x2a6   : > { %915 = vst.msk [vmem:[#allocation5 + $0x8] sm:$0xff] %vm712_vm7, %v907_v23  ;;  %v2767_v60 = vadd.f32 %v2375_v52, %v925_v55 }
 0x2a8   : > { %v967_v2 = vmul.f32 %v2767_v60, %v2767_v60  ;;  %v944_v9 = vsel %vm712_vm7, %v2767_v60, 0.0 }
 0x2a9   : > { %v782_v25 = vpop.f32.mrf.mxu1 }
 0x2aa   : > { %v808_v27 = vadd.f32 %v800_v26, %v782_v25  ;;  %v975_v19 = vsel %vm712_vm7, %v967_v2, 0.0 }
 0x2ab   : > { %v900_v28 = vld [vmem:[#allocation5 + $0x10] sm:$0xff]  ;;  %v883_v36 = vpop.f32.mrf.mxu2 }
 0x2ac   : > { %v908_v29 = vadd.f32 %v900_v28, %v880_v24  ;;  %816 = vst.msk [vmem:[#allocation5 + $0x18] sm:$0xff] %vm712_vm7, %v808_v27 }
 0x2ad   : > { %v926_v49 = vld [vmem:[#allocation5 + $0x8] sm:$0xff] }
 0x2ae   : > { %916 = vst.msk [vmem:[#allocation5 + $0x10] sm:$0xff] %vm712_vm7, %v908_v29  ;;  %v2763_v58 = vadd.f32 %v2375_v52, %v926_v49 }
 0x2b0   : > { %v968_v63 = vmul.f32 %v2763_v58, %v2763_v58  ;;  %v945_v4 = vsel %vm712_vm7, %v2763_v58, 0.0 }
 0x2b1   : > { %v785_v30 = vpop.f32.mrf.mxu1  ;;  %v946_v18 = vadd.f32 %v945_v4, %v944_v9 }
 0x2b2   : > { %v809_v32 = vadd.f32 %v801_v31, %v785_v30  ;;  %v976_v10 = vsel %vm712_vm7, %v968_v63, 0.0 }
 0x2b3   : > { %v901_v37 = vld [vmem:[#allocation5 + $0x18] sm:$0xff]  ;;  %v977_v26 = vadd.f32 %v976_v10, %v975_v19 }
 0x2b4   : > { %v909_v38 = vadd.f32 %v901_v37, %v883_v36  ;;  %817 = vst.msk [vmem:[#allocation5 + $0x20] sm:$0xff] %vm712_vm7, %v809_v32 }
 0x2b5   : > { %v927_v57 = vld [vmem:[#allocation5 + $0x10] sm:$0xff] }
 0x2b6   : > { %917 = vst.msk [vmem:[#allocation5 + $0x18] sm:$0xff] %vm712_vm7, %v909_v38  ;;  %v2769_v61 = vadd.f32 %v2375_v52, %v927_v57 }
 0x2b8   : > { %v969_v5 = vmul.f32 %v2769_v61, %v2769_v61  ;;  %v947_v15 = vsel %vm712_vm7, %v2769_v61, 0.0 }
 0x2b9   : > { %v948_v25 = vadd.f32 %v947_v15, %v946_v18 }
 0x2ba   : > { %v978_v24 = vsel %vm712_vm7, %v969_v5, 0.0 }
 0x2bb   : > { %v902_v16 = vld [vmem:[#allocation5 + $0x20] sm:$0xff]  ;;  %v979_v31 = vadd.f32 %v978_v24, %v977_v26  ;;  %v2376_v24 = vld [vmem:[%s3297_s2 + $0x1] ss:$0 sm:$0xff] }
 0x2bd   : > { %v928_v59 = vld [vmem:[#allocation5 + $0x18] sm:$0xff] }
 0x2be   : > { %v2773_v0 = vadd.f32 %v2375_v52, %v928_v59 }
 0x2c0   : > { %v970_v17 = vmul.f32 %v2773_v0, %v2773_v0  ;;  %v949_v22 = vsel %vm712_vm7, %v2773_v0, 0.0 }
 0x2c1   : > { %v950_v30 = vadd.f32 %v949_v22, %v948_v25 }
 0x2c2   : > { %v980_v29 = vsel %vm712_vm7, %v970_v17, 0.0 }
 0x2db   : > { %v788_v39 = vpop.f32.mrf.mxu1 }
 0x2dc   : > { %v810_v41 = vadd.f32 %v802_v40, %v788_v39  ;;  %v981_v39 = vadd.f32 %v980_v29, %v979_v31 }
 0x2de   : > { %818 = vst.msk [vmem:[#allocation5 + $0x28] sm:$0xff] %vm712_vm7, %v810_v41 }
 0x2e1   : > { %v706_v42 = vpop.f32.mrf.mxu3 }
 0x2e2   : > { %719 = vst.msk [vmem:[#allocation5 + $0x30] sm:$0xff] %vm712_vm7, %v706_v42  ;;  %v886_v43 = vpop.f32.mrf.mxu2 }
 0x2e3   : > { %v910_v44 = vadd.f32 %v902_v16, %v886_v43 }
 0x2e5   : > { %918 = vst.msk [vmem:[#allocation5 + $0x20] sm:$0xff] %vm712_vm7, %v910_v44  ;;  %v903_v47 = vld [vmem:[#allocation5 + $0x28] sm:$0xff] }
 0x2e9   : > { %v803_v34 = vld [vmem:[#allocation5 + $0x30] sm:$0xff] }
 0x2ec   : > { %v929_v62 = vld [vmem:[#allocation5 + $0x20] sm:$0xff] }
 0x2ed   : > { %v2777_v3 = vadd.f32 %v2375_v52, %v929_v62 }
 0x2ef   : > { %v971_v23 = vmul.f32 %v2777_v3, %v2777_v3  ;;  %v951_v27 = vsel %vm712_vm7, %v2777_v3, 0.0 }
 0x2f0   : > { %v952_v38 = vadd.f32 %v951_v27, %v950_v30 }
 0x2f1   : > { %v982_v37 = vsel %vm712_vm7, %v971_v23, 0.0 }
 0x2f2   : > { %v983_v16 = vadd.f32 %v982_v37, %v981_v39 }
 0x303   : > { %v791_v33 = vpop.f32.mrf.mxu1 }
 0x304   : > { %v811_v35 = vadd.f32 %v803_v34, %v791_v33 }
 0x306   : > { %819 = vst.msk [vmem:[#allocation5 + $0x30] sm:$0xff] %vm712_vm7, %v811_v35 }
 0x309   : > { %v709_v45 = vpop.f32.mrf.mxu3 }
 0x30a   : > { %720 = vst.msk [vmem:[#allocation5 + $0x38] sm:$0xff] %vm712_vm7, %v709_v45  ;;  %v889_v46 = vpop.f32.mrf.mxu2 }
 0x30b   : > { %v911_v48 = vadd.f32 %v903_v47, %v889_v46  ;;  %v794_v50 = vpop.f32.mrf.mxu1 }
 0x30d   : > { %919 = vst.msk [vmem:[#allocation5 + $0x28] sm:$0xff] %vm712_vm7, %v911_v48  ;;  %v904_v21 = vld [vmem:[#allocation5 + $0x30] sm:$0xff] }
 0x311   : > { %v804_v51 = vld [vmem:[#allocation5 + $0x38] sm:$0xff] }
 0x312   : > { %v812_v53 = vadd.f32 %v804_v51, %v794_v50  ;;  %v892_v54 = vpop.f32.mrf.mxu2 }
 0x313   : > { %v912_v56 = vadd.f32 %v904_v21, %v892_v54 }
 0x314   : > { %820 = vst.msk [vmem:[#allocation5 + $0x38] sm:$0xff] %vm712_vm7, %v812_v53  ;;  %v930_v1 = vld [vmem:[#allocation5 + $0x28] sm:$0xff] }
 0x315   : > { %920 = vst.msk [vmem:[#allocation5 + $0x30] sm:$0xff] %vm712_vm7, %v912_v56  ;;  %v2786_v13 = vadd.f32 %v2375_v52, %v930_v1 }
 0x317   : > { %v972_v28 = vmul.f32 %v2786_v13, %v2786_v13  ;;  %v953_v32 = vsel %vm712_vm7, %v2786_v13, 0.0 }
 0x318   : > { %v954_v43 = vadd.f32 %v953_v32, %v952_v38 }
 0x319   : > { %v984_v41 = vsel %vm712_vm7, %v972_v28, 0.0 }
 0x31a   : > { %v895_v7 = vpop.f32.mrf.mxu2  ;;  %v985_v35 = vadd.f32 %v984_v41, %v983_v16 }
 0x31b   : > { %v905_v8 = vld [vmem:[#allocation5 + $0x38] sm:$0xff] }
 0x31c   : > { %v913_v11 = vadd.f32 %v905_v8, %v895_v7  ;;  %v931_v12 = vld [vmem:[#allocation5 + $0x30] sm:$0xff] }
 0x31d   : > { %v2794_v20 = vadd.f32 %v2375_v52, %v931_v12 }
 0x31e   : > { %921 = vst.msk [vmem:[#allocation5 + $0x38] sm:$0xff] %vm712_vm7, %v913_v11 }
 0x31f   : > { %v973_v36 = vmul.f32 %v2794_v20, %v2794_v20  ;;  %v955_v40 = vsel %vm712_vm7, %v2794_v20, 0.0 }
 0x320   : > { %v956_v34 = vadd.f32 %v955_v40, %v954_v43 }
 0x321   : > { %v986_v33 = vsel %vm712_vm7, %v973_v36, 0.0  ;;  %v2377_v36 = vld [vmem:[%s3297_s2 + $0x2] ss:$0 sm:$0xff] }
 0x322   : > { %v987_v48 = vadd.f32 %v986_v33, %v985_v35 }
 0x325   : > { %v932_v42 = vld [vmem:[#allocation5 + $0x38] sm:$0xff] }
 0x326   : > { %v943_v44 = vadd.f32 %v2375_v52, %v932_v42 }
 0x328   : > { %v957_v45 = vsel %vm712_vm7, %v943_v44, 0.0  ;;  %v974_v46 = vmul.f32 %v943_v44, %v943_v44 }
 0x329   : > { %v958_v47 = vadd.f32 %v957_v45, %v956_v34 }
 0x32a   : > { %v988_v49 = vsel %vm712_vm7, %v974_v46, 0.0 }
 0x32b   : > { %959 = vadd.xlane.f32.xlu0 %v958_v47  ;;  %v989_v50 = vadd.f32 %v988_v49, %v987_v48 }
 0x32d   : > { %990 = vadd.xlane.f32.xlu1 %v989_v50 }
 0x39e   : > { %v960_v51 = vpop.xlane.xlu0 %959 }
 0x39f   : > { %v961_v53 = vrot.slane %v960_v51, 4 }
 0x3a0   : > { %v991_v54 = vpop.xlane.xlu1 %990 }
 0x3a1   : > { %v962_v21 = vadd.f32 %v961_v53, %v960_v51  ;;  %v992_v55 = vrot.slane %v991_v54, 4 }
 0x3a3   : > { %v963_v52 = vrot.slane %v962_v21, 2  ;;  %v993_v56 = vadd.f32 %v992_v55, %v991_v54 }
 0x3a5   : > { %v964_v57 = vadd.f32 %v963_v52, %v962_v21  ;;  %v994_v59 = vrot.slane %v993_v56, 2 }
 0x3a7   : > { %v965_v62 = vrot.slane %v964_v57, 1  ;;  %v995_v63 = vadd.f32 %v994_v59, %v993_v56 }
 0x3a9   : > { %v966_v1 = vadd.f32 %v965_v62, %v964_v57  ;;  %v996_v2 = vrot.slane %v995_v63, 1 }
 0x3ab   : > { %v998_v7 = vmul.f32 0.001953125, %v966_v1  ;;  %v997_v4 = vadd.f32 %v996_v2, %v995_v63 }
 0x3ad   : > { %v999_v5 = vmul.f32 0.001953125, %v997_v4  ;;  %v1000_v8 = vmul.f32 %v998_v7, %v998_v7  ;;  %v1006_v23 = vsub.f32 %v2773_v0, %v998_v7  ;;  %v1003_v25 = vsub.f32 %v2767_v60, %v998_v7 }
 0x3ae   : > { %v1008_v26 = vsub.f32 %v2786_v13, %v998_v7  ;;  %v1004_v27 = vsub.f32 %v2763_v58, %v998_v7  ;;  %v1009_v28 = vsub.f32 %v2794_v20, %v998_v7  ;;  %v1005_v30 = vsub.f32 %v2769_v61, %v998_v7 }
 0x3af   : > { %v1001_v9 = vsub.f32 %v999_v5, %v1000_v8  ;;  %v1010_v31 = vsub.f32 %v943_v44, %v998_v7  ;;  %v1007_v32 = vsub.f32 %v2777_v3, %v998_v7 }
 0x3b1   : > { %v1002_v10 = vmax.f32 %v1001_v9, 0.0 }
 0x3b3   : > { %v1011_v11 = vadd.f32 1e-05, %v1002_v10 }
 0x3b5   : > { %2384 = vrsqrt.f32 %v1011_v11  ;;  %vm1018_vm9 = vweird.f32 %v1011_v11 }
 0x3bb   : > { %v2385_v12 = vpop.eup %2384 }
 0x3bc   : > { %v1013_v15 = vmul.f32 %v2385_v12, %v1011_v11  ;;  %vm1019_vm8 = vweird.f32 %v2385_v12 }
 0x3bd   : > { %vm1020_vm10 = vmor %vm1018_vm9, %vm1019_vm8  ;;  %vm1194_vm8 = vcmask 195712  }
 0x3be   : > { %v1014_v17 = vmul.f32 %v2385_v12, %v1013_v15 }
 0x3c0   : > { %v1015_v18 = vmul.f32 0.5, %v1014_v17 }
 0x3c2   : > { %v1016_v19 = vsub.f32 1.5, %v1015_v18 }
 0x3c4   : > { %v1017_v22 = vmul.f32 %v2385_v12, %v1016_v19 }
 0x3c6   : > { %v1021_v29 = vsel %vm1020_vm10, %v2385_v12, %v1017_v22 }
 0x3c7   : > { %v1025_v0 = vmul.f32 %v1021_v29, %v1006_v23  ;;  %v1022_v37 = vmul.f32 %v1021_v29, %v1003_v25  ;;  %v1027_v38 = vmul.f32 %v1021_v29, %v1008_v26  ;;  %v1023_v60 = vmul.f32 %v1021_v29, %v1004_v27 }
 0x3c8   : > { %v1028_v39 = vmul.f32 %v1021_v29, %v1009_v28  ;;  %v1024_v13 = vmul.f32 %v1021_v29, %v1005_v30  ;;  %v1029_v40 = vmul.f32 %v1021_v29, %v1010_v31  ;;  %v1026_v58 = vmul.f32 %v1021_v29, %v1007_v32 }
 0x3c9   : > { %v1036_v41 = vmul.f32 %v2376_v24, %v1025_v0  ;;  %v1033_v20 = vmul.f32 %v2376_v24, %v1022_v37  ;;  %v1038_v42 = vmul.f32 %v2376_v24, %v1027_v38  ;;  %v1034_v43 = vmul.f32 %v2376_v24, %v1023_v60 }
 0x3ca   : > { %v1039_v61 = vmul.f32 %v2376_v24, %v1028_v39  ;;  %v1035_v16 = vmul.f32 %v2376_v24, %v1024_v13  ;;  %v1040_v44 = vmul.f32 %v2376_v24, %v1029_v40  ;;  %v1037_v47 = vmul.f32 %v2376_v24, %v1026_v58  ;;  %v1211_v40 = vld [vmem:[%s3298_s3 + $0x40] sm:$0xff] }
 0x3cb   : > { %v1047_v3 = vadd.f32 %v2377_v36, %v1036_v41  ;;  %v1044_v33 = vadd.f32 %v2377_v36, %v1033_v20  ;;  %v1049_v34 = vadd.f32 %v2377_v36, %v1038_v42  ;;  %v1045_v35 = vadd.f32 %v2377_v36, %v1034_v43  ;;  %1436 = vmatpush.msra.mxu1 %v1211_v40  ;;  %v1210_v42 = vld [vmem:[%s3298_s3 + $0x38] sm:$0xff] }
 0x3cc   : > { %v1050_v45 = vadd.f32 %v2377_v36, %v1039_v61  ;;  %v1046_v46 = vadd.f32 %v2377_v36, %v1035_v16  ;;  %v1051_v53 = vadd.f32 %v2377_v36, %v1040_v44  ;;  %v1048_v56 = vadd.f32 %v2377_v36, %v1037_v47  ;;  %v1205_v61 = vld [vmem:[%s3298_s3 + $0x10] sm:$0xff]  ;;  %v1204_v16 = vld [vmem:[%s3298_s3 + $0x8] sm:$0xff]  ;;  %v1203_v44 = vld [vmem:[%s3298_s3] sm:$0xff] }
 0x3cd   : > { %vm1055_vm11 = vcmp.ge.f32.partialorder %v1047_v3, 0.0  ;;  %v1063_v48 = vmul.f32 0.2, %v1047_v3  ;;  %vm1052_vm12 = vcmp.ge.f32.partialorder %v1044_v33, 0.0  ;;  %v1060_v49 = vmul.f32 0.2, %v1044_v33  ;;  %1437 = vmatpush.msra.mxu1 %v1210_v42  ;;  %1257 = vmatpush.msrb.mxu3 %v1205_v61 }
 0x3ce   : > { %v1065_v50 = vmul.f32 0.2, %v1049_v34  ;;  %vm1053_vm13 = vcmp.ge.f32.partialorder %v1045_v35, 0.0  ;;  %v1061_v51 = vmul.f32 0.2, %v1045_v35  ;;  %vm1057_vm14 = vcmp.ge.f32.partialorder %v1049_v34, 0.0 }
 0x3cf   : > { %v1071_v54 = vsel %vm1055_vm11, %v1047_v3, %v1063_v48  ;;  %v1068_v21 = vsel %vm1052_vm12, %v1044_v33, %v1060_v49  ;;  %v1066_v55 = vmul.f32 0.2, %v1050_v45  ;;  %vm1058_vm15 = vcmp.ge.f32.partialorder %v1050_v45, 0.0  ;;  %1258 = vmatpush.msrb.mxu3 %v1204_v16  ;;  %v1208_v3 = vld [vmem:[%s3298_s3 + $0x28] sm:$0xff]  ;;  %v1212_v33 = vld [vmem:[#allocation3] sm:$0xff] }
 0x3d0   : > { %1135 = vrot.lane.b32.xlu0 %v1071_v54, %s2400_s9  ;;  %1129 = vrot.lane.b32.xlu2 %v1068_v21, %s2400_s9  ;;  %v1095_v52 = vrot.slane %v1071_v54, 1  ;;  %v1069_v57 = vsel %vm1053_vm13, %v1045_v35, %v1061_v51  ;;  %v1076_v59 = vrot.slane %v1068_v21, 7  ;;  %v2834_v63 = vsel %vm1057_vm14, %v1049_v34, %v1065_v50  ;;  %1674 = vst.msk [vmem:[#allocation3] sm:$0xff] %vm1108_vm5, %v2404_v14  ;;  %v1209_v34 = vld [vmem:[%s3298_s3 + $0x30] sm:$0xff]  ;;  %v1207_v35 = vld [vmem:[%s3298_s3 + $0x20] sm:$0xff] }
 0x3d1   : > { %vm1054_vm1 = vcmp.ge.f32.partialorder %v1046_v46, 0.0  ;;  %v1077_v1 = vrot.slane %v1069_v57, 7  ;;  %v1074_v2 = vsel %vm1058_vm15, %v1050_v45, %v1066_v55  ;;  %v1062_v7 = vmul.f32 0.2, %v1046_v46  ;;  %1259 = vmatpush.msrb.mxu3 %v1203_v44  ;;  %1338 = vmatpush.msrb.mxu0 %v1208_v3  ;;  %v1206_v45 = vld [vmem:[%s3298_s3 + $0x18] sm:$0xff] }
 0x3d2   : > { %v1103_v62 = vsel %vm517_vm2, 0.0, %v1095_v52  ;;  %v1067_v4 = vmul.f32 0.2, %v1051_v53  ;;  %vm1059_vm3 = vcmp.ge.f32.partialorder %v1051_v53, 0.0  ;;  %vm1056_vm4 = vcmp.ge.f32.partialorder %v1048_v56, 0.0  ;;  %2301 = vmatmul.msk.f32.vlgmr.msrb.gmra.mxu3 %vm1108_vm5, %v1212_v33  ;;  %1438 = vmatpush.msra.mxu1 %v1209_v34 }
 0x3d3   : > { %1176 = vrot.lane.b32.xlu1 %v1103_v62, %s2405_s11  ;;  %v1064_v5 = vmul.f32 0.2, %v1048_v56  ;;  %v1079_v8 = vrot.slane %v1071_v54, 7  ;;  %v1081_v9 = vrot.slane %v2834_v63, 7  ;;  %v1070_v10 = vsel %vm1054_vm1, %v1046_v46, %v1062_v7  ;;  %1339 = vmatpush.msrb.mxu0 %v1207_v35 }
 0x3d4   : > { %v1082_v11 = vrot.slane %v1074_v2, 7  ;;  %v1078_v12 = vrot.slane %v1070_v10, 7  ;;  %v1075_v15 = vsel %vm1059_vm3, %v1051_v53, %v1067_v4  ;;  %v1084_v18 = vsel %vm329_vm0, 0.0, %v1076_v59 }
 0x3d5   : > { %v1072_v17 = vsel %vm1056_vm4, %v1048_v56, %v1064_v5  ;;  %v1085_v19 = vsel %vm329_vm0, 0.0, %v1077_v1  ;;  %1113 = vst.msk [vmem:[#allocation3 + $0x8] sm:$0xff] %vm712_vm7, %v1084_v18  ;;  %v1087_v24 = vsel %vm329_vm0, 0.0, %v1079_v8  ;;  %v1089_v25 = vsel %vm329_vm0, 0.0, %v1081_v9  ;;  %1340 = vmatpush.msrb.mxu0 %v1206_v45 }
 0x3d6   : > { %v1080_v22 = vrot.slane %v1072_v17, 7  ;;  %1114 = vst.msk [vmem:[#allocation3 + $0x10] sm:$0xff] %vm712_vm7, %v1085_v19  ;;  %v1086_v23 = vsel %vm329_vm0, 0.0, %v1078_v12  ;;  %v1090_v26 = vsel %vm329_vm0, 0.0, %v1082_v11  ;;  %v1083_v27 = vrot.slane %v1075_v15, 7 }
 0x3d7   : > { %1115 = vst.msk [vmem:[#allocation3 + $0x18] sm:$0xff] %vm712_vm7, %v1086_v23  ;;  %v1098_v28 = vrot.slane %v1074_v2, 1  ;;  %v1099_v31 = vrot.slane %v1075_v15, 1  ;;  %v1092_v36 = vrot.slane %v1068_v21, 1  ;;  %v1093_v38 = vrot.slane %v1069_v57, 1 }
 0x3d8   : > { %1139 = vrot.lane.b32.xlu0 %v2834_v63, %s2400_s9  ;;  %1131 = vrot.lane.b32.xlu2 %v1069_v57, %s2400_s9  ;;  %1116 = vst.msk [vmem:[#allocation3 + $0x20] sm:$0xff] %vm712_vm7, %v1087_v24  ;;  %v1088_v29 = vsel %vm329_vm0, 0.0, %v1080_v22  ;;  %v1091_v30 = vsel %vm329_vm0, 0.0, %v1083_v27  ;;  %v1094_v39 = vrot.slane %v1070_v10, 1  ;;  %v1096_v58 = vrot.slane %v1072_v17, 1 }
 0x3d9   : > { %1118 = vst.msk [vmem:[#allocation3 + $0x30] sm:$0xff] %vm712_vm7, %v1089_v25  ;;  %v1106_v32 = vsel %vm517_vm2, 0.0, %v1098_v28  ;;  %v1107_v0 = vsel %vm517_vm2, 0.0, %v1099_v31  ;;  %v1100_v37 = vsel %vm517_vm2, 0.0, %v1092_v36  ;;  %v1101_v60 = vsel %vm517_vm2, 0.0, %v1093_v38 }
 0x3da   : > { %1119 = vst.msk [vmem:[#allocation3 + $0x38] sm:$0xff] %vm712_vm7, %v1090_v26  ;;  %v1102_v13 = vsel %vm517_vm2, 0.0, %v1094_v39  ;;  %v1104_v41 = vsel %vm517_vm2, 0.0, %v1096_v58  ;;  %v1097_v20 = vrot.slane %v2834_v63, 1 }
 0x3db   : > { %1141 = vrot.lane.b32.xlu1 %v1074_v2, %s2400_s9  ;;  %1117 = vst.msk [vmem:[#allocation3 + $0x28] sm:$0xff] %vm712_vm7, %v1088_v29  ;;  %v1398_v2 = vld [vmem:[#allocation3 + $0x48] sm:$0xff] }
 0x3dc   : > { %1120 = vst.msk [vmem:[#allocation3 + $0x40] sm:$0xff] %vm712_vm7, %v1091_v30  ;;  %v1105_v43 = vsel %vm517_vm2, 0.0, %v1097_v20 }
 0x3dd   : > { %1675 = vst.msk [vmem:[#allocation3 + $0x48] sm:$0xff] %vm1108_vm5, %v2404_v14 }
 0x3e0   : > { %1182 = vrot.lane.b32.xlu0 %v1106_v32, %s2405_s11  ;;  %1133 = vrot.lane.b32.xlu2 %v1070_v10, %s2400_s9 }
 0x3e3   : > { %1184 = vrot.lane.b32.xlu1 %v1107_v0, %s2405_s11 }
 0x3e8   : > { %1170 = vrot.lane.b32.xlu2 %v1100_v37, %s2405_s11 }
 0x3f0   : > { %1172 = vrot.lane.b32.xlu2 %v1101_v60, %s2405_s11 }
 0x3f8   : > { %1174 = vrot.lane.b32.xlu2 %v1102_v13, %s2405_s11 }
 0x400   : > { %1137 = vrot.lane.b32.xlu2 %v1072_v17, %s2400_s9 }
 0x408   : > { %1178 = vrot.lane.b32.xlu2 %v1104_v41, %s2405_s11 }
 0x410   : > { %1180 = vrot.lane.b32.xlu2 %v1105_v43, %s2405_s11 }
 0x418   : > { %1143 = vrot.lane.b32.xlu2 %v1075_v15, %s2400_s9 }
 0x42a   : > { %v1130_v46 = vpop.permute.xlu2 %1129 }
 0x42b   : > { %1154 = vst.msk [vmem:[#allocation3 + $0x8] sm:$0xff] %vm1153_vm6, %v1130_v46 }
 0x432   : > { %v1132_v47 = vpop.permute.xlu2 %1131 }
 0x433   : > { %1155 = vst.msk [vmem:[#allocation3 + $0x10] sm:$0xff] %vm1153_vm6, %v1132_v47 }
 0x43a   : > { %v1134_v48 = vpop.permute.xlu2 %1133 }
 0x43b   : > { %1156 = vst.msk [vmem:[#allocation3 + $0x18] sm:$0xff] %vm1153_vm6, %v1134_v48 }
 0x442   : > { %v1136_v49 = vpop.permute.xlu0 %1135  ;;  %v1171_v50 = vpop.permute.xlu2 %1170 }
 0x443   : > { %1157 = vst.msk [vmem:[#allocation3 + $0x20] sm:$0xff] %vm1153_vm6, %v1136_v49 }
 0x444   : > { %1195 = vst.msk [vmem:[#allocation3 + $0x8] sm:$0xff] %vm1194_vm8, %v1171_v50 }
 0x445   : > { %v1177_v51 = vpop.permute.xlu1 %1176 }
 0x446   : > { %1198 = vst.msk [vmem:[#allocation3 + $0x20] sm:$0xff] %vm1194_vm8, %v1177_v51 }
 0x44a   : > { %v1140_v53 = vpop.permute.xlu0 %1139  ;;  %v1173_v54 = vpop.permute.xlu2 %1172 }
 0x44b   : > { %1159 = vst.msk [vmem:[#allocation3 + $0x30] sm:$0xff] %vm1153_vm6, %v1140_v53  ;;  %v1213_v21 = vld [vmem:[#allocation3 + $0x8] sm:$0xff] }
 0x44c   : > { %1196 = vst.msk [vmem:[#allocation3 + $0x10] sm:$0xff] %vm1194_vm8, %v1173_v54  ;;  %2302 = vmatmul.msk.f32.gmra.mxu3 %vm1108_vm5, %v1213_v21  ;;  %2309 = vmatmul.msk.f32.vlgmr.msrb.gmra.mxu0 %vm1108_vm5, %v1213_v21 }
 0x44d   : > { %v1142_v55 = vpop.permute.xlu1 %1141  ;;  %v1216_v1 = vld [vmem:[#allocation3 + $0x20] sm:$0xff] }
 0x44e   : > { %1160 = vst.msk [vmem:[#allocation3 + $0x38] sm:$0xff] %vm1153_vm6, %v1142_v55 }
 0x452   : > { %v1183_v52 = vpop.permute.xlu0 %1182  ;;  %v1175_v56 = vpop.permute.xlu2 %1174 }
 0x453   : > { %1201 = vst.msk [vmem:[#allocation3 + $0x38] sm:$0xff] %vm1194_vm8, %v1183_v52  ;;  %v1214_v57 = vld [vmem:[#allocation3 + $0x10] sm:$0xff] }
 0x454   : > { %1197 = vst.msk [vmem:[#allocation3 + $0x18] sm:$0xff] %vm1194_vm8, %v1175_v56  ;;  %2303 = vmatmul.msk.f32.gmra.mxu3 %vm1108_vm5, %v1214_v57  ;;  %2310 = vmatmul.msk.f32.gmra.mxu0 %vm1108_vm5, %v1214_v57 }
 0x455   : > { %2317 = vmatmul.msk.f32.vlgmr.msra.gmra.mxu1 %vm1108_vm5, %v1214_v57  ;;  %v1185_v9 = vpop.permute.xlu1 %1184  ;;  %v1261_v11 = vpop.f32.mrf.mxu3 }
 0x456   : > { %1285 = vst.msk [vmem:[#allocation5] sm:$0xff] %vm712_vm7, %v1261_v11 }
 0x45a   : > { %v1138_v59 = vpop.permute.xlu2 %1137  ;;  %v1219_v14 = vld [vmem:[#allocation3 + $0x38] sm:$0xff] }
 0x45b   : > { %1158 = vst.msk [vmem:[#allocation3 + $0x28] sm:$0xff] %vm1153_vm6, %v1138_v59  ;;  %v1215_v62 = vld [vmem:[#allocation3 + $0x18] sm:$0xff]  ;;  %v2378_v59 = vld [vmem:[%s3299_s4] ss:$0 sm:$0xff] }
 0x45c   : > { %2304 = vmatmul.msk.f32.gmra.mxu3 %vm1108_vm5, %v1215_v62  ;;  %2311 = vmatmul.msk.f32.gmra.mxu0 %vm1108_vm5, %v1215_v62 }
 0x45d   : > { %2318 = vmatmul.msk.f32.gmra.mxu1 %vm1108_vm5, %v1215_v62  ;;  %v1366_v12 = vld [vmem:[#allocation5] sm:$0xff] }
 0x462   : > { %v1179_v63 = vpop.permute.xlu2 %1178 }
 0x463   : > { %1199 = vst.msk [vmem:[#allocation3 + $0x28] sm:$0xff] %vm1194_vm8, %v1179_v63 }
 0x464   : > { %2305 = vmatmul.msk.f32.gmra.mxu3 %vm1108_vm5, %v1216_v1  ;;  %2312 = vmatmul.msk.f32.gmra.mxu0 %vm1108_vm5, %v1216_v1 }
 0x465   : > { %2319 = vmatmul.msk.f32.gmra.mxu1 %vm1108_vm5, %v1216_v1 }
 0x46a   : > { %v1181_v7 = vpop.permute.xlu2 %1180  ;;  %v1217_v4 = vld [vmem:[#allocation3 + $0x28] sm:$0xff] }
 0x46b   : > { %1200 = vst.msk [vmem:[#allocation3 + $0x30] sm:$0xff] %vm1194_vm8, %v1181_v7 }
 0x46c   : > { %2306 = vmatmul.msk.f32.gmra.mxu3 %vm1108_vm5, %v1217_v4  ;;  %2313 = vmatmul.msk.f32.gmra.mxu0 %vm1108_vm5, %v1217_v4 }
 0x46d   : > { %2320 = vmatmul.msk.f32.gmra.mxu1 %vm1108_vm5, %v1217_v4 }
 0x472   : > { %v1144_v5 = vpop.permute.xlu2 %1143  ;;  %v1218_v8 = vld [vmem:[#allocation3 + $0x30] sm:$0xff] }
 0x473   : > { %1161 = vst.msk [vmem:[#allocation3 + $0x40] sm:$0xff] %vm1153_vm6, %v1144_v5 }
 0x474   : > { %1202 = vst.msk [vmem:[#allocation3 + $0x40] sm:$0xff] %vm1194_vm8, %v1185_v9  ;;  %2307 = vmatmul.msk.f32.gmra.mxu3 %vm1108_vm5, %v1218_v8  ;;  %2314 = vmatmul.msk.f32.gmra.mxu0 %vm1108_vm5, %v1218_v8 }
 0x475   : > { %2321 = vmatmul.msk.f32.gmra.mxu1 %vm1108_vm5, %v1218_v8 }
 0x47b   : > { %v1300_v10 = vld [vmem:[#allocation3 + $0x40] sm:$0xff] }
 0x47c   : > { %2308 = vmatmul.msk.f32.gmra.mxu3 %vm1108_vm5, %v1219_v14  ;;  %2315 = vmatmul.msk.f32.gmra.mxu0 %vm1108_vm5, %v1219_v14 }
 0x47d   : > { %2322 = vmatmul.msk.f32.gmra.mxu1 %vm1108_vm5, %v1219_v14 }
 0x484   : > { %2316 = vmatmul.msk.f32.gmra.mxu0 %vm1108_vm5, %v1300_v10 }
 0x485   : > { %2323 = vmatmul.msk.f32.gmra.mxu1 %vm1108_vm5, %v1300_v10 }
 0x48d   : > { %2324 = vmatmul.msk.f32.gmra.mxu1 %vm1108_vm5, %v1398_v2 }
 0x4c9   : > { %v1342_v15 = vpop.f32.mrf.mxu0 }
 0x4ca   : > { %v1374_v17 = vadd.f32 %v1366_v12, %v1342_v15 }
 0x4cc   : > { %1382 = vst.msk [vmem:[#allocation5] sm:$0xff] %vm712_vm7, %v1374_v17 }
 0x4cf   : > { %v1264_v18 = vpop.f32.mrf.mxu3 }
 0x4d0   : > { %1286 = vst.msk [vmem:[#allocation5 + $0x8] sm:$0xff] %vm712_vm7, %v1264_v18 }
 0x4d1   : > { %v1345_v19 = vpop.f32.mrf.mxu0 }
 0x4d2   : > { %v1440_v22 = vpop.f32.mrf.mxu1 }
 0x4d3   : > { %v1464_v23 = vld [vmem:[#allocation5] sm:$0xff] }
 0x4d4   : > { %v1472_v24 = vadd.f32 %v1464_v23, %v1440_v22 }
 0x4d6   : > { %1480 = vst.msk [vmem:[#allocation5] sm:$0xff] %vm712_vm7, %v1472_v24 }
 0x4d7   : > { %v1367_v25 = vld [vmem:[#allocation5 + $0x8] sm:$0xff]  ;;  %v1267_v26 = vpop.f32.mrf.mxu3 }
 0x4d8   : > { %v1375_v27 = vadd.f32 %v1367_v25, %v1345_v19  ;;  %1287 = vst.msk [vmem:[#allocation5 + $0x10] sm:$0xff] %vm712_vm7, %v1267_v26 }
 0x4d9   : > { %v1348_v28 = vpop.f32.mrf.mxu0 }
 0x4da   : > { %1383 = vst.msk [vmem:[#allocation5 + $0x8] sm:$0xff] %vm712_vm7, %v1375_v27  ;;  %v1443_v29 = vpop.f32.mrf.mxu1 }
 0x4dd   : > { %v1491_v63 = vld [vmem:[#allocation5] sm:$0xff] }
 0x4de   : > { %v2993_v8 = vadd.f32 %v2378_v59, %v1491_v63 }
 0x4df   : > { %v1368_v30 = vld [vmem:[#allocation5 + $0x10] sm:$0xff]  ;;  %v1270_v31 = vpop.f32.mrf.mxu3 }
 0x4e0   : > { %v1376_v32 = vadd.f32 %v1368_v30, %v1348_v28  ;;  %1288 = vst.msk [vmem:[#allocation5 + $0x18] sm:$0xff] %vm712_vm7, %v1270_v31  ;;  %v1533_v17 = vmul.f32 %v2993_v8, %v2993_v8  ;;  %v1510_v24 = vsel %vm712_vm7, %v2993_v8, 0.0 }
 0x4e1   : > { %v1465_v0 = vld [vmem:[#allocation5 + $0x8] sm:$0xff]  ;;  %v1351_v36 = vpop.f32.mrf.mxu0 }
 0x4e2   : > { %1384 = vst.msk [vmem:[#allocation5 + $0x10] sm:$0xff] %vm712_vm7, %v1376_v32  ;;  %v1473_v37 = vadd.f32 %v1465_v0, %v1443_v29  ;;  %v1446_v38 = vpop.f32.mrf.mxu1  ;;  %v1541_v32 = vsel %vm712_vm7, %v1533_v17, 0.0 }
 0x4e4   : > { %1481 = vst.msk [vmem:[#allocation5 + $0x8] sm:$0xff] %vm712_vm7, %v1473_v37 }
 0x4e7   : > { %v1369_v60 = vld [vmem:[#allocation5 + $0x18] sm:$0xff]  ;;  %v1273_v39 = vpop.f32.mrf.mxu3 }
 0x4e8   : > { %v1377_v13 = vadd.f32 %v1369_v60, %v1351_v36  ;;  %1289 = vst.msk [vmem:[#allocation5 + $0x20] sm:$0xff] %vm712_vm7, %v1273_v39 }
 0x4e9   : > { %v1466_v40 = vld [vmem:[#allocation5 + $0x10] sm:$0xff]  ;;  %v1354_v58 = vpop.f32.mrf.mxu0 }
 0x4ea   : > { %1385 = vst.msk [vmem:[#allocation5 + $0x18] sm:$0xff] %vm712_vm7, %v1377_v13  ;;  %v1474_v41 = vadd.f32 %v1466_v40, %v1446_v38  ;;  %v1449_v20 = vpop.f32.mrf.mxu1 }
 0x4eb   : > { %v1492_v55 = vld [vmem:[#allocation5 + $0x8] sm:$0xff] }
 0x4ec   : > { %1482 = vst.msk [vmem:[#allocation5 + $0x10] sm:$0xff] %vm712_vm7, %v1474_v41  ;;  %v2990_v7 = vadd.f32 %v2378_v59, %v1492_v55 }
 0x4ee   : > { %v1534_v10 = vmul.f32 %v2990_v7, %v2990_v7  ;;  %v1511_v19 = vsel %vm712_vm7, %v2990_v7, 0.0 }
 0x4ef   : > { %v1370_v42 = vld [vmem:[#allocation5 + $0x20] sm:$0xff]  ;;  %v1276_v43 = vpop.f32.mrf.mxu3  ;;  %v1512_v31 = vadd.f32 %v1511_v19, %v1510_v24 }
 0x4f0   : > { %v1378_v61 = vadd.f32 %v1370_v42, %v1354_v58  ;;  %1290 = vst.msk [vmem:[#allocation5 + $0x28] sm:$0xff] %vm712_vm7, %v1276_v43  ;;  %v1542_v25 = vsel %vm712_vm7, %v1534_v10, 0.0 }
 0x4f1   : > { %v1467_v16 = vld [vmem:[#allocation5 + $0x18] sm:$0xff]  ;;  %v1357_v3 = vpop.f32.mrf.mxu0  ;;  %v1543_v39 = vadd.f32 %v1542_v25, %v1541_v32 }
 0x4f2   : > { %1386 = vst.msk [vmem:[#allocation5 + $0x20] sm:$0xff] %vm712_vm7, %v1378_v61  ;;  %v1475_v44 = vadd.f32 %v1467_v16, %v1449_v20  ;;  %v1452_v33 = vpop.f32.mrf.mxu1 }
 0x4f3   : > { %v1493_v2 = vld [vmem:[#allocation5 + $0x10] sm:$0xff] }
 0x4f4   : > { %1483 = vst.msk [vmem:[#allocation5 + $0x18] sm:$0xff] %vm712_vm7, %v1475_v44  ;;  %v2996_v9 = vadd.f32 %v2378_v59, %v1493_v2 }
 0x4f6   : > { %v1535_v22 = vmul.f32 %v2996_v9, %v2996_v9  ;;  %v1513_v28 = vsel %vm712_vm7, %v2996_v9, 0.0 }
 0x4f7   : > { %v1371_v34 = vld [vmem:[#allocation5 + $0x28] sm:$0xff]  ;;  %v1279_v35 = vpop.f32.mrf.mxu3  ;;  %v1514_v60 = vadd.f32 %v1513_v28, %v1512_v31 }
 0x4f8   : > { %v1379_v45 = vadd.f32 %v1371_v34, %v1357_v3  ;;  %1291 = vst.msk [vmem:[#allocation5 + $0x30] sm:$0xff] %vm712_vm7, %v1279_v35  ;;  %v1544_v38 = vsel %vm712_vm7, %v1535_v22, 0.0 }
 0x4f9   : > { %v1468_v46 = vld [vmem:[#allocation5 + $0x20] sm:$0xff]  ;;  %v1360_v48 = vpop.f32.mrf.mxu0  ;;  %v1545_v20 = vadd.f32 %v1544_v38, %v1543_v39 }
 0x4fa   : > { %1387 = vst.msk [vmem:[#allocation5 + $0x28] sm:$0xff] %vm712_vm7, %v1379_v45  ;;  %v1476_v47 = vadd.f32 %v1468_v46, %v1452_v33  ;;  %v1455_v49 = vpop.f32.mrf.mxu1 }
 0x4fb   : > { %v1494_v5 = vld [vmem:[#allocation5 + $0x18] sm:$0xff] }
 0x4fc   : > { %1484 = vst.msk [vmem:[#allocation5 + $0x20] sm:$0xff] %vm712_vm7, %v1476_v47  ;;  %v3000_v11 = vadd.f32 %v2378_v59, %v1494_v5 }
 0x4fe   : > { %v1536_v29 = vmul.f32 %v3000_v11, %v3000_v11  ;;  %v1515_v36 = vsel %vm712_vm7, %v3000_v11, 0.0 }
 0x4ff   : > { %v1372_v50 = vld [vmem:[#allocation5 + $0x30] sm:$0xff]  ;;  %v1282_v51 = vpop.f32.mrf.mxu3  ;;  %v1516_v41 = vadd.f32 %v1515_v36, %v1514_v60 }
 0x500   : > { %v1380_v53 = vadd.f32 %v1372_v50, %v1360_v48  ;;  %1292 = vst.msk [vmem:[#allocation5 + $0x38] sm:$0xff] %vm712_vm7, %v1282_v51  ;;  %v1546_v58 = vsel %vm712_vm7, %v1536_v29, 0.0 }
 0x501   : > { %v1469_v54 = vld [vmem:[#allocation5 + $0x28] sm:$0xff]  ;;  %v1363_v52 = vpop.f32.mrf.mxu0  ;;  %v1547_v44 = vadd.f32 %v1546_v58, %v1545_v20 }
 0x502   : > { %1388 = vst.msk [vmem:[#allocation5 + $0x30] sm:$0xff] %vm712_vm7, %v1380_v53  ;;  %v1477_v21 = vadd.f32 %v1469_v54, %v1455_v49  ;;  %v1458_v57 = vpop.f32.mrf.mxu1 }
 0x503   : > { %v1495_v14 = vld [vmem:[#allocation5 + $0x20] sm:$0xff] }
 0x504   : > { %1485 = vst.msk [vmem:[#allocation5 + $0x28] sm:$0xff] %vm712_vm7, %v1477_v21  ;;  %v3004_v18 = vadd.f32 %v2378_v59, %v1495_v14 }
 0x506   : > { %v1537_v37 = vmul.f32 %v3004_v18, %v3004_v18  ;;  %v1517_v13 = vsel %vm712_vm7, %v3004_v18, 0.0 }
 0x507   : > { %v1373_v56 = vld [vmem:[#allocation5 + $0x38] sm:$0xff]  ;;  %v1518_v16 = vadd.f32 %v1517_v13, %v1516_v41 }
 0x508   : > { %v1381_v62 = vadd.f32 %v1373_v56, %v1363_v52  ;;  %v1548_v61 = vsel %vm712_vm7, %v1537_v37, 0.0  ;;  %v2379_v37 = vld [vmem:[%s3299_s4 + $0x1] ss:$0 sm:$0xff] }
 0x509   : > { %v1470_v1 = vld [vmem:[#allocation5 + $0x30] sm:$0xff]  ;;  %v1549_v45 = vadd.f32 %v1548_v61, %v1547_v44 }
 0x50a   : > { %1389 = vst.msk [vmem:[#allocation5 + $0x38] sm:$0xff] %vm712_vm7, %v1381_v62  ;;  %v1478_v4 = vadd.f32 %v1470_v1, %v1458_v57  ;;  %v1461_v12 = vpop.f32.mrf.mxu1 }
 0x50b   : > { %v1496_v15 = vld [vmem:[#allocation5 + $0x28] sm:$0xff] }
 0x50c   : > { %1486 = vst.msk [vmem:[#allocation5 + $0x30] sm:$0xff] %vm712_vm7, %v1478_v4  ;;  %v3013_v27 = vadd.f32 %v2378_v59, %v1496_v15 }
 0x50e   : > { %v1538_v40 = vmul.f32 %v3013_v27, %v3013_v27  ;;  %v1519_v42 = vsel %vm712_vm7, %v3013_v27, 0.0 }
 0x50f   : > { %v1520_v35 = vadd.f32 %v1519_v42, %v1518_v16  ;;  %v2380_v42 = vld [vmem:[%s3299_s4 + $0x2] ss:$0 sm:$0xff] }
 0x510   : > { %v1550_v33 = vsel %vm712_vm7, %v1538_v40, 0.0 }
 0x511   : > { %v1471_v23 = vld [vmem:[#allocation5 + $0x38] sm:$0xff]  ;;  %v1551_v49 = vadd.f32 %v1550_v33, %v1549_v45 }
 0x512   : > { %v1479_v26 = vadd.f32 %v1471_v23, %v1461_v12 }
 0x513   : > { %v1497_v30 = vld [vmem:[#allocation5 + $0x30] sm:$0xff] }
 0x514   : > { %1487 = vst.msk [vmem:[#allocation5 + $0x38] sm:$0xff] %vm712_vm7, %v1479_v26  ;;  %v3021_v0 = vadd.f32 %v2378_v59, %v1497_v30 }
 0x516   : > { %v1539_v43 = vmul.f32 %v3021_v0, %v3021_v0  ;;  %v1521_v3 = vsel %vm712_vm7, %v3021_v0, 0.0 }
 0x517   : > { %v1522_v48 = vadd.f32 %v1521_v3, %v1520_v35 }
 0x518   : > { %v1552_v47 = vsel %vm712_vm7, %v1539_v43, 0.0 }
 0x519   : > { %v1553_v54 = vadd.f32 %v1552_v47, %v1551_v49 }
 0x51b   : > { %v1498_v34 = vld [vmem:[#allocation5 + $0x38] sm:$0xff] }
 0x51c   : > { %v1509_v46 = vadd.f32 %v2378_v59, %v1498_v34 }
 0x51e   : > { %v1523_v50 = vsel %vm712_vm7, %v1509_v46, 0.0  ;;  %v1540_v51 = vmul.f32 %v1509_v46, %v1509_v46 }
 0x51f   : > { %v1524_v53 = vadd.f32 %v1523_v50, %v1522_v48 }
 0x520   : > { %v1554_v21 = vsel %vm712_vm7, %v1540_v51, 0.0 }
 0x521   : > { %1525 = vadd.xlane.f32.xlu0 %v1524_v53  ;;  %v1555_v55 = vadd.f32 %v1554_v21, %v1553_v54 }
 0x523   : > { %1556 = vadd.xlane.f32.xlu2 %v1555_v55 }
 0x594   : > { %v1526_v52 = vpop.xlane.xlu0 %1525 }
 0x595   : > { %v1527_v56 = vrot.slane %v1526_v52, 4 }
 0x596   : > { %v1557_v57 = vpop.xlane.xlu2 %1556 }
 0x597   : > { %v1528_v62 = vadd.f32 %v1527_v56, %v1526_v52  ;;  %v1558_v63 = vrot.slane %v1557_v57, 4 }
 0x599   : > { %v1529_v59 = vrot.slane %v1528_v62, 2  ;;  %v1559_v1 = vadd.f32 %v1558_v63, %v1557_v57 }
 0x59b   : > { %v1530_v2 = vadd.f32 %v1529_v59, %v1528_v62  ;;  %v1560_v4 = vrot.slane %v1559_v1, 2 }
 0x59d   : > { %v1531_v5 = vrot.slane %v1530_v2, 1  ;;  %v1561_v14 = vadd.f32 %v1560_v4, %v1559_v1 }
 0x59f   : > { %v1532_v10 = vadd.f32 %v1531_v5, %v1530_v2  ;;  %v1562_v12 = vrot.slane %v1561_v14, 1 }
 0x5a1   : > { %v1564_v15 = vmul.f32 0.001953125, %v1532_v10  ;;  %v1563_v17 = vadd.f32 %v1562_v12, %v1561_v14 }
 0x5a3   : > { %v1565_v19 = vmul.f32 0.001953125, %v1563_v17  ;;  %v1566_v22 = vmul.f32 %v1564_v15, %v1564_v15  ;;  %v1572_v36 = vsub.f32 %v3000_v11, %v1564_v15  ;;  %v1569_v38 = vsub.f32 %v2993_v8, %v1564_v15 }
 0x5a4   : > { %v1571_v60 = vsub.f32 %v2996_v9, %v1564_v15  ;;  %v1574_v39 = vsub.f32 %v3013_v27, %v1564_v15  ;;  %v1570_v13 = vsub.f32 %v2990_v7, %v1564_v15  ;;  %v1576_v58 = vsub.f32 %v1509_v46, %v1564_v15 }
 0x5a5   : > { %v1567_v23 = vsub.f32 %v1565_v19, %v1566_v22  ;;  %v1575_v41 = vsub.f32 %v3021_v0, %v1564_v15  ;;  %v1573_v20 = vsub.f32 %v3004_v18, %v1564_v15 }
 0x5a7   : > { %v1568_v24 = vmax.f32 %v1567_v23, 0.0 }
 0x5a9   : > { %v1577_v25 = vadd.f32 1e-05, %v1568_v24 }
 0x5ab   : > { %2386 = vrsqrt.f32 %v1577_v25  ;;  %vm1584_vm10 = vweird.f32 %v1577_v25 }
 0x5b1   : > { %v2387_v26 = vpop.eup %2386 }
 0x5b2   : > { %v1579_v28 = vmul.f32 %v2387_v26, %v1577_v25  ;;  %vm1585_vm9 = vweird.f32 %v2387_v26 }
 0x5b3   : > { %vm1586_vm11 = vmor %vm1584_vm10, %vm1585_vm9 }
 0x5b4   : > { %v1580_v29 = vmul.f32 %v2387_v26, %v1579_v28 }
 0x5b6   : > { %v1581_v30 = vmul.f32 0.5, %v1580_v29 }
 0x5b8   : > { %v1582_v31 = vsub.f32 1.5, %v1581_v30 }
 0x5ba   : > { %v1583_v32 = vmul.f32 %v2387_v26, %v1582_v31 }
 0x5bc   : > { %v1587_v40 = vsel %vm1586_vm11, %v2387_v26, %v1583_v32 }
 0x5bd   : > { %v1591_v11 = vmul.f32 %v1587_v40, %v1572_v36  ;;  %v1588_v43 = vmul.f32 %v1587_v40, %v1569_v38  ;;  %v1590_v61 = vmul.f32 %v1587_v40, %v1571_v60  ;;  %v1593_v8 = vmul.f32 %v1587_v40, %v1574_v39 }
 0x5be   : > { %v1589_v16 = vmul.f32 %v1587_v40, %v1570_v13  ;;  %v1595_v9 = vmul.f32 %v1587_v40, %v1576_v58  ;;  %v1594_v44 = vmul.f32 %v1587_v40, %v1575_v41  ;;  %v1592_v27 = vmul.f32 %v1587_v40, %v1573_v20 }
 0x5bf   : > { %v1602_v3 = vmul.f32 %v2379_v37, %v1591_v11  ;;  %v1599_v7 = vmul.f32 %v2379_v37, %v1588_v43  ;;  %v1601_v33 = vmul.f32 %v2379_v37, %v1590_v61  ;;  %v1604_v34 = vmul.f32 %v2379_v37, %v1593_v8  ;;  %v1766_v8 = vld [vmem:[%s3300_s5 + $0x10] sm:$0xff] }
 0x5c0   : > { %v1600_v35 = vmul.f32 %v2379_v37, %v1589_v16  ;;  %v1606_v0 = vmul.f32 %v2379_v37, %v1595_v9  ;;  %v1605_v45 = vmul.f32 %v2379_v37, %v1594_v44  ;;  %v1603_v53 = vmul.f32 %v2379_v37, %v1592_v27  ;;  %v1769_v16 = vld [vmem:[%s3300_s5 + $0x28] sm:$0xff]  ;;  %1818 = vmatpush.msra.mxu2 %v1766_v8 }
 0x5c1   : > { %v1613_v18 = vadd.f32 %v2380_v42, %v1602_v3  ;;  %v1610_v46 = vadd.f32 %v2380_v42, %v1599_v7  ;;  %v1612_v47 = vadd.f32 %v2380_v42, %v1601_v33  ;;  %v1615_v48 = vadd.f32 %v2380_v42, %v1604_v34  ;;  %1899 = vmatpush.msra.mxu3 %v1769_v16  ;;  %v1765_v7 = vld [vmem:[%s3300_s5 + $0x8] sm:$0xff]  ;;  %v1772_v33 = vld [vmem:[%s3300_s5 + $0x40] sm:$0xff] }
 0x5c2   : > { %v1611_v49 = vadd.f32 %v2380_v42, %v1600_v35  ;;  %v1617_v50 = vadd.f32 %v2380_v42, %v1606_v0  ;;  %v1616_v51 = vadd.f32 %v2380_v42, %v1605_v45  ;;  %v1614_v10 = vadd.f32 %v2380_v42, %v1603_v53  ;;  %1819 = vmatpush.msra.mxu2 %v1765_v7  ;;  %v1768_v34 = vld [vmem:[%s3300_s5 + $0x20] sm:$0xff] }
 0x5c3   : > { %vm1621_vm12 = vcmp.ge.f32.partialorder %v1613_v18, 0.0  ;;  %v1629_v54 = vmul.f32 0.2, %v1613_v18  ;;  %vm1618_vm13 = vcmp.ge.f32.partialorder %v1610_v46, 0.0  ;;  %v1626_v21 = vmul.f32 0.2, %v1610_v46  ;;  %1996 = vmatpush.msra.mxu0 %v1772_v33  ;;  %1900 = vmatpush.msra.mxu3 %v1768_v34 }
 0x5c4   : > { %vm1620_vm14 = vcmp.ge.f32.partialorder %v1612_v47, 0.0  ;;  %v1628_v55 = vmul.f32 0.2, %v1612_v47  ;;  %vm1623_vm15 = vcmp.ge.f32.partialorder %v1615_v48, 0.0  ;;  %v1631_v52 = vmul.f32 0.2, %v1615_v48 }
 0x5c5   : > { %v3057_v56 = vsel %vm1621_vm12, %v1613_v18, %v1629_v54  ;;  %v1634_v57 = vsel %vm1618_vm13, %v1610_v46, %v1626_v21  ;;  %vm1619_vm1 = vcmp.ge.f32.partialorder %v1611_v49, 0.0  ;;  %v1627_v62 = vmul.f32 0.2, %v1611_v49  ;;  %v1764_v45 = vld [vmem:[%s3300_s5] sm:$0xff]  ;;  %v1771_v18 = vld [vmem:[%s3300_s5 + $0x38] sm:$0xff]  ;;  %1901 = vmatpush.msra.mxu3 %v1767_v6 }
 0x5c6   : > { %1698 = vrot.lane.b32.xlu2 %v3057_v56, %s2400_s9  ;;  %v1645_v63 = vrot.slane %v3057_v56, 7  ;;  %1692 = vrot.lane.b32.xlu1 %v1634_v57, %s2400_s9  ;;  %v1642_v59 = vrot.slane %v1634_v57, 7  ;;  %v1636_v1 = vsel %vm1620_vm14, %v1612_v47, %v1628_v55  ;;  %v1639_v2 = vsel %vm1623_vm15, %v1615_v48, %v1631_v52 }
 0x5c7   : > { %v1660_v4 = vrot.slane %v1636_v1, 1  ;;  %v1644_v5 = vrot.slane %v1636_v1, 7  ;;  %v1647_v14 = vrot.slane %v1639_v2, 7  ;;  %v1663_v17 = vrot.slane %v1639_v2, 1  ;;  %1820 = vmatpush.msra.mxu2 %v1764_v45  ;;  %1997 = vmatpush.msra.mxu0 %v1771_v18 }
 0x5c8   : > { %v1653_v12 = vsel %vm329_vm0, 0.0, %v1645_v63  ;;  %v1650_v15 = vsel %vm329_vm0, 0.0, %v1642_v59  ;;  %v1635_v19 = vsel %vm1619_vm1, %v1611_v49, %v1627_v62  ;;  %vm1625_vm3 = vcmp.ge.f32.partialorder %v1617_v50, 0.0  ;;  %v1773_v49 = vld [vmem:[#allocation3] sm:$0xff] }
 0x5c9   : > { %1679 = vst.msk [vmem:[#allocation3 + $0x20] sm:$0xff] %vm712_vm7, %v1653_v12  ;;  %v1668_v22 = vsel %vm517_vm2, 0.0, %v1660_v4  ;;  %v1652_v23 = vsel %vm329_vm0, 0.0, %v1644_v5  ;;  %v1655_v24 = vsel %vm329_vm0, 0.0, %v1647_v14  ;;  %v1643_v25 = vrot.slane %v1635_v19, 7  ;;  %2325 = vmatmul.msk.f32.vlgmr.msra.gmra.mxu2 %vm1108_vm5, %v1773_v49 }
 0x5ca   : > { %1676 = vst.msk [vmem:[#allocation3 + $0x8] sm:$0xff] %vm712_vm7, %v1650_v15  ;;  %1736 = vrot.lane.b32.xlu0 %v1668_v22, %s2405_s11  ;;  %v1633_v26 = vmul.f32 0.2, %v1617_v50  ;;  %vm1624_vm4 = vcmp.ge.f32.partialorder %v1616_v51, 0.0  ;;  %v1632_v28 = vmul.f32 0.2, %v1616_v51 }
 0x5cb   : > { %1678 = vst.msk [vmem:[#allocation3 + $0x18] sm:$0xff] %vm712_vm7, %v1652_v23  ;;  %vm1622_vm9 = vcmp.ge.f32.partialorder %v1614_v10, 0.0  ;;  %v1651_v29 = vsel %vm329_vm0, 0.0, %v1643_v25  ;;  %v1630_v31 = vmul.f32 0.2, %v1614_v10  ;;  %v1671_v32 = vsel %vm517_vm2, 0.0, %v1663_v17 }
 0x5cc   : > { %1681 = vst.msk [vmem:[#allocation3 + $0x30] sm:$0xff] %vm712_vm7, %v1655_v24  ;;  %v1641_v30 = vsel %vm1625_vm3, %v1617_v50, %v1633_v26  ;;  %v1640_v37 = vsel %vm1624_vm4, %v1616_v51, %v1632_v28  ;;  %v1658_v11 = vrot.slane %v1634_v57, 1  ;;  %v1659_v43 = vrot.slane %v1635_v19, 1  ;;  %v1770_v50 = vld [vmem:[%s3300_s5 + $0x30] sm:$0xff]  ;;  %v1958_v22 = vld [vmem:[#allocation3 + $0x48] sm:$0xff] }
 0x5cd   : > { %1677 = vst.msk [vmem:[#allocation3 + $0x10] sm:$0xff] %vm712_vm7, %v1651_v29  ;;  %v1649_v36 = vrot.slane %v1641_v30, 7  ;;  %v1648_v38 = vrot.slane %v1640_v37, 7  ;;  %v1638_v60 = vsel %vm1622_vm9, %v1614_v10, %v1630_v31  ;;  %v1664_v41 = vrot.slane %v1640_v37, 1  ;;  %1998 = vmatpush.msra.mxu0 %v1770_v50 }
 0x5ce   : > { %1742 = vrot.lane.b32.xlu2 %v1671_v32, %s2405_s11  ;;  %1694 = vrot.lane.b32.xlu1 %v1635_v19, %s2400_s9  ;;  %v1646_v13 = vrot.slane %v1638_v60, 7  ;;  %v1666_v42 = vsel %vm517_vm2, 0.0, %v1658_v11  ;;  %v1667_v61 = vsel %vm517_vm2, 0.0, %v1659_v43  ;;  %v1661_v9 = vrot.slane %v3057_v56, 1 }
 0x5cf   : > { %v1657_v39 = vsel %vm329_vm0, 0.0, %v1649_v36  ;;  %v1656_v40 = vsel %vm329_vm0, 0.0, %v1648_v38  ;;  %v1672_v20 = vsel %vm517_vm2, 0.0, %v1664_v41  ;;  %v1662_v27 = vrot.slane %v1638_v60, 1 }
 0x5d0   : > { %1683 = vst.msk [vmem:[#allocation3 + $0x40] sm:$0xff] %vm712_vm7, %v1657_v39  ;;  %v1654_v58 = vsel %vm329_vm0, 0.0, %v1646_v13  ;;  %v1669_v44 = vsel %vm517_vm2, 0.0, %v1661_v9  ;;  %v1665_v35 = vrot.slane %v1641_v30, 1 }
 0x5d1   : > { %1682 = vst.msk [vmem:[#allocation3 + $0x38] sm:$0xff] %vm712_vm7, %v1656_v40  ;;  %v1670_v3 = vsel %vm517_vm2, 0.0, %v1662_v27 }
 0x5d2   : > { %1702 = vrot.lane.b32.xlu0 %v1639_v2, %s2400_s9  ;;  %1680 = vst.msk [vmem:[#allocation3 + $0x28] sm:$0xff] %vm712_vm7, %v1654_v58  ;;  %v1673_v0 = vsel %vm517_vm2, 0.0, %v1665_v35 }
 0x5d6   : > { %1706 = vrot.lane.b32.xlu2 %v1641_v30, %s2400_s9  ;;  %1696 = vrot.lane.b32.xlu1 %v1636_v1, %s2400_s9 }
 0x5da   : > { %1744 = vrot.lane.b32.xlu0 %v1672_v20, %s2405_s11 }
 0x5de   : > { %1732 = vrot.lane.b32.xlu1 %v1666_v42, %s2405_s11 }
 0x5e6   : > { %1734 = vrot.lane.b32.xlu1 %v1667_v61, %s2405_s11 }
 0x5ee   : > { %1700 = vrot.lane.b32.xlu1 %v1638_v60, %s2400_s9 }
 0x5f6   : > { %1738 = vrot.lane.b32.xlu1 %v1669_v44, %s2405_s11 }
 0x5fe   : > { %1740 = vrot.lane.b32.xlu1 %v1670_v3, %s2405_s11 }
 0x606   : > { %1704 = vrot.lane.b32.xlu1 %v1640_v37, %s2400_s9 }
 0x60e   : > { %1746 = vrot.lane.b32.xlu1 %v1673_v0, %s2405_s11 }
 0x620   : > { %v1699_v46 = vpop.permute.xlu2 %1698 }
 0x621   : > { %1719 = vst.msk [vmem:[#allocation3 + $0x20] sm:$0xff] %vm1153_vm6, %v1699_v46 }
 0x628   : > { %v1743_v47 = vpop.permute.xlu2 %1742 }
 0x630   : > { %v1707_v48 = vpop.permute.xlu2 %1706 }
 0x631   : > { %1723 = vst.msk [vmem:[#allocation3 + $0x40] sm:$0xff] %vm1153_vm6, %v1707_v48 }
 0x638   : > { %v1693_v51 = vpop.permute.xlu1 %1692 }
 0x639   : > { %1716 = vst.msk [vmem:[#allocation3 + $0x8] sm:$0xff] %vm1153_vm6, %v1693_v51 }
 0x63c   : > { %v1737_v53 = vpop.permute.xlu0 %1736 }
 0x640   : > { %v1695_v54 = vpop.permute.xlu1 %1694 }
 0x641   : > { %1717 = vst.msk [vmem:[#allocation3 + $0x10] sm:$0xff] %vm1153_vm6, %v1695_v54 }
 0x644   : > { %v1703_v21 = vpop.permute.xlu0 %1702 }
 0x645   : > { %1721 = vst.msk [vmem:[#allocation3 + $0x30] sm:$0xff] %vm1153_vm6, %v1703_v21 }
 0x646   : > { %1761 = vst.msk [vmem:[#allocation3 + $0x30] sm:$0xff] %vm1194_vm8, %v1743_v47 }
 0x648   : > { %v1697_v55 = vpop.permute.xlu1 %1696 }
 0x649   : > { %1718 = vst.msk [vmem:[#allocation3 + $0x18] sm:$0xff] %vm1153_vm6, %v1697_v55 }
 0x64a   : > { %1758 = vst.msk [vmem:[#allocation3 + $0x18] sm:$0xff] %vm1194_vm8, %v1737_v53 }
 0x64c   : > { %v1745_v10 = vpop.permute.xlu0 %1744  ;;  %v1822_v23 = vpop.f32.mrf.mxu2 }
 0x64d   : > { %v1779_v15 = vld [vmem:[#allocation3 + $0x30] sm:$0xff]  ;;  %1846 = vst.msk [vmem:[#allocation5] sm:$0xff] %vm712_vm7, %v1822_v23 }
 0x650   : > { %v1733_v52 = vpop.permute.xlu1 %1732 }
 0x651   : > { %1756 = vst.msk [vmem:[#allocation3 + $0x8] sm:$0xff] %vm1194_vm8, %v1733_v52  ;;  %v1776_v1 = vld [vmem:[#allocation3 + $0x18] sm:$0xff] }
 0x654   : > { %v1927_v24 = vld [vmem:[#allocation5] sm:$0xff] }
 0x658   : > { %v1735_v56 = vpop.permute.xlu1 %1734  ;;  %v1774_v57 = vld [vmem:[#allocation3 + $0x8] sm:$0xff] }
 0x659   : > { %1757 = vst.msk [vmem:[#allocation3 + $0x10] sm:$0xff] %vm1194_vm8, %v1735_v56  ;;  %2326 = vmatmul.msk.f32.gmra.mxu2 %vm1108_vm5, %v1774_v57  ;;  %2333 = vmatmul.msk.f32.vlgmr.msra.gmra.mxu3 %vm1108_vm5, %v1774_v57 }
 0x660   : > { %v1701_v62 = vpop.permute.xlu1 %1700  ;;  %v1775_v63 = vld [vmem:[#allocation3 + $0x10] sm:$0xff] }
 0x661   : > { %1720 = vst.msk [vmem:[#allocation3 + $0x28] sm:$0xff] %vm1153_vm6, %v1701_v62  ;;  %2327 = vmatmul.msk.f32.gmra.mxu2 %vm1108_vm5, %v1775_v63  ;;  %2334 = vmatmul.msk.f32.gmra.mxu3 %vm1108_vm5, %v1775_v63 }
 0x662   : > { %2341 = vmatmul.msk.f32.vlgmr.msra.gmra.mxu0 %vm1108_vm5, %v1775_v63  ;;  %v2381_v63 = vld [vmem:[%s3301_s6] ss:$0 sm:$0xff] }
 0x668   : > { %v1739_v59 = vpop.permute.xlu1 %1738 }
 0x669   : > { %1759 = vst.msk [vmem:[#allocation3 + $0x20] sm:$0xff] %vm1194_vm8, %v1739_v59  ;;  %2328 = vmatmul.msk.f32.gmra.mxu2 %vm1108_vm5, %v1776_v1  ;;  %2335 = vmatmul.msk.f32.gmra.mxu3 %vm1108_vm5, %v1776_v1 }
 0x66a   : > { %2342 = vmatmul.msk.f32.gmra.mxu0 %vm1108_vm5, %v1776_v1 }
 0x670   : > { %v1741_v2 = vpop.permute.xlu1 %1740  ;;  %v1777_v4 = vld [vmem:[#allocation3 + $0x20] sm:$0xff] }
 0x671   : > { %1760 = vst.msk [vmem:[#allocation3 + $0x28] sm:$0xff] %vm1194_vm8, %v1741_v2  ;;  %2329 = vmatmul.msk.f32.gmra.mxu2 %vm1108_vm5, %v1777_v4  ;;  %2336 = vmatmul.msk.f32.gmra.mxu3 %vm1108_vm5, %v1777_v4 }
 0x672   : > { %2343 = vmatmul.msk.f32.gmra.mxu0 %vm1108_vm5, %v1777_v4 }
 0x678   : > { %v1705_v5 = vpop.permute.xlu1 %1704  ;;  %v1778_v14 = vld [vmem:[#allocation3 + $0x28] sm:$0xff] }
 0x679   : > { %1722 = vst.msk [vmem:[#allocation3 + $0x38] sm:$0xff] %vm1153_vm6, %v1705_v5  ;;  %2330 = vmatmul.msk.f32.gmra.mxu2 %vm1108_vm5, %v1778_v14  ;;  %2337 = vmatmul.msk.f32.gmra.mxu3 %vm1108_vm5, %v1778_v14 }
 0x67a   : > { %1762 = vst.msk [vmem:[#allocation3 + $0x38] sm:$0xff] %vm1194_vm8, %v1745_v10  ;;  %2344 = vmatmul.msk.f32.gmra.mxu0 %vm1108_vm5, %v1778_v14 }
 0x680   : > { %v1747_v12 = vpop.permute.xlu1 %1746 }
 0x681   : > { %1763 = vst.msk [vmem:[#allocation3 + $0x40] sm:$0xff] %vm1194_vm8, %v1747_v12  ;;  %2331 = vmatmul.msk.f32.gmra.mxu2 %vm1108_vm5, %v1779_v15  ;;  %2338 = vmatmul.msk.f32.gmra.mxu3 %vm1108_vm5, %v1779_v15  ;;  %v1780_v17 = vld [vmem:[#allocation3 + $0x38] sm:$0xff] }
 0x682   : > { %2345 = vmatmul.msk.f32.gmra.mxu0 %vm1108_vm5, %v1779_v15 }
 0x688   : > { %v1861_v19 = vld [vmem:[#allocation3 + $0x40] sm:$0xff] }
 0x689   : > { %2332 = vmatmul.msk.f32.gmra.mxu2 %vm1108_vm5, %v1780_v17  ;;  %2339 = vmatmul.msk.f32.gmra.mxu3 %vm1108_vm5, %v1780_v17 }
 0x68a   : > { %2346 = vmatmul.msk.f32.gmra.mxu0 %vm1108_vm5, %v1780_v17 }
 0x691   : > { %2340 = vmatmul.msk.f32.gmra.mxu3 %vm1108_vm5, %v1861_v19 }
 0x692   : > { %2347 = vmatmul.msk.f32.gmra.mxu0 %vm1108_vm5, %v1861_v19 }
 0x69a   : > { %2348 = vmatmul.msk.f32.gmra.mxu0 %vm1108_vm5, %v1958_v22 }
 0x6dc   : > { %v1825_v25 = vpop.f32.mrf.mxu2  ;;  %v1903_v26 = vpop.f32.mrf.mxu3 }
 0x6dd   : > { %1847 = vst.msk [vmem:[#allocation5 + $0x8] sm:$0xff] %vm712_vm7, %v1825_v25  ;;  %v1935_v28 = vadd.f32 %v1927_v24, %v1903_v26 }
 0x6df   : > { %1943 = vst.msk [vmem:[#allocation5] sm:$0xff] %vm712_vm7, %v1935_v28  ;;  %v2000_v29 = vpop.f32.mrf.mxu0 }
 0x6e4   : > { %v1828_v30 = vpop.f32.mrf.mxu2  ;;  %v1906_v31 = vpop.f32.mrf.mxu3  ;;  %v1928_v32 = vld [vmem:[#allocation5 + $0x8] sm:$0xff] }
 0x6e5   : > { %1848 = vst.msk [vmem:[#allocation5 + $0x10] sm:$0xff] %vm712_vm7, %v1828_v30  ;;  %v1936_v36 = vadd.f32 %v1928_v32, %v1906_v31 }
 0x6e6   : > { %v2024_v37 = vld [vmem:[#allocation5] sm:$0xff] }
 0x6e7   : > { %v2032_v38 = vadd.f32 %v2024_v37, %v2000_v29  ;;  %1944 = vst.msk [vmem:[#allocation5 + $0x8] sm:$0xff] %vm712_vm7, %v1936_v36  ;;  %v2003_v60 = vpop.f32.mrf.mxu0 }
 0x6e9   : > { %2040 = vst.msk [vmem:[#allocation5] sm:$0xff] %vm712_vm7, %v2032_v38 }
 0x6ec   : > { %v1831_v39 = vpop.f32.mrf.mxu2  ;;  %v1909_v13 = vpop.f32.mrf.mxu3  ;;  %v1929_v40 = vld [vmem:[#allocation5 + $0x10] sm:$0xff] }
 0x6ed   : > { %1849 = vst.msk [vmem:[#allocation5 + $0x18] sm:$0xff] %vm712_vm7, %v1831_v39  ;;  %v1937_v58 = vadd.f32 %v1929_v40, %v1909_v13 }
 0x6ee   : > { %v2025_v41 = vld [vmem:[#allocation5 + $0x8] sm:$0xff] }
 0x6ef   : > { %v2033_v20 = vadd.f32 %v2025_v41, %v2003_v60  ;;  %1945 = vst.msk [vmem:[#allocation5 + $0x10] sm:$0xff] %vm712_vm7, %v1937_v58  ;;  %v2006_v11 = vpop.f32.mrf.mxu0 }
 0x6f0   : > { %v2051_v1 = vld [vmem:[#allocation5] sm:$0xff] }
 0x6f1   : > { %2041 = vst.msk [vmem:[#allocation5 + $0x8] sm:$0xff] %vm712_vm7, %v2033_v20  ;;  %v3212_v12 = vadd.f32 %v2381_v63, %v2051_v1 }
 0x6f3   : > { %v2093_v25 = vmul.f32 %v3212_v12, %v3212_v12  ;;  %v2070_v31 = vsel %vm712_vm7, %v3212_v12, 0.0 }
 0x6f4   : > { %v1834_v42 = vpop.f32.mrf.mxu2  ;;  %v1912_v43 = vpop.f32.mrf.mxu3  ;;  %v1930_v61 = vld [vmem:[#allocation5 + $0x18] sm:$0xff] }
 0x6f5   : > { %1850 = vst.msk [vmem:[#allocation5 + $0x20] sm:$0xff] %vm712_vm7, %v1834_v42  ;;  %v1938_v8 = vadd.f32 %v1930_v61, %v1912_v43  ;;  %v2101_v40 = vsel %vm712_vm7, %v2093_v25, 0.0 }
 0x6f6   : > { %v2026_v16 = vld [vmem:[#allocation5 + $0x10] sm:$0xff] }
 0x6f7   : > { %v2034_v9 = vadd.f32 %v2026_v16, %v2006_v11  ;;  %1946 = vst.msk [vmem:[#allocation5 + $0x18] sm:$0xff] %vm712_vm7, %v1938_v8  ;;  %v2009_v44 = vpop.f32.mrf.mxu0 }
 0x6f8   : > { %v2052_v52 = vld [vmem:[#allocation5 + $0x8] sm:$0xff] }
 0x6f9   : > { %2042 = vst.msk [vmem:[#allocation5 + $0x10] sm:$0xff] %vm712_vm7, %v2034_v9  ;;  %v3209_v5 = vadd.f32 %v2381_v63, %v2052_v52 }
 0x6fb   : > { %v2094_v19 = vmul.f32 %v3209_v5, %v3209_v5  ;;  %v2071_v28 = vsel %vm712_vm7, %v3209_v5, 0.0 }
 0x6fc   : > { %v1837_v27 = vpop.f32.mrf.mxu2  ;;  %v1915_v3 = vpop.f32.mrf.mxu3  ;;  %v1931_v7 = vld [vmem:[#allocation5 + $0x20] sm:$0xff]  ;;  %v2072_v13 = vadd.f32 %v2071_v28, %v2070_v31 }
 0x6fd   : > { %1851 = vst.msk [vmem:[#allocation5 + $0x28] sm:$0xff] %vm712_vm7, %v1837_v27  ;;  %v1939_v33 = vadd.f32 %v1931_v7, %v1915_v3  ;;  %v2102_v32 = vsel %vm712_vm7, %v2094_v19, 0.0 }
 0x6fe   : > { %v2027_v34 = vld [vmem:[#allocation5 + $0x18] sm:$0xff]  ;;  %v2103_v43 = vadd.f32 %v2102_v32, %v2101_v40 }
 0x6ff   : > { %v2035_v35 = vadd.f32 %v2027_v34, %v2009_v44  ;;  %1947 = vst.msk [vmem:[#allocation5 + $0x20] sm:$0xff] %vm712_vm7, %v1939_v33  ;;  %v2012_v0 = vpop.f32.mrf.mxu0 }
 0x700   : > { %v2053_v4 = vld [vmem:[#allocation5 + $0x10] sm:$0xff] }
 0x701   : > { %2043 = vst.msk [vmem:[#allocation5 + $0x18] sm:$0xff] %vm712_vm7, %v2035_v35  ;;  %v3215_v15 = vadd.f32 %v2381_v63, %v2053_v4 }
 0x703   : > { %v2095_v29 = vmul.f32 %v3215_v15, %v3215_v15  ;;  %v2073_v38 = vsel %vm712_vm7, %v3215_v15, 0.0 }
 0x704   : > { %v1840_v45 = vpop.f32.mrf.mxu2  ;;  %v1918_v18 = vpop.f32.mrf.mxu3  ;;  %v1932_v46 = vld [vmem:[#allocation5 + $0x28] sm:$0xff]  ;;  %v2074_v42 = vadd.f32 %v2073_v38, %v2072_v13 }
 0x705   : > { %1852 = vst.msk [vmem:[#allocation5 + $0x30] sm:$0xff] %vm712_vm7, %v1840_v45  ;;  %v1940_v6 = vadd.f32 %v1932_v46, %v1918_v18  ;;  %v2104_v11 = vsel %vm712_vm7, %v2095_v29, 0.0 }
 0x706   : > { %v2028_v47 = vld [vmem:[#allocation5 + $0x20] sm:$0xff]  ;;  %v2105_v44 = vadd.f32 %v2104_v11, %v2103_v43 }
 0x707   : > { %v2036_v48 = vadd.f32 %v2028_v47, %v2012_v0  ;;  %1948 = vst.msk [vmem:[#allocation5 + $0x28] sm:$0xff] %vm712_vm7, %v1940_v6  ;;  %v2015_v49 = vpop.f32.mrf.mxu0 }
 0x708   : > { %v2054_v10 = vld [vmem:[#allocation5 + $0x18] sm:$0xff] }
 0x709   : > { %2044 = vst.msk [vmem:[#allocation5 + $0x20] sm:$0xff] %vm712_vm7, %v2036_v48  ;;  %v3219_v22 = vadd.f32 %v2381_v63, %v2054_v10 }
 0x70b   : > { %v2096_v60 = vmul.f32 %v3219_v22, %v3219_v22  ;;  %v2075_v41 = vsel %vm712_vm7, %v3219_v22, 0.0 }
 0x70c   : > { %v1843_v50 = vpop.f32.mrf.mxu2  ;;  %v1921_v51 = vpop.f32.mrf.mxu3  ;;  %v1933_v53 = vld [vmem:[#allocation5 + $0x30] sm:$0xff]  ;;  %v2076_v9 = vadd.f32 %v2075_v41, %v2074_v42  ;;  %v2382_v41 = vld [vmem:[%s3301_s6 + $0x1] ss:$0 sm:$0xff] }
 0x70d   : > { %1853 = vst.msk [vmem:[#allocation5 + $0x38] sm:$0xff] %vm712_vm7, %v1843_v50  ;;  %v1941_v54 = vadd.f32 %v1933_v53, %v1921_v51  ;;  %v2106_v16 = vsel %vm712_vm7, %v2096_v60, 0.0 }
 0x70e   : > { %v2029_v21 = vld [vmem:[#allocation5 + $0x28] sm:$0xff]  ;;  %v2107_v34 = vadd.f32 %v2106_v16, %v2105_v44 }
 0x70f   : > { %v2037_v55 = vadd.f32 %v2029_v21, %v2015_v49  ;;  %1949 = vst.msk [vmem:[#allocation5 + $0x30] sm:$0xff] %vm712_vm7, %v1941_v54  ;;  %v2018_v56 = vpop.f32.mrf.mxu0 }
 0x710   : > { %v2055_v17 = vld [vmem:[#allocation5 + $0x20] sm:$0xff] }
 0x711   : > { %2045 = vst.msk [vmem:[#allocation5 + $0x28] sm:$0xff] %vm712_vm7, %v2037_v55  ;;  %v3223_v26 = vadd.f32 %v2381_v63, %v2055_v17 }
 0x713   : > { %v2097_v20 = vmul.f32 %v3223_v26, %v3223_v26  ;;  %v2077_v61 = vsel %vm712_vm7, %v3223_v26, 0.0 }
 0x714   : > { %v1924_v57 = vpop.f32.mrf.mxu3  ;;  %v1934_v62 = vld [vmem:[#allocation5 + $0x38] sm:$0xff]  ;;  %v2078_v33 = vadd.f32 %v2077_v61, %v2076_v9 }
 0x715   : > { %v1942_v59 = vadd.f32 %v1934_v62, %v1924_v57  ;;  %v2108_v7 = vsel %vm712_vm7, %v2097_v20, 0.0  ;;  %v2383_v9 = vld [vmem:[%s3301_s6 + $0x2] ss:$0 sm:$0xff] }
 0x716   : > { %v2030_v2 = vld [vmem:[#allocation5 + $0x30] sm:$0xff]  ;;  %v2109_v46 = vadd.f32 %v2108_v7, %v2107_v34 }
 0x717   : > { %v2038_v14 = vadd.f32 %v2030_v2, %v2018_v56  ;;  %1950 = vst.msk [vmem:[#allocation5 + $0x38] sm:$0xff] %vm712_vm7, %v1942_v59  ;;  %v2021_v23 = vpop.f32.mrf.mxu0 }
 0x718   : > { %v2056_v24 = vld [vmem:[#allocation5 + $0x28] sm:$0xff] }
 0x719   : > { %2046 = vst.msk [vmem:[#allocation5 + $0x30] sm:$0xff] %vm712_vm7, %v2038_v14  ;;  %v3232_v37 = vadd.f32 %v2381_v63, %v2056_v24 }
 0x71b   : > { %v2098_v8 = vmul.f32 %v3232_v37, %v3232_v37  ;;  %v2079_v27 = vsel %vm712_vm7, %v3232_v37, 0.0 }
 0x71c   : > { %v2080_v18 = vadd.f32 %v2079_v27, %v2078_v33 }
 0x71d   : > { %v2110_v0 = vsel %vm712_vm7, %v2098_v8, 0.0 }
 0x71e   : > { %v2031_v30 = vld [vmem:[#allocation5 + $0x38] sm:$0xff]  ;;  %v2111_v49 = vadd.f32 %v2110_v0, %v2109_v46 }
 0x71f   : > { %v2039_v36 = vadd.f32 %v2031_v30, %v2021_v23 }
 0x720   : > { %v2057_v39 = vld [vmem:[#allocation5 + $0x30] sm:$0xff] }
 0x721   : > { %2047 = vst.msk [vmem:[#allocation5 + $0x38] sm:$0xff] %vm712_vm7, %v2039_v36  ;;  %v3240_v58 = vadd.f32 %v2381_v63, %v2057_v39 }
 0x723   : > { %v2099_v3 = vmul.f32 %v3240_v58, %v3240_v58  ;;  %v2081_v35 = vsel %vm712_vm7, %v3240_v58, 0.0 }
 0x724   : > { %v2082_v48 = vadd.f32 %v2081_v35, %v2080_v18 }
 0x725   : > { %v2112_v47 = vsel %vm712_vm7, %v2099_v3, 0.0 }
 0x726   : > { %v2113_v54 = vadd.f32 %v2112_v47, %v2111_v49 }
 0x728   : > { %v2058_v45 = vld [vmem:[#allocation5 + $0x38] sm:$0xff] }
 0x729   : > { %v2069_v6 = vadd.f32 %v2381_v63, %v2058_v45 }
 0x72b   : > { %v2083_v50 = vsel %vm712_vm7, %v2069_v6, 0.0  ;;  %v2100_v51 = vmul.f32 %v2069_v6, %v2069_v6 }
 0x72c   : > { %v2084_v53 = vadd.f32 %v2083_v50, %v2082_v48 }
 0x72d   : > { %v2114_v21 = vsel %vm712_vm7, %v2100_v51, 0.0 }
 0x72e   : > { %2085 = vadd.xlane.f32.xlu0 %v2084_v53  ;;  %v2115_v55 = vadd.f32 %v2114_v21, %v2113_v54 }
 0x730   : > { %2116 = vadd.xlane.f32.xlu2 %v2115_v55 }
 0x7a1   : > { %v2086_v52 = vpop.xlane.xlu0 %2085 }
 0x7a2   : > { %v2087_v56 = vrot.slane %v2086_v52, 4 }
 0x7a3   : > { %v2117_v57 = vpop.xlane.xlu2 %2116 }
 0x7a4   : > { %v2088_v62 = vadd.f32 %v2087_v56, %v2086_v52  ;;  %v2118_v59 = vrot.slane %v2117_v57, 4 }
 0x7a6   : > { %v2089_v63 = vrot.slane %v2088_v62, 2  ;;  %v2119_v1 = vadd.f32 %v2118_v59, %v2117_v57 }
 0x7a8   : > { %v2090_v2 = vadd.f32 %v2089_v63, %v2088_v62  ;;  %v2120_v4 = vrot.slane %v2119_v1, 2 }
 0x7aa   : > { %v2091_v14 = vrot.slane %v2090_v2, 1  ;;  %v2121_v10 = vadd.f32 %v2120_v4, %v2119_v1 }
 0x7ac   : > { %v2092_v17 = vadd.f32 %v2091_v14, %v2090_v2  ;;  %v2122_v19 = vrot.slane %v2121_v10, 1 }
 0x7ae   : > { %v2124_v23 = vmul.f32 0.001953125, %v2092_v17  ;;  %v2123_v24 = vadd.f32 %v2122_v19, %v2121_v10 }
 0x7b0   : > { %v2125_v25 = vmul.f32 0.001953125, %v2123_v24  ;;  %v2126_v28 = vmul.f32 %v2124_v23, %v2124_v23  ;;  %v2129_v13 = vsub.f32 %v3212_v12, %v2124_v23  ;;  %v2130_v20 = vsub.f32 %v3209_v5, %v2124_v23 }
 0x7b1   : > { %v2131_v11 = vsub.f32 %v3215_v15, %v2124_v23  ;;  %v2132_v42 = vsub.f32 %v3219_v22, %v2124_v23  ;;  %v2133_v43 = vsub.f32 %v3223_v26, %v2124_v23  ;;  %v2134_v61 = vsub.f32 %v3232_v37, %v2124_v23 }
 0x7b2   : > { %v2127_v29 = vsub.f32 %v2125_v25, %v2126_v28  ;;  %v2135_v8 = vsub.f32 %v3240_v58, %v2124_v23  ;;  %v2136_v12 = vsub.f32 %v2069_v6, %v2124_v23 }
 0x7b4   : > { %v2128_v30 = vmax.f32 %v2127_v29, 0.0 }
 0x7b6   : > { %v2137_v31 = vadd.f32 1e-05, %v2128_v30 }
 0x7b8   : > { %2388 = vrsqrt.f32 %v2137_v31  ;;  %vm2144_vm2 = vweird.f32 %v2137_v31 }
 0x7be   : > { %v2389_v32 = vpop.eup %2388 }
 0x7bf   : > { %v2139_v36 = vmul.f32 %v2389_v32, %v2137_v31  ;;  %vm2145_vm0 = vweird.f32 %v2389_v32 }
 0x7c0   : > { %vm2146_vm5 = vmor %vm2144_vm2, %vm2145_vm0 }
 0x7c1   : > { %v2140_v38 = vmul.f32 %v2389_v32, %v2139_v36 }
 0x7c3   : > { %v2141_v60 = vmul.f32 0.5, %v2140_v38 }
 0x7c5   : > { %v2142_v39 = vsub.f32 1.5, %v2141_v60 }
 0x7c7   : > { %v2143_v40 = vmul.f32 %v2389_v32, %v2142_v39 }
 0x7c9   : > { %v2147_v16 = vsel %vm2146_vm5, %v2389_v32, %v2143_v40 }
 0x7ca   : > { %v2148_v44 = vmul.f32 %v2147_v16, %v2129_v13  ;;  %v2149_v27 = vmul.f32 %v2147_v16, %v2130_v20  ;;  %v2150_v5 = vmul.f32 %v2147_v16, %v2131_v11  ;;  %v2151_v3 = vmul.f32 %v2147_v16, %v2132_v42 }
 0x7cb   : > { %v2152_v15 = vmul.f32 %v2147_v16, %v2133_v43  ;;  %v2153_v7 = vmul.f32 %v2147_v16, %v2134_v61  ;;  %v2154_v22 = vmul.f32 %v2147_v16, %v2135_v8  ;;  %v2155_v33 = vmul.f32 %v2147_v16, %v2136_v12 }
 0x7cc   : > { %v2159_v26 = vmul.f32 %v2382_v41, %v2148_v44  ;;  %v2160_v34 = vmul.f32 %v2382_v41, %v2149_v27  ;;  %v2161_v35 = vmul.f32 %v2382_v41, %v2150_v5  ;;  %v2162_v37 = vmul.f32 %v2382_v41, %v2151_v3 }
 0x7cd   : > { %v2163_v0 = vmul.f32 %v2382_v41, %v2152_v15  ;;  %v2164_v58 = vmul.f32 %v2382_v41, %v2153_v7  ;;  %v2165_v45 = vmul.f32 %v2382_v41, %v2154_v22  ;;  %v2166_v18 = vmul.f32 %v2382_v41, %v2155_v33 }
 0x7ce   : > { %v2170_v46 = vadd.f32 %v2383_v9, %v2159_v26  ;;  %v2171_v6 = vadd.f32 %v2383_v9, %v2160_v34  ;;  %v2172_v47 = vadd.f32 %v2383_v9, %v2161_v35  ;;  %v2173_v48 = vadd.f32 %v2383_v9, %v2162_v37 }
 0x7cf   : > { %v2174_v49 = vadd.f32 %v2383_v9, %v2163_v0  ;;  %v2175_v50 = vadd.f32 %v2383_v9, %v2164_v58  ;;  %v2176_v51 = vadd.f32 %v2383_v9, %v2165_v45  ;;  %v2177_v53 = vadd.f32 %v2383_v9, %v2166_v18 }
 0x7d0   : > { %vm2178_vm6 = vcmp.ge.f32.partialorder %v2170_v46, 0.0  ;;  %vm2179_vm8 = vcmp.ge.f32.partialorder %v2171_v6, 0.0  ;;  %vm2180_vm10 = vcmp.ge.f32.partialorder %v2172_v47, 0.0  ;;  %vm2181_vm11 = vcmp.ge.f32.partialorder %v2173_v48, 0.0 }
 0x7d1   : > { %vm2182_vm12 = vcmp.ge.f32.partialorder %v2174_v49, 0.0  ;;  %v2186_v54 = vmul.f32 0.2, %v2170_v46  ;;  %v2187_v21 = vmul.f32 0.2, %v2171_v6  ;;  %vm2183_vm13 = vcmp.ge.f32.partialorder %v2175_v50, 0.0 }
 0x7d2   : > { %v2188_v55 = vmul.f32 0.2, %v2172_v47  ;;  %v2189_v52 = vmul.f32 0.2, %v2173_v48  ;;  %v2190_v56 = vmul.f32 0.2, %v2174_v49 }
 0x7d3   : > { %v2191_v57 = vmul.f32 0.2, %v2175_v50  ;;  %v2192_v62 = vmul.f32 0.2, %v2176_v51  ;;  %v2194_v59 = vsel %vm2178_vm6, %v2170_v46, %v2186_v54  ;;  %v2195_v63 = vsel %vm2179_vm8, %v2171_v6, %v2187_v21 }
 0x7d4   : > { %vm2184_vm14 = vcmp.ge.f32.partialorder %v2176_v51, 0.0  ;;  %v2193_v1 = vmul.f32 0.2, %v2177_v53  ;;  %v2196_v2 = vsel %vm2180_vm10, %v2172_v47, %v2188_v55  ;;  %v2197_v4 = vsel %vm2181_vm11, %v2173_v48, %v2189_v52  ;;  %2202 = vst.msk [vmem:[%s278_s27] sm:$0xff] %vm712_vm7, %v2194_v59 }
 0x7d5   : > { %vm2185_vm15 = vcmp.ge.f32.partialorder %v2177_v53, 0.0  ;;  %v2198_v14 = vsel %vm2182_vm12, %v2174_v49, %v2190_v56  ;;  %2203 = vst.msk [vmem:[%s278_s27 + $0x8] sm:$0xff] %vm712_vm7, %v2195_v63  ;;  %v2199_v10 = vsel %vm2183_vm13, %v2175_v50, %v2191_v57  ;;  %v2200_v17 = vsel %vm2184_vm14, %v2176_v51, %v2192_v62 }
 0x7d6   : > { %2204 = vst.msk [vmem:[%s278_s27 + $0x10] sm:$0xff] %vm712_vm7, %v2196_v2  ;;  %v2201_v19 = vsel %vm2185_vm15, %v2177_v53, %v2193_v1 }
 0x7d7   : > { %2205 = vst.msk [vmem:[%s278_s27 + $0x18] sm:$0xff] %vm712_vm7, %v2197_v4 }
 0x7d8   : > { %2206 = vst.msk [vmem:[%s278_s27 + $0x20] sm:$0xff] %vm712_vm7, %v2198_v14 }
 0x7d9   : > { %2207 = vst.msk [vmem:[%s278_s27 + $0x28] sm:$0xff] %vm712_vm7, %v2199_v10 }
 0x7da   : > { %2208 = vst.msk [vmem:[%s278_s27 + $0x30] sm:$0xff] %vm712_vm7, %v2200_v17 }
 0x7db   : > { %2209 = vst.msk [vmem:[%s278_s27 + $0x38] sm:$0xff] %vm712_vm7, %v2201_v19 }
 0x7dc PF: > { %s17_s24 = sadd.s32 1, %s2396_s24  }
 0x7dd   : > { %p14_p4 = scmp.ge.s32.totalorder %s17_s24, 4  }
 0x7df   :  { %16 = sbr.rel (!%p14_p4) target bundleno = 1 (0x1), region = 85 }

</bundles_post_ra>
